<compile_context>
chip_gen: v5e
topology: v5e:2x2
jax: 0.10.0
libtpu: 0.0.40
codegen_flags: <defaults>
</compile_context>

<pallas_src>
import functools

import jax
import jax.numpy as jnp
from jax.experimental import pallas as pl
from jax.experimental.pallas import tpu as pltpu

_EPS = 1e-5
_LANES = 128


# ----------------------------- kernels --------------------------------------

def _conv1x1_stats_kernel(x_ref, w_ref, y_ref, s_ref, *, cdt):
    """y = x @ w (1x1 conv); also emit per-tile [sum, sum_sq] for the next BN."""
    y = jnp.dot(x_ref[...].astype(cdt), w_ref[...],
                preferred_element_type=jnp.float32)
    y_ref[...] = y.astype(y_ref.dtype)
    s_ref[0, :, :] = jnp.concatenate(
        [jnp.sum(y, axis=0, keepdims=True),
         jnp.sum(y * y, axis=0, keepdims=True)], axis=0)


def _bn_relu_conv3x3_stats_kernel(y1_ref, sc_ref, bi_ref, lm_ref, rm_ref,
                                  w2c_ref, y2_ref, s_ref, *, cdt, w_img):
    """h = relu(bn(y1)); y2 = conv3x3(h) via one fused MXU matmul; bn2 partials."""
    R, C = y1_ref.shape                       # C = 128-padded bottleneck width
    f32 = jnp.float32

    # BN + ReLU in f32, then cast to the compute dtype immediately: all the
    # shift/concat traffic below is done in the narrow dtype.
    h1 = jnp.maximum(y1_ref[...].astype(f32) * sc_ref[...] + bi_ref[...],
                     0.0).astype(cdt)

    # Horizontal (dx) taps: +-1 flat row, multiplied by resident 0/1 edge masks
    # (rows whose neighbour crosses a W image edge are zeroed).
    zrow = jnp.zeros((1, C), cdt)
    left = jnp.concatenate([zrow, h1[:R - 1]], axis=0) * lm_ref[...]
    right = jnp.concatenate([h1[1:], zrow], axis=0) * rm_ref[...]

    # Single shared patch (R, 3*C) and ONE matmul with N = 3*C output lanes:
    # columns [t0 | t1 | t2] are the per-dy (kh) partial outputs.
    patch = jnp.concatenate([left, h1, right], axis=1)
    t = jnp.dot(patch, w2c_ref[...], preferred_element_type=jnp.float32)
    t0 = t[:, :C]
    t1 = t[:, C:2 * C]
    t2 = t[:, 2 * C:]

    # Vertical (dy) taps applied to the f32 partial outputs: vreg-aligned row
    # shifts by +-W; the zero strip is exactly the top/bottom image padding.
    zimg = jnp.zeros((w_img, C), f32)
    y2 = (t1
          + jnp.concatenate([zimg, t0[:R - w_img]], axis=0)
          + jnp.concatenate([t2[w_img:], zimg], axis=0))

    y2_ref[...] = y2.astype(y2_ref.dtype)
    s_ref[0, :, :] = jnp.concatenate(
        [jnp.sum(y2, axis=0, keepdims=True),
         jnp.sum(y2 * y2, axis=0, keepdims=True)], axis=0)


def _bn_relu_conv1x1_stats_kernel(a_ref, sc_ref, bi_ref, w_ref, y_ref, s_ref,
                                  *, cdt):
    """h = relu(bn(a)); y = h @ w (1x1 conv); emit bn3 partials."""
    h = jnp.maximum(a_ref[...].astype(jnp.float32) * sc_ref[...] + bi_ref[...],
                    0.0)
    y = jnp.dot(h.astype(cdt), w_ref[...], preferred_element_type=jnp.float32)
    y_ref[...] = y.astype(y_ref.dtype)
    s_ref[0, :, :] = jnp.concatenate(
        [jnp.sum(y, axis=0, keepdims=True),
         jnp.sum(y * y, axis=0, keepdims=True)], axis=0)


def _bn_add_relu_kernel(y_ref, sc_ref, bi_ref, res_ref, o_ref):
    """out = relu(bn3(y) + identity)."""
    o = (y_ref[...].astype(jnp.float32) * sc_ref[...] + bi_ref[...]
         + res_ref[...].astype(jnp.float32))
    o_ref[...] = jnp.maximum(o, 0.0).astype(o_ref.dtype)


# ----------------------------- wrapper ---------------------------------------

def _round_up(x, m):
    return (x + m - 1) // m * m


def _pad_lanes(a, target, value=0.0):
    pad = target - a.shape[-1]
    if pad == 0:
        return a
    cfg = [(0, 0)] * (a.ndim - 1) + [(0, pad)]
    return jnp.pad(a, cfg, constant_values=value)


def _row_tile(R):
    """Largest multiple-of-8 divisor of R not exceeding 1024 rows."""
    if R <= 1024:
        return R
    best = 8
    for tr in range(8, 1025, 8):
        if R % tr == 0:
            best = tr
    return best


def _finalize_bn(partial_stats, gamma, beta, count):
    """(tiles, 2, C) per-tile [sum, sum_sq] -> per-channel affine (scale, bias)."""
    s = jnp.sum(partial_stats, axis=0)
    mean = s[0] / count
    var = jnp.maximum(s[1] / count - mean * mean, 0.0)   # biased var (training BN)
    scale = gamma * jax.lax.rsqrt(var + _EPS)
    bias = beta - mean * scale
    return (scale[None, :].astype(jnp.float32),
            bias[None, :].astype(jnp.float32))


@functools.partial(jax.jit, static_argnames=("compute_dtype",))
def bottleneck_forward(x_nhwc, w1t, g1, b1, w2t, g2, b2, w3t, g3, b3,
                       *, compute_dtype=jnp.bfloat16):
    """Bottleneck forward.  x_nhwc: (N, H, W, Cin); weights in PyTorch OIHW layout."""
    N, H, W, Cin = x_nhwc.shape
    Cw = w1t.shape[0]
    Cout = w3t.shape[0]
    if Cin != Cout:
        raise NotImplementedError(
            "TODO(synk): downsample branch (Cin != Cout) not implemented")
    R = H * W
    rows = N * R
    if R % 8 != 0:
        raise NotImplementedError(
            "TODO(synk): pad the row dimension when H*W is not a multiple of 8")

    cdt = compute_dtype
    Cp = _round_up(Cw, _LANES)   # bottleneck width padded to full 128-lane vregs

    # --- parameter prep (tiny, keeps every in-kernel lane dim 128-aligned) ---
    w1 = _pad_lanes(jnp.transpose(w1t[:, :, 0, 0], (1, 0)), Cp).astype(cdt)   # (Cin,Cp)
    w2 = jnp.transpose(w2t, (2, 3, 1, 0))                                     # (kh,kw,Ci,Co)
    w2 = _pad_lanes(w2, Cp)                                                   # pad Cout
    w2 = jnp.pad(w2, ((0, 0), (0, 0), (0, Cp - Cw), (0, 0)))                  # pad Cin
    # Fused 3x3 weight: row = kw*Cp + ci, col = kh*Cp + co  (one matmul -> [t0|t1|t2])
    w2c = jnp.transpose(w2, (1, 2, 0, 3)).reshape(3 * Cp, 3 * Cp).astype(cdt)
    w3 = jnp.pad(jnp.transpose(w3t[:, :, 0, 0], (1, 0)),
                 ((0, Cp - Cw), (0, 0))).astype(cdt)                          # (Cp,Cout)
    g1p, b1p = _pad_lanes(g1, Cp, 1.0), _pad_lanes(b1, Cp, 0.0)
    g2p, b2p = _pad_lanes(g2, Cp, 1.0), _pad_lanes(b2, Cp, 0.0)

    # Resident horizontal edge masks (same for every image in the batch).
    col = jnp.arange(R, dtype=jnp.int32) % W
    lmask = (col > 0).astype(cdt)[:, None]        # (R, 1)
    rmask = (col < W - 1).astype(cdt)[:, None]    # (R, 1)

    # Channels-last 2D slab, cast once to the compute dtype (halves the conv1
    # read and the pass-4 residual read in bf16 mode; no-op in f32 mode).
    x2d = x_nhwc.reshape(rows, Cin).astype(cdt)

    TR = _row_tile(R)
    NT = R // TR

    vmem_limit = 48 * 1024 * 1024   # fits v7x's 64 MiB; plenty of headroom on v5e/v6e
    cparams_rows = pltpu.CompilerParams(
        dimension_semantics=("parallel", "parallel"), vmem_limit_bytes=vmem_limit)
    cparams_img = pltpu.CompilerParams(
        dimension_semantics=("parallel",), vmem_limit_bytes=vmem_limit)

    # Row-tiled (passes 1/3/4) specs.
    def act_rows(c):
        return pl.BlockSpec((TR, c), lambda n, r: (n * NT + r, 0))

    def full_rows(shape):
        return pl.BlockSpec(shape, lambda n, r: (0,) * len(shape))

    def stats_rows(c):
        return pl.BlockSpec((1, 2, c), lambda n, r: (n * NT + r, 0, 0))

    # Whole-image (pass 2) specs.
    def act_img(c):
        return pl.BlockSpec((R, c), lambda n: (n, 0))

    def full_img(shape):
        return pl.BlockSpec(shape, lambda n: (0,) * len(shape))

    def stats_img(c):
        return pl.BlockSpec((1, 2, c), lambda n: (n, 0, 0))

    # ---- pass 1: conv1 (1x1) + bn1 partial stats (row-tiled) ----
    y1, s1 = pl.pallas_call(
        functools.partial(_conv1x1_stats_kernel, cdt=cdt),
        grid=(N, NT),
        in_specs=[act_rows(Cin), full_rows(w1.shape)],
        out_specs=[act_rows(Cp), stats_rows(Cp)],
        out_shape=[jax.ShapeDtypeStruct((rows, Cp), cdt),
                   jax.ShapeDtypeStruct((N * NT, 2, Cp), jnp.float32)],
        compiler_params=cparams_rows,
    )(x2d, w1)

    # ---- pass 2: bn1 + relu -> conv2 (3x3) + bn2 partial stats (whole image) ----
    sc1, bi1 = _finalize_bn(s1, g1p, b1p, rows)
    y2, s2 = pl.pallas_call(
        functools.partial(_bn_relu_conv3x3_stats_kernel, cdt=cdt, w_img=W),
        grid=(N,),
        in_specs=[act_img(Cp), full_img(sc1.shape), full_img(bi1.shape),
                  full_img(lmask.shape), full_img(rmask.shape),
                  full_img(w2c.shape)],
        out_specs=[act_img(Cp), stats_img(Cp)],
        out_shape=[jax.ShapeDtypeStruct((rows, Cp), cdt),
                   jax.ShapeDtypeStruct((N, 2, Cp), jnp.float32)],
        compiler_params=cparams_img,
    )(y1, sc1, bi1, lmask, rmask, w2c)

    # ---- pass 3: bn2 + relu -> conv3 (1x1) + bn3 partial stats (row-tiled) ----
    sc2, bi2 = _finalize_bn(s2, g2p, b2p, rows)
    y3, s3 = pl.pallas_call(
        functools.partial(_bn_relu_conv1x1_stats_kernel, cdt=cdt),
        grid=(N, NT),
        in_specs=[act_rows(Cp), full_rows(sc2.shape), full_rows(bi2.shape),
                  full_rows(w3.shape)],
        out_specs=[act_rows(Cout), stats_rows(Cout)],
        out_shape=[jax.ShapeDtypeStruct((rows, Cout), cdt),
                   jax.ShapeDtypeStruct((N * NT, 2, Cout), jnp.float32)],
        compiler_params=cparams_rows,
    )(y2, sc2, bi2, w3)

    # ---- pass 4: bn3 -> residual add -> relu (row-tiled; y3 aliased when legal) ----
    sc3, bi3 = _finalize_bn(s3, g3, b3, rows)
    out_dtype = x_nhwc.dtype
    io_alias = {0: 0} if jnp.dtype(cdt) == jnp.dtype(out_dtype) else {}
    out2d = pl.pallas_call(
        _bn_add_relu_kernel,
        grid=(N, NT),
        in_specs=[act_rows(Cout), full_rows(sc3.shape), full_rows(bi3.shape),
                  act_rows(Cin)],
        out_specs=act_rows(Cout),
        out_shape=jax.ShapeDtypeStruct((rows, Cout), out_dtype),
        input_output_aliases=io_alias,
        compiler_params=cparams_rows,
    )(y3, sc3, bi3, x2d)

    return out2d.reshape(N, H, W, Cout)


# ---------------- pure-JAX reference (verification only) --------------------

def ref_bottleneck_nhwc(x, w1t, g1, b1, w2t, g2, b2, w3t, g3, b3):
    dn = ('NHWC', 'OIHW', 'NHWC')

    def conv(x, w, pad):
        return jax.lax.conv_general_dilated(x, w, (1, 1), pad,
                                            dimension_numbers=dn)

    def bn(y, g, b):
        m = jnp.mean(y, axis=(0, 1, 2), keepdims=True)
        v = jnp.mean((y - m) ** 2, axis=(0, 1, 2), keepdims=True)
        return (y - m) * jax.lax.rsqrt(v + _EPS) * g + b

    out = jax.nn.relu(bn(conv(x, w1t, 'VALID'), g1, b1))
    out = jax.nn.relu(bn(conv(out, w2t, ((1, 1), (1, 1))), g2, b2))
    out = bn(conv(out, w3t, 'VALID'), g3, b3)
    return jax.nn.relu(out + x)


if __name__ == "__main__":
    # Bottleneck(inplanes=32, planes=8): width=8, out channels = 8*4 = 32.
    N, H, W = 2, 16, 16
    planes = 8
    width = planes                 # base_width=64, groups=1
    inplanes = planes * 4          # downsample=None -> Cin == Cout
    cout = planes * 4

    keys = jax.random.split(jax.random.PRNGKey(0), 10)
    x = jax.random.normal(keys[0], (N, H, W, inplanes), jnp.float32)

    w1t = jax.random.normal(keys[1], (width, inplanes, 1, 1), jnp.float32) / jnp.sqrt(1.0 * inplanes)
    w2t = jax.random.normal(keys[2], (width, width, 3, 3), jnp.float32) / jnp.sqrt(9.0 * width)
    w3t = jax.random.normal(keys[3], (cout, width, 1, 1), jnp.float32) / jnp.sqrt(1.0 * width)
    g1 = jax.random.uniform(keys[4], (width,), jnp.float32, 0.7, 1.3)
    b1 = 0.1 * jax.random.normal(keys[5], (width,), jnp.float32)
    g2 = jax.random.uniform(keys[6], (width,), jnp.float32, 0.7, 1.3)
    b2 = 0.1 * jax.random.normal(keys[7], (width,), jnp.float32)
    g3 = jax.random.uniform(keys[8], (cout,), jnp.float32, 0.7, 1.3)
    b3 = 0.1 * jax.random.normal(keys[9], (cout,), jnp.float32)

    args = (x, w1t, g1, b1, w2t, g2, b2, w3t, g3, b3)

    ref = jax.block_until_ready(ref_bottleneck_nhwc(*args))

    # Exact-math check: f32 compute path vs the pure-JAX reference.
    out32 = jax.block_until_ready(
        bottleneck_forward(*args, compute_dtype=jnp.float32))
    assert out32.shape == (N, H, W, cout)
    assert jnp.allclose(out32, ref, atol=1e-2, rtol=1e-2), \
        float(jnp.max(jnp.abs(out32 - ref)))

    # Default bf16 MXU path (f32 accumulation + f32 BN statistics).  Note: BN
    # stats come from the f32 pre-cast conv output while normalization is
    # applied to the bf16-rounded stored activation (small, benign mismatch).
    out16 = jax.block_until_ready(bottleneck_forward(*args))
    assert out16.shape == (N, H, W, cout)
    rel = jnp.linalg.norm(out16 - ref) / jnp.linalg.norm(ref)
    assert float(rel) < 0.08, float(rel)

    print("KERNEL_OK")
</pallas_src>

<mosaic_0001>
module attributes {stable_mosaic.version = 11 : i64} {
  func.func @_conv1x1_stats_kernel(%arg0: i32, %arg1: i32, %arg2: memref<256x32xf32, #tpu.memory_space<vmem>>, %arg3: memref<32x128xf32, #tpu.memory_space<vmem>>, %arg4: memref<256x128xf32, #tpu.memory_space<vmem>>, %arg5: memref<1x2x128xf32, #tpu.memory_space<vmem>>) attributes {dimension_semantics = [#tpu.dimension_semantics<parallel>, #tpu.dimension_semantics<parallel>], iteration_bounds = array<i64: 2, 1>, scalar_prefetch = 0 : i64, scratch_operands = 0 : i64, tpu.core_type = #tpu.core_type<tc>, window_params = [{transform_indices = @transform_0, window_bounds = array<i64: 256, 32>}, {pipeline_mode = #tpu.pipeline_mode<synchronous>, transform_indices = @transform_1, window_bounds = array<i64: 32, 128>}, {transform_indices = @transform_2, window_bounds = array<i64: 256, 128>}, {transform_indices = @transform_3, window_bounds = array<i64: 1, 2, 128>}]} {
    %c0 = arith.constant 0 : index
    %c0_0 = arith.constant 0 : index
    %0 = vector.load %arg2[%c0, %c0_0] : memref<256x32xf32, #tpu.memory_space<vmem>>, vector<256x32xf32>
    %c0_1 = arith.constant 0 : index
    %c0_2 = arith.constant 0 : index
    %1 = vector.load %arg3[%c0_1, %c0_2] : memref<32x128xf32, #tpu.memory_space<vmem>>, vector<32x128xf32>
    %cst = arith.constant dense<0.000000e+00> : vector<256x128xf32>
    %2 = tpu.matmul %0, %1, %cst {dimension_numbers = #tpu.dot_dimension_numbers<[1], [0], [0], [1], [0, 0, 1, 1], [], []>} : vector<256x32xf32>, vector<32x128xf32>, vector<256x128xf32> -> vector<256x128xf32>
    %c0_3 = arith.constant 0 : index
    %c0_4 = arith.constant 0 : index
    %3 = vector.load %arg4[%c0_3, %c0_4] : memref<256x128xf32, #tpu.memory_space<vmem>>, vector<256x128xf32>
    tpu.vector_store %arg4[%c0_3, %c0_4], %2 {strides = array<i32>} : memref<256x128xf32, #tpu.memory_space<vmem>>, vector<256x128xf32>,
    %cst_5 = arith.constant dense<0.000000e+00> : vector<128xf32>
    %4 = vector.multi_reduction <add>, %2, %cst_5 [0] : vector<256x128xf32> to vector<128xf32>
    %5 = vector.shape_cast %4 : vector<128xf32> to vector<1x128xf32>
    %6 = arith.mulf %2, %2 : vector<256x128xf32>
    %cst_6 = arith.constant dense<0.000000e+00> : vector<128xf32>
    %7 = vector.multi_reduction <add>, %6, %cst_6 [0] : vector<256x128xf32> to vector<128xf32>
    %8 = vector.shape_cast %7 : vector<128xf32> to vector<1x128xf32>
    %9 = tpu.concatenate %5, %8 in 0 : vector<1x128xf32>, vector<1x128xf32> -> vector<2x128xf32>
    %c0_7 = arith.constant 0 : index
    %c0_8 = arith.constant 0 : index
    %c0_9 = arith.constant 0 : index
    %10 = vector.load %arg5[%c0_7, %c0_8, %c0_9] : memref<1x2x128xf32, #tpu.memory_space<vmem>>, vector<1x2x128xf32>
    %11 = vector.shape_cast %10 : vector<1x2x128xf32> to vector<2x128xf32>
    %12 = vector.shape_cast %9 : vector<2x128xf32> to vector<1x2x128xf32>
    tpu.vector_store %arg5[%c0_7, %c0_8, %c0_9], %12 {strides = array<i32>} : memref<1x2x128xf32, #tpu.memory_space<vmem>>, vector<1x2x128xf32>,
    return
  }
  func.func @transform_0(%arg0: i32, %arg1: i32) -> (i32, i32) {
    %c1_i32 = arith.constant 1 : i32
    %0 = arith.muli %arg0, %c1_i32 : i32
    %1 = arith.addi %0, %arg1 : i32
    %c0_i32 = arith.constant 0 : i32
    %c0_i32_0 = arith.constant 0 : i32
    return %1, %c0_i32 : i32, i32
  }
  func.func @transform_1(%arg0: i32, %arg1: i32) -> (i32, i32) {
    %c0_i32 = arith.constant 0 : i32
    %c0_i32_0 = arith.constant 0 : i32
    %c0_i32_1 = arith.constant 0 : i32
    return %c0_i32, %c0_i32_0 : i32, i32
  }
  func.func @transform_2(%arg0: i32, %arg1: i32) -> (i32, i32) {
    %c1_i32 = arith.constant 1 : i32
    %0 = arith.muli %arg0, %c1_i32 : i32
    %1 = arith.addi %0, %arg1 : i32
    %c0_i32 = arith.constant 0 : i32
    %c0_i32_0 = arith.constant 0 : i32
    return %1, %c0_i32 : i32, i32
  }
  func.func @transform_3(%arg0: i32, %arg1: i32) -> (i32, i32, i32) {
    %c1_i32 = arith.constant 1 : i32
    %0 = arith.muli %arg0, %c1_i32 : i32
    %1 = arith.addi %0, %arg1 : i32
    %c0_i32 = arith.constant 0 : i32
    %c0_i32_0 = arith.constant 0 : i32
    %c0_i32_1 = arith.constant 0 : i32
    return %1, %c0_i32, %c0_i32_0 : i32, i32, i32
  }
}

module attributes {stable_mosaic.version = 11 : i64} {
  func.func @_bn_relu_conv3x3_stats_kernel(%arg0: i32, %arg1: memref<256x128xf32, #tpu.memory_space<vmem>>, %arg2: memref<1x128xf32, #tpu.memory_space<vmem>>, %arg3: memref<1x128xf32, #tpu.memory_space<vmem>>, %arg4: memref<256x1xf32, #tpu.memory_space<vmem>>, %arg5: memref<256x1xf32, #tpu.memory_space<vmem>>, %arg6: memref<384x384xf32, #tpu.memory_space<vmem>>, %arg7: memref<256x128xf32, #tpu.memory_space<vmem>>, %arg8: memref<1x2x128xf32, #tpu.memory_space<vmem>>) attributes {dimension_semantics = [#tpu.dimension_semantics<parallel>], iteration_bounds = array<i64: 2>, scalar_prefetch = 0 : i64, scratch_operands = 0 : i64, tpu.core_type = #tpu.core_type<tc>, window_params = [{transform_indices = @transform_0, window_bounds = array<i64: 256, 128>}, {pipeline_mode = #tpu.pipeline_mode<synchronous>, transform_indices = @transform_1, window_bounds = array<i64: 1, 128>}, {pipeline_mode = #tpu.pipeline_mode<synchronous>, transform_indices = @transform_2, window_bounds = array<i64: 1, 128>}, {pipeline_mode = #tpu.pipeline_mode<synchronous>, transform_indices = @transform_3, window_bounds = array<i64: 256, 1>}, {pipeline_mode = #tpu.pipeline_mode<synchronous>, transform_indices = @transform_4, window_bounds = array<i64: 256, 1>}, {pipeline_mode = #tpu.pipeline_mode<synchronous>, transform_indices = @transform_5, window_bounds = array<i64: 384, 384>}, {transform_indices = @transform_6, window_bounds = array<i64: 256, 128>}, {transform_indices = @transform_7, window_bounds = array<i64: 1, 2, 128>}]} {
    %c0 = arith.constant 0 : index
    %c0_0 = arith.constant 0 : index
    %0 = vector.load %arg1[%c0, %c0_0] : memref<256x128xf32, #tpu.memory_space<vmem>>, vector<256x128xf32>
    %c0_1 = arith.constant 0 : index
    %c0_2 = arith.constant 0 : index
    %1 = vector.load %arg2[%c0_1, %c0_2] : memref<1x128xf32, #tpu.memory_space<vmem>>, vector<1x128xf32>
    %2 = vector.broadcast %1 : vector<1x128xf32> to vector<256x128xf32>
    %3 = arith.mulf %0, %2 : vector<256x128xf32>
    %c0_3 = arith.constant 0 : index
    %c0_4 = arith.constant 0 : index
    %4 = vector.load %arg3[%c0_3, %c0_4] : memref<1x128xf32, #tpu.memory_space<vmem>>, vector<1x128xf32>
    %5 = vector.broadcast %4 : vector<1x128xf32> to vector<256x128xf32>
    %6 = arith.addf %3, %5 : vector<256x128xf32>
    %cst = arith.constant 0.000000e+00 : f32
    %7 = vector.broadcast %cst : f32 to vector<256x128xf32>
    %8 = arith.maximumf %6, %7 : vector<256x128xf32>
    %cst_5 = arith.constant 0.000000e+00 : f32
    %9 = vector.broadcast %cst_5 : f32 to vector<1x128xf32>
    %10 = vector.extract_strided_slice %8 {offsets = [0, 0], sizes = [255, 128], strides = [1, 1]} : vector<256x128xf32> to vector<255x128xf32>
    %11 = tpu.concatenate %9, %10 in 0 : vector<1x128xf32>, vector<255x128xf32> -> vector<256x128xf32>
    %c0_6 = arith.constant 0 : index
    %c0_7 = arith.constant 0 : index
    %12 = vector.load %arg4[%c0_6, %c0_7] : memref<256x1xf32, #tpu.memory_space<vmem>>, vector<256x1xf32>
    %13 = vector.broadcast %12 : vector<256x1xf32> to vector<256x128xf32>
    %14 = arith.mulf %11, %13 : vector<256x128xf32>
    %15 = vector.extract_strided_slice %8 {offsets = [1, 0], sizes = [255, 128], strides = [1, 1]} : vector<256x128xf32> to vector<255x128xf32>
    %16 = tpu.concatenate %15, %9 in 0 : vector<255x128xf32>, vector<1x128xf32> -> vector<256x128xf32>
    %c0_8 = arith.constant 0 : index
    %c0_9 = arith.constant 0 : index
    %17 = vector.load %arg5[%c0_8, %c0_9] : memref<256x1xf32, #tpu.memory_space<vmem>>, vector<256x1xf32>
    %18 = vector.broadcast %17 : vector<256x1xf32> to vector<256x128xf32>
    %19 = arith.mulf %16, %18 : vector<256x128xf32>
    %20 = tpu.concatenate %14, %8, %19 in 1 : vector<256x128xf32>, vector<256x128xf32>, vector<256x128xf32> -> vector<256x384xf32>
    %c0_10 = arith.constant 0 : index
    %c0_11 = arith.constant 0 : index
    %21 = vector.load %arg6[%c0_10, %c0_11] : memref<384x384xf32, #tpu.memory_space<vmem>>, vector<384x384xf32>
    %cst_12 = arith.constant dense<0.000000e+00> : vector<256x384xf32>
    %22 = tpu.matmul %20, %21, %cst_12 {dimension_numbers = #tpu.dot_dimension_numbers<[1], [0], [0], [1], [0, 0, 1, 1], [], []>} : vector<256x384xf32>, vector<384x384xf32>, vector<256x384xf32> -> vector<256x384xf32>
    %23 = vector.extract_strided_slice %22 {offsets = [0, 0], sizes = [256, 128], strides = [1, 1]} : vector<256x384xf32> to vector<256x128xf32>
    %24 = vector.extract_strided_slice %22 {offsets = [0, 128], sizes = [256, 128], strides = [1, 1]} : vector<256x384xf32> to vector<256x128xf32>
    %25 = vector.extract_strided_slice %22 {offsets = [0, 256], sizes = [256, 128], strides = [1, 1]} : vector<256x384xf32> to vector<256x128xf32>
    %cst_13 = arith.constant 0.000000e+00 : f32
    %26 = vector.broadcast %cst_13 : f32 to vector<16x128xf32>
    %27 = vector.extract_strided_slice %23 {offsets = [0, 0], sizes = [240, 128], strides = [1, 1]} : vector<256x128xf32> to vector<240x128xf32>
    %28 = tpu.concatenate %26, %27 in 0 : vector<16x128xf32>, vector<240x128xf32> -> vector<256x128xf32>
    %29 = arith.addf %24, %28 : vector<256x128xf32>
    %30 = vector.extract_strided_slice %25 {offsets = [16, 0], sizes = [240, 128], strides = [1, 1]} : vector<256x128xf32> to vector<240x128xf32>
    %31 = tpu.concatenate %30, %26 in 0 : vector<240x128xf32>, vector<16x128xf32> -> vector<256x128xf32>
    %32 = arith.addf %29, %31 : vector<256x128xf32>
    %c0_14 = arith.constant 0 : index
    %c0_15 = arith.constant 0 : index
    %33 = vector.load %arg7[%c0_14, %c0_15] : memref<256x128xf32, #tpu.memory_space<vmem>>, vector<256x128xf32>
    tpu.vector_store %arg7[%c0_14, %c0_15], %32 {strides = array<i32>} : memref<256x128xf32, #tpu.memory_space<vmem>>, vector<256x128xf32>,
    %cst_16 = arith.constant dense<0.000000e+00> : vector<128xf32>
    %34 = vector.multi_reduction <add>, %32, %cst_16 [0] : vector<256x128xf32> to vector<128xf32>
    %35 = vector.shape_cast %34 : vector<128xf32> to vector<1x128xf32>
    %36 = arith.mulf %32, %32 : vector<256x128xf32>
    %cst_17 = arith.constant dense<0.000000e+00> : vector<128xf32>
    %37 = vector.multi_reduction <add>, %36, %cst_17 [0] : vector<256x128xf32> to vector<128xf32>
    %38 = vector.shape_cast %37 : vector<128xf32> to vector<1x128xf32>
    %39 = tpu.concatenate %35, %38 in 0 : vector<1x128xf32>, vector<1x128xf32> -> vector<2x128xf32>
    %c0_18 = arith.constant 0 : index
    %c0_19 = arith.constant 0 : index
    %c0_20 = arith.constant 0 : index
    %40 = vector.load %arg8[%c0_18, %c0_19, %c0_20] : memref<1x2x128xf32, #tpu.memory_space<vmem>>, vector<1x2x128xf32>
    %41 = vector.shape_cast %40 : vector<1x2x128xf32> to vector<2x128xf32>
    %42 = vector.shape_cast %39 : vector<2x128xf32> to vector<1x2x128xf32>
    tpu.vector_store %arg8[%c0_18, %c0_19, %c0_20], %42 {strides = array<i32>} : memref<1x2x128xf32, #tpu.memory_space<vmem>>, vector<1x2x128xf32>,
    return
  }
  func.func @transform_0(%arg0: i32) -> (i32, i32) {
    %c0_i32 = arith.constant 0 : i32
    %c0_i32_0 = arith.constant 0 : i32
    return %arg0, %c0_i32 : i32, i32
  }
  func.func @transform_1(%arg0: i32) -> (i32, i32) {
    %c0_i32 = arith.constant 0 : i32
    %c0_i32_0 = arith.constant 0 : i32
    %c0_i32_1 = arith.constant 0 : i32
    return %c0_i32, %c0_i32_0 : i32, i32
  }
  func.func @transform_2(%arg0: i32) -> (i32, i32) {
    %c0_i32 = arith.constant 0 : i32
    %c0_i32_0 = arith.constant 0 : i32
    %c0_i32_1 = arith.constant 0 : i32
    return %c0_i32, %c0_i32_0 : i32, i32
  }
  func.func @transform_3(%arg0: i32) -> (i32, i32) {
    %c0_i32 = arith.constant 0 : i32
    %c0_i32_0 = arith.constant 0 : i32
    %c0_i32_1 = arith.constant 0 : i32
    return %c0_i32, %c0_i32_0 : i32, i32
  }
  func.func @transform_4(%arg0: i32) -> (i32, i32) {
    %c0_i32 = arith.constant 0 : i32
    %c0_i32_0 = arith.constant 0 : i32
    %c0_i32_1 = arith.constant 0 : i32
    return %c0_i32, %c0_i32_0 : i32, i32
  }
  func.func @transform_5(%arg0: i32) -> (i32, i32) {
    %c0_i32 = arith.constant 0 : i32
    %c0_i32_0 = arith.constant 0 : i32
    %c0_i32_1 = arith.constant 0 : i32
    return %c0_i32, %c0_i32_0 : i32, i32
  }
  func.func @transform_6(%arg0: i32) -> (i32, i32) {
    %c0_i32 = arith.constant 0 : i32
    %c0_i32_0 = arith.constant 0 : i32
    return %arg0, %c0_i32 : i32, i32
  }
  func.func @transform_7(%arg0: i32) -> (i32, i32, i32) {
    %c0_i32 = arith.constant 0 : i32
    %c0_i32_0 = arith.constant 0 : i32
    %c0_i32_1 = arith.constant 0 : i32
    return %arg0, %c0_i32, %c0_i32_0 : i32, i32, i32
  }
}

module attributes {stable_mosaic.version = 11 : i64} {
  func.func @_bn_relu_conv1x1_stats_kernel(%arg0: i32, %arg1: i32, %arg2: memref<256x128xf32, #tpu.memory_space<vmem>>, %arg3: memref<1x128xf32, #tpu.memory_space<vmem>>, %arg4: memref<1x128xf32, #tpu.memory_space<vmem>>, %arg5: memref<128x32xf32, #tpu.memory_space<vmem>>, %arg6: memref<256x32xf32, #tpu.memory_space<vmem>>, %arg7: memref<1x2x32xf32, #tpu.memory_space<vmem>>) attributes {dimension_semantics = [#tpu.dimension_semantics<parallel>, #tpu.dimension_semantics<parallel>], iteration_bounds = array<i64: 2, 1>, scalar_prefetch = 0 : i64, scratch_operands = 0 : i64, tpu.core_type = #tpu.core_type<tc>, window_params = [{transform_indices = @transform_0, window_bounds = array<i64: 256, 128>}, {pipeline_mode = #tpu.pipeline_mode<synchronous>, transform_indices = @transform_1, window_bounds = array<i64: 1, 128>}, {pipeline_mode = #tpu.pipeline_mode<synchronous>, transform_indices = @transform_2, window_bounds = array<i64: 1, 128>}, {pipeline_mode = #tpu.pipeline_mode<synchronous>, transform_indices = @transform_3, window_bounds = array<i64: 128, 32>}, {transform_indices = @transform_4, window_bounds = array<i64: 256, 32>}, {transform_indices = @transform_5, window_bounds = array<i64: 1, 2, 32>}]} {
    %c0 = arith.constant 0 : index
    %c0_0 = arith.constant 0 : index
    %0 = vector.load %arg2[%c0, %c0_0] : memref<256x128xf32, #tpu.memory_space<vmem>>, vector<256x128xf32>
    %c0_1 = arith.constant 0 : index
    %c0_2 = arith.constant 0 : index
    %1 = vector.load %arg3[%c0_1, %c0_2] : memref<1x128xf32, #tpu.memory_space<vmem>>, vector<1x128xf32>
    %2 = vector.broadcast %1 : vector<1x128xf32> to vector<256x128xf32>
    %3 = arith.mulf %0, %2 : vector<256x128xf32>
    %c0_3 = arith.constant 0 : index
    %c0_4 = arith.constant 0 : index
    %4 = vector.load %arg4[%c0_3, %c0_4] : memref<1x128xf32, #tpu.memory_space<vmem>>, vector<1x128xf32>
    %5 = vector.broadcast %4 : vector<1x128xf32> to vector<256x128xf32>
    %6 = arith.addf %3, %5 : vector<256x128xf32>
    %cst = arith.constant 0.000000e+00 : f32
    %7 = vector.broadcast %cst : f32 to vector<256x128xf32>
    %8 = arith.maximumf %6, %7 : vector<256x128xf32>
    %c0_5 = arith.constant 0 : index
    %c0_6 = arith.constant 0 : index
    %9 = vector.load %arg5[%c0_5, %c0_6] : memref<128x32xf32, #tpu.memory_space<vmem>>, vector<128x32xf32>
    %cst_7 = arith.constant dense<0.000000e+00> : vector<256x32xf32>
    %10 = tpu.matmul %8, %9, %cst_7 {dimension_numbers = #tpu.dot_dimension_numbers<[1], [0], [0], [1], [0, 0, 1, 1], [], []>} : vector<256x128xf32>, vector<128x32xf32>, vector<256x32xf32> -> vector<256x32xf32>
    %c0_8 = arith.constant 0 : index
    %c0_9 = arith.constant 0 : index
    %11 = vector.load %arg6[%c0_8, %c0_9] : memref<256x32xf32, #tpu.memory_space<vmem>>, vector<256x32xf32>
    tpu.vector_store %arg6[%c0_8, %c0_9], %10 {strides = array<i32>} : memref<256x32xf32, #tpu.memory_space<vmem>>, vector<256x32xf32>,
    %cst_10 = arith.constant dense<0.000000e+00> : vector<32xf32>
    %12 = vector.multi_reduction <add>, %10, %cst_10 [0] : vector<256x32xf32> to vector<32xf32>
    %13 = vector.shape_cast %12 : vector<32xf32> to vector<1x32xf32>
    %14 = arith.mulf %10, %10 : vector<256x32xf32>
    %cst_11 = arith.constant dense<0.000000e+00> : vector<32xf32>
    %15 = vector.multi_reduction <add>, %14, %cst_11 [0] : vector<256x32xf32> to vector<32xf32>
    %16 = vector.shape_cast %15 : vector<32xf32> to vector<1x32xf32>
    %17 = tpu.concatenate %13, %16 in 0 : vector<1x32xf32>, vector<1x32xf32> -> vector<2x32xf32>
    %c0_12 = arith.constant 0 : index
    %c0_13 = arith.constant 0 : index
    %c0_14 = arith.constant 0 : index
    %18 = vector.load %arg7[%c0_12, %c0_13, %c0_14] : memref<1x2x32xf32, #tpu.memory_space<vmem>>, vector<1x2x32xf32>
    %19 = vector.shape_cast %18 : vector<1x2x32xf32> to vector<2x32xf32>
    %20 = vector.shape_cast %17 : vector<2x32xf32> to vector<1x2x32xf32>
    tpu.vector_store %arg7[%c0_12, %c0_13, %c0_14], %20 {strides = array<i32>} : memref<1x2x32xf32, #tpu.memory_space<vmem>>, vector<1x2x32xf32>,
    return
  }
  func.func @transform_0(%arg0: i32, %arg1: i32) -> (i32, i32) {
    %c1_i32 = arith.constant 1 : i32
    %0 = arith.muli %arg0, %c1_i32 : i32
    %1 = arith.addi %0, %arg1 : i32
    %c0_i32 = arith.constant 0 : i32
    %c0_i32_0 = arith.constant 0 : i32
    return %1, %c0_i32 : i32, i32
  }
  func.func @transform_1(%arg0: i32, %arg1: i32) -> (i32, i32) {
    %c0_i32 = arith.constant 0 : i32
    %c0_i32_0 = arith.constant 0 : i32
    %c0_i32_1 = arith.constant 0 : i32
    return %c0_i32, %c0_i32_0 : i32, i32
  }
  func.func @transform_2(%arg0: i32, %arg1: i32) -> (i32, i32) {
    %c0_i32 = arith.constant 0 : i32
    %c0_i32_0 = arith.constant 0 : i32
    %c0_i32_1 = arith.constant 0 : i32
    return %c0_i32, %c0_i32_0 : i32, i32
  }
  func.func @transform_3(%arg0: i32, %arg1: i32) -> (i32, i32) {
    %c0_i32 = arith.constant 0 : i32
    %c0_i32_0 = arith.constant 0 : i32
    %c0_i32_1 = arith.constant 0 : i32
    return %c0_i32, %c0_i32_0 : i32, i32
  }
  func.func @transform_4(%arg0: i32, %arg1: i32) -> (i32, i32) {
    %c1_i32 = arith.constant 1 : i32
    %0 = arith.muli %arg0, %c1_i32 : i32
    %1 = arith.addi %0, %arg1 : i32
    %c0_i32 = arith.constant 0 : i32
    %c0_i32_0 = arith.constant 0 : i32
    return %1, %c0_i32 : i32, i32
  }
  func.func @transform_5(%arg0: i32, %arg1: i32) -> (i32, i32, i32) {
    %c1_i32 = arith.constant 1 : i32
    %0 = arith.muli %arg0, %c1_i32 : i32
    %1 = arith.addi %0, %arg1 : i32
    %c0_i32 = arith.constant 0 : i32
    %c0_i32_0 = arith.constant 0 : i32
    %c0_i32_1 = arith.constant 0 : i32
    return %1, %c0_i32, %c0_i32_0 : i32, i32, i32
  }
}

module attributes {stable_mosaic.version = 11 : i64} {
  func.func @_bn_add_relu_kernel(%arg0: i32, %arg1: i32, %arg2: memref<256x32xf32, #tpu.memory_space<vmem>>, %arg3: memref<1x32xf32, #tpu.memory_space<vmem>>, %arg4: memref<1x32xf32, #tpu.memory_space<vmem>>, %arg5: memref<256x32xf32, #tpu.memory_space<vmem>>, %arg6: memref<256x32xf32, #tpu.memory_space<vmem>>) attributes {dimension_semantics = [#tpu.dimension_semantics<parallel>, #tpu.dimension_semantics<parallel>], iteration_bounds = array<i64: 2, 1>, scalar_prefetch = 0 : i64, scratch_operands = 0 : i64, tpu.core_type = #tpu.core_type<tc>, window_params = [{transform_indices = @transform_0, window_bounds = array<i64: 256, 32>}, {pipeline_mode = #tpu.pipeline_mode<synchronous>, transform_indices = @transform_1, window_bounds = array<i64: 1, 32>}, {pipeline_mode = #tpu.pipeline_mode<synchronous>, transform_indices = @transform_2, window_bounds = array<i64: 1, 32>}, {transform_indices = @transform_3, window_bounds = array<i64: 256, 32>}, {transform_indices = @transform_4, window_bounds = array<i64: 256, 32>}]} {
    %c0 = arith.constant 0 : index
    %c0_0 = arith.constant 0 : index
    %0 = vector.load %arg2[%c0, %c0_0] : memref<256x32xf32, #tpu.memory_space<vmem>>, vector<256x32xf32>
    %c0_1 = arith.constant 0 : index
    %c0_2 = arith.constant 0 : index
    %1 = vector.load %arg3[%c0_1, %c0_2] : memref<1x32xf32, #tpu.memory_space<vmem>>, vector<1x32xf32>
    %2 = vector.broadcast %1 : vector<1x32xf32> to vector<256x32xf32>
    %3 = arith.mulf %0, %2 : vector<256x32xf32>
    %c0_3 = arith.constant 0 : index
    %c0_4 = arith.constant 0 : index
    %4 = vector.load %arg4[%c0_3, %c0_4] : memref<1x32xf32, #tpu.memory_space<vmem>>, vector<1x32xf32>
    %5 = vector.broadcast %4 : vector<1x32xf32> to vector<256x32xf32>
    %6 = arith.addf %3, %5 : vector<256x32xf32>
    %c0_5 = arith.constant 0 : index
    %c0_6 = arith.constant 0 : index
    %7 = vector.load %arg5[%c0_5, %c0_6] : memref<256x32xf32, #tpu.memory_space<vmem>>, vector<256x32xf32>
    %8 = arith.addf %6, %7 : vector<256x32xf32>
    %cst = arith.constant 0.000000e+00 : f32
    %9 = vector.broadcast %cst : f32 to vector<256x32xf32>
    %10 = arith.maximumf %8, %9 : vector<256x32xf32>
    %c0_7 = arith.constant 0 : index
    %c0_8 = arith.constant 0 : index
    %11 = vector.load %arg6[%c0_7, %c0_8] : memref<256x32xf32, #tpu.memory_space<vmem>>, vector<256x32xf32>
    tpu.vector_store %arg6[%c0_7, %c0_8], %10 {strides = array<i32>} : memref<256x32xf32, #tpu.memory_space<vmem>>, vector<256x32xf32>,
    return
  }
  func.func @transform_0(%arg0: i32, %arg1: i32) -> (i32, i32) {
    %c1_i32 = arith.constant 1 : i32
    %0 = arith.muli %arg0, %c1_i32 : i32
    %1 = arith.addi %0, %arg1 : i32
    %c0_i32 = arith.constant 0 : i32
    %c0_i32_0 = arith.constant 0 : i32
    return %1, %c0_i32 : i32, i32
  }
  func.func @transform_1(%arg0: i32, %arg1: i32) -> (i32, i32) {
    %c0_i32 = arith.constant 0 : i32
    %c0_i32_0 = arith.constant 0 : i32
    %c0_i32_1 = arith.constant 0 : i32
    return %c0_i32, %c0_i32_0 : i32, i32
  }
  func.func @transform_2(%arg0: i32, %arg1: i32) -> (i32, i32) {
    %c0_i32 = arith.constant 0 : i32
    %c0_i32_0 = arith.constant 0 : i32
    %c0_i32_1 = arith.constant 0 : i32
    return %c0_i32, %c0_i32_0 : i32, i32
  }
  func.func @transform_3(%arg0: i32, %arg1: i32) -> (i32, i32) {
    %c1_i32 = arith.constant 1 : i32
    %0 = arith.muli %arg0, %c1_i32 : i32
    %1 = arith.addi %0, %arg1 : i32
    %c0_i32 = arith.constant 0 : i32
    %c0_i32_0 = arith.constant 0 : i32
    return %1, %c0_i32 : i32, i32
  }
  func.func @transform_4(%arg0: i32, %arg1: i32) -> (i32, i32) {
    %c1_i32 = arith.constant 1 : i32
    %0 = arith.muli %arg0, %c1_i32 : i32
    %1 = arith.addi %0, %arg1 : i32
    %c0_i32 = arith.constant 0 : i32
    %c0_i32_0 = arith.constant 0 : i32
    return %1, %c0_i32 : i32, i32
  }
}

</mosaic_0001>

<bundles_post_ra>
// kernel: bottleneck_forward.4
= control target key start
LH: loop header
LB: loop body
LE: loop exit
PB: predicated region body
PF: predicated region fallthrough
CT: control target
= control target key end

     0   :  { %9 = vsyncpa [#allocation3], 0  ;;  %s1265_s0 = inlined_call_operand.hbm [shape: f32[512,32], index: 0, kind: input, shape index: {}]   ;;  %s1266_s1 = inlined_call_operand.vmem [shape: f32[32,128], index: 1, kind: input, shape index: {}]   ;;  %s1267_s2 = inlined_call_operand.vmem [shape: f32[512,128], index: 2, kind: output, shape index: {0}]   ;;  %s1268_s3 = inlined_call_operand.vmem [shape: f32[2,2,128], index: 3, kind: output, shape index: {1}]  }
   0x1   :  { %11 = vsyncpa [#allocation3 + $0x1], 0  ;;  %s953_s12 = smov 0   ;;  %s955_s13 = smov 0  }
   0x2   :  { %s957_s14 = smov 0   ;;  %s959_s15 = smov 0  }
   0x3   :  { %s961_s16 = smov 0   ;;  %s963_s17 = smov 0  }
   0x4 LB: > { %s733_s18 = sadd.s32 4294967295, %s929_s17   ;;  %s29_s19 = sadd.s32 1, %s925_s16  ;;  %s929_s17 = sphi %s963_s17, %s17_s17   ;;  %s925_s16 = sphi %s961_s16, %s1275_s16   ;;  %s921_s15 = sphi %s959_s15, %s1274_s15   ;;  %s917_s14 = sphi %s957_s14, %s1273_s14   ;;  %s913_s13 = sphi %s955_s13, %s1272_s13   ;;  %s909_s12 = sphi %s953_s12, %s1271_s12  }
   0x5   : > { %p31_p0 = scmp.ge.s32.totalorder %s29_s19, 2  ;;  %s38_s20 = sadd.s32 1, %s917_s14 }
   0x6   : > { %p45_p1 = scmp.ne.s32.totalorder %s917_s14, %s913_s13  ;;  %p46_p2 = scmp.eq.s32.totalorder %s929_s17, 0 }
   0x7   : > { %s1277_s19 = smov (%p31_p0, %s29_s19), 0  ;;  %p51_p4 = scmp.ne.s32.totalorder %s913_s13, %s909_s12 }
   0x8   : > { %p989_p3 = por %p46_p2, %p45_p1  ;;  %s35_s22 = ssub.s32 %s925_s16, %s1277_s19 }
   0x9   : > { %p52_p5 = scmp.eq.s32.totalorder %s733_s18, 0  ;;  %p36_p6 = scmp.eq.s32.totalorder %s35_s22, 0 }
   0xa   : > { %p798_p8 = scmp.lt.s32.totalorder %s929_s17, 2  ;;  %s155_s25 = sand.u32 1, %s917_s14  }
   0xb   : > { %p996_p7 = por %p52_p5, %p51_p4  ;;  %s779_s26 = sshll.u32 %s925_s16, 8 }
   0xc   : > { %s1002_s24 = scalar_select %p36_p6, %s917_s14, %s38_s20  }
   0xd   : > { %s737_s27 = sshll.u32 %s155_s25, 8  ;;  %s165_s30 = scalar_lea.hbm %s1265_s0, %s779_s26 }
   0xe   : > { %s166_s4 = sshll.u32 %s165_s30, 4  ;;  %s159_s5 = scalar_lea.vmem [#allocation2], %s737_s27  ;;  %s167_s4 = int_to_ptr.hbm [resolvable:$true] %s166_s4 }
   0xf   : > { %s168_s6 = sshll.u32 %s159_s5, 4  ;;  %p795_p9 = pnand %p798_p8, %p989_p3  ;;  %s169_s6 = int_to_ptr.vmem [resolvable:$true] %s168_s6 }
  0x10   : > { %p740_p10 = scmp.ge.s32.totalorder %s929_s17, 1  ;;  %p176_p11 = scmp.lt.s32.totalorder %s929_s17, 3 }
  0x11   : > { %s156_s7 = scalar_lea.sflag [#allocation3], %s155_s25  ;;  %s931_s8 = smov 128  }
  0x12   : > { %s932_s9 = smov 8   ;;  %p177_p12 = pnand %p740_p10, %p176_p11 }
  0x13   : > { %797 = dma.hbm_to_vmem [thread:$0]  (!%p795_p9), %s167_s4, 4096, %s169_s6, %s156_s7, %s931_s8, %s931_s8, %s932_s9  }
  0x14   : > { %180 = sbr.rel (%p177_p12) target bundleno = 282 (0x11a), region = 28  ;;  %s182_s10 = sand.u32 (!%p177_p12), 1, %s913_s13  }
  0x15   : > { %s741_s11 = sshll.u32 (!%p177_p12), %s182_s10, 8  ;;  %s183_s12 = scalar_lea.sflag (!%p177_p12), [#allocation3], %s182_s10 }
  0x16   : > { %s1014_s18 = scalar_lea.vmem (!%p177_p12), [#allocation2], %s741_s11 }
  0x19   : > { %904 = dma.done.wait (%p996_p7), %s183_s12, 4096  }
  0x1a   : > { %906 = vsyncadd (%p996_p7), %s183_s12, 4294963200  ;;  %v267_v0 = vld [vmem:[%s1266_s1 + $0x18] sm:$0xff]  ;;  %v266_v1 = vld [vmem:[%s1266_s1 + $0x10] sm:$0xff]  ;;  %vm268_vm0 = vcmask 261120   ;;  %s742_s29 = sshll.u32 %s921_s15, 5  ;;  %p227_p0 = scmp.lt.s32.totalorder %s921_s15, 1 }
  0x1b   : > { %377 = vmatpush.msra.mxu0 %v267_v0  ;;  %780 = vmatpush.msra.mxu1 %v267_v0  ;;  %v265_v2 = vld [vmem:[%s1266_s1 + $0x8] sm:$0xff]  ;;  %v264_v3 = vld [vmem:[%s1266_s1] sm:$0xff]  ;;  %v234_v11 = vld [vmem:[%s1014_s18 + $0x10] sm:$0xff]  ;;  %p220_p13 = scmp.lt.s32.totalorder %s742_s29, 63  ;;  %vm616_vm1 = vcmask 1040384  }
  0x1c   : > { %781 = vmatpush.msra.mxu2 %v267_v0  ;;  %782 = vmatpush.msra.mxu3 %v267_v0  ;;  %v232_v4 = vld [vmem:[%s1014_s18] sm:$0xff]  ;;  %v233_v7 = vld [vmem:[%s1014_s18 + $0x8] sm:$0xff]  ;;  %v242_v12 = vld [vmem:[%s1014_s18 + $0x50] sm:$0xff]  ;;  %s1281_s15 = smov (!%p227_p0, %s921_s15), 1 }
  0x1d   : > { %378 = vmatpush.msra.mxu0 %v266_v1  ;;  %783 = vmatpush.msra.mxu1 %v266_v1  ;;  %v240_v5 = vld [vmem:[%s1014_s18 + $0x40] sm:$0xff]  ;;  %v241_v8 = vld [vmem:[%s1014_s18 + $0x48] sm:$0xff]  ;;  %v250_v13 = vld [vmem:[%s1014_s18 + $0x90] sm:$0xff]  ;;  %s1279_s29 = smov (!%p220_p13, %s742_s29), 63  ;;  %s744_s7 = sshll.u32 %s1281_s15, 1 }
  0x1e   : > { %784 = vmatpush.msra.mxu2 %v266_v1  ;;  %785 = vmatpush.msra.mxu3 %v266_v1  ;;  %v248_v6 = vld [vmem:[%s1014_s18 + $0x80] sm:$0xff]  ;;  %v249_v9 = vld [vmem:[%s1014_s18 + $0x88] sm:$0xff]  ;;  %v235_v15 = vld [vmem:[%s1014_s18 + $0x18] sm:$0xff]  ;;  %s743_s30 = sshll.u32 %s1279_s29, 3  ;;  %s230_s10 = scalar_lea.vmem %s1268_s3, %s744_s7 }
  0x1f   : > { %379 = vmatpush.msra.mxu0 %v265_v2  ;;  %786 = vmatpush.msra.mxu1 %v265_v2  ;;  %v256_v10 = vld [vmem:[%s1014_s18 + $0xc0] sm:$0xff]  ;;  %v257_v14 = vld [vmem:[%s1014_s18 + $0xc8] sm:$0xff]  ;;  %v243_v16 = vld [vmem:[%s1014_s18 + $0x58] sm:$0xff]  ;;  %s1100_s6 = scalar_lea.vmem %s1267_s2, %s743_s30 }
  0x20   : > { %787 = vmatpush.msra.mxu2 %v265_v2  ;;  %788 = vmatpush.msra.mxu3 %v265_v2  ;;  %v251_v17 = vld [vmem:[%s1014_s18 + $0x98] sm:$0xff]  ;;  %v258_v18 = vld [vmem:[%s1014_s18 + $0xd0] sm:$0xff]  ;;  %v236_v19 = vld [vmem:[%s1014_s18 + $0x20] sm:$0xff] }
  0x21   : > { %380 = vmatpush.msra.mxu0 %v264_v3  ;;  %789 = vmatpush.msra.mxu1 %v264_v3  ;;  %v244_v20 = vld [vmem:[%s1014_s18 + $0x60] sm:$0xff]  ;;  %v259_v21 = vld [vmem:[%s1014_s18 + $0xd8] sm:$0xff]  ;;  %v237_v23 = vld [vmem:[%s1014_s18 + $0x28] sm:$0xff] }
  0x22   : > { %745 = vmatmul.msk.f32.vlgmr.msra.gmra.mxu0 %vm268_vm0, %v232_v4  ;;  %753 = vmatmul.msk.f32.vlgmr.msra.gmra.mxu1 %vm268_vm0, %v240_v5  ;;  %v252_v22 = vld [vmem:[%s1014_s18 + $0xa0] sm:$0xff]  ;;  %v245_v24 = vld [vmem:[%s1014_s18 + $0x68] sm:$0xff]  ;;  %v238_v27 = vld [vmem:[%s1014_s18 + $0x30] sm:$0xff] }
  0x23   : > { %790 = vmatpush.msra.mxu2 %v264_v3  ;;  %791 = vmatpush.msra.mxu3 %v264_v3  ;;  %v260_v25 = vld [vmem:[%s1014_s18 + $0xe0] sm:$0xff]  ;;  %v253_v26 = vld [vmem:[%s1014_s18 + $0xa8] sm:$0xff]  ;;  %v246_v28 = vld [vmem:[%s1014_s18 + $0x70] sm:$0xff] }
  0x24   : > { %761 = vmatmul.msk.f32.vlgmr.msra.gmra.mxu2 %vm268_vm0, %v248_v6  ;;  %769 = vmatmul.msk.f32.vlgmr.msra.gmra.mxu3 %vm268_vm0, %v256_v10  ;;  %v261_v29 = vld [vmem:[%s1014_s18 + $0xe8] sm:$0xff]  ;;  %v254_v30 = vld [vmem:[%s1014_s18 + $0xb0] sm:$0xff]  ;;  %v239_v31 = vld [vmem:[%s1014_s18 + $0x38] sm:$0xff] }
  0x25   : > { %v247_v32 = vld [vmem:[%s1014_s18 + $0x78] sm:$0xff]  ;;  %v262_v33 = vld [vmem:[%s1014_s18 + $0xf0] sm:$0xff] }
  0x26   : > { %v255_v34 = vld [vmem:[%s1014_s18 + $0xb8] sm:$0xff] }
  0x27   : > { %v263_v35 = vld [vmem:[%s1014_s18 + $0xf8] sm:$0xff] }
  0x2a   : > { %746 = vmatmul.msk.f32.gmra.mxu0 %vm268_vm0, %v233_v7  ;;  %754 = vmatmul.msk.f32.gmra.mxu1 %vm268_vm0, %v241_v8 }
  0x2c   : > { %762 = vmatmul.msk.f32.gmra.mxu2 %vm268_vm0, %v249_v9  ;;  %770 = vmatmul.msk.f32.gmra.mxu3 %vm268_vm0, %v257_v14 }
  0x32   : > { %747 = vmatmul.msk.f32.gmra.mxu0 %vm268_vm0, %v234_v11  ;;  %755 = vmatmul.msk.f32.gmra.mxu1 %vm268_vm0, %v242_v12 }
  0x34   : > { %763 = vmatmul.msk.f32.gmra.mxu2 %vm268_vm0, %v250_v13  ;;  %771 = vmatmul.msk.f32.gmra.mxu3 %vm268_vm0, %v258_v18 }
  0x3a   : > { %748 = vmatmul.msk.f32.gmra.mxu0 %vm268_vm0, %v235_v15  ;;  %756 = vmatmul.msk.f32.gmra.mxu1 %vm268_vm0, %v243_v16 }
  0x3c   : > { %764 = vmatmul.msk.f32.gmra.mxu2 %vm268_vm0, %v251_v17  ;;  %772 = vmatmul.msk.f32.gmra.mxu3 %vm268_vm0, %v259_v21 }
  0x42   : > { %749 = vmatmul.msk.f32.gmra.mxu0 %vm268_vm0, %v236_v19  ;;  %757 = vmatmul.msk.f32.gmra.mxu1 %vm268_vm0, %v244_v20 }
  0x44   : > { %765 = vmatmul.msk.f32.gmra.mxu2 %vm268_vm0, %v252_v22  ;;  %773 = vmatmul.msk.f32.gmra.mxu3 %vm268_vm0, %v260_v25 }
  0x4a   : > { %750 = vmatmul.msk.f32.gmra.mxu0 %vm268_vm0, %v237_v23  ;;  %758 = vmatmul.msk.f32.gmra.mxu1 %vm268_vm0, %v245_v24 }
  0x4c   : > { %766 = vmatmul.msk.f32.gmra.mxu2 %vm268_vm0, %v253_v26  ;;  %774 = vmatmul.msk.f32.gmra.mxu3 %vm268_vm0, %v261_v29 }
  0x52   : > { %751 = vmatmul.msk.f32.gmra.mxu0 %vm268_vm0, %v238_v27  ;;  %759 = vmatmul.msk.f32.gmra.mxu1 %vm268_vm0, %v246_v28 }
  0x54   : > { %767 = vmatmul.msk.f32.gmra.mxu2 %vm268_vm0, %v254_v30  ;;  %775 = vmatmul.msk.f32.gmra.mxu3 %vm268_vm0, %v262_v33 }
  0x5a   : > { %752 = vmatmul.msk.f32.gmra.mxu0 %vm268_vm0, %v239_v31  ;;  %760 = vmatmul.msk.f32.gmra.mxu1 %vm268_vm0, %v247_v32 }
  0x5c   : > { %768 = vmatmul.msk.f32.gmra.mxu2 %vm268_vm0, %v255_v34  ;;  %776 = vmatmul.msk.f32.gmra.mxu3 %vm268_vm0, %v263_v35 }
  0x9f   : > { %v382_v36 = vpop.f32.mrf.mxu0  ;;  %v1102_v37 = vpop.f32.mrf.mxu1 }
  0xa0   : > { %478 = vst [vmem:[%s1100_s6] sm:$0xff] %v382_v36  ;;  %v547_v58 = vmul.f32 %v382_v36, %v382_v36  ;;  %v555_v22 = vmul.f32 %v1102_v37, %v1102_v37 }
  0xa1   : > { %486 = vst [vmem:[%s1100_s6 + $0x40] sm:$0xff] %v1102_v37 }
  0xa7   : > { %v385_v38 = vpop.f32.mrf.mxu0  ;;  %v1107_v39 = vpop.f32.mrf.mxu1 }
  0xa8   : > { %479 = vst [vmem:[%s1100_s6 + $0x8] sm:$0xff] %v385_v38  ;;  %v1110_v40 = vpop.f32.mrf.mxu2  ;;  %v1121_v44 = vpop.f32.mrf.mxu3  ;;  %v548_v57 = vmul.f32 %v385_v38, %v385_v38  ;;  %v510_v59 = vadd.f32 %v385_v38, %v382_v36  ;;  %v556_v25 = vmul.f32 %v1107_v39, %v1107_v39 }
  0xa9   : > { %487 = vst [vmem:[%s1100_s6 + $0x48] sm:$0xff] %v1107_v39 }
  0xaa   : > { %494 = vst [vmem:[%s1100_s6 + $0x80] sm:$0xff] %v1110_v40  ;;  %v579_v61 = vadd.f32 %v548_v57, %v547_v58 }
  0xab   : > { %502 = vst [vmem:[%s1100_s6 + $0xc0] sm:$0xff] %v1121_v44 }
  0xaf   : > { %v388_v41 = vpop.f32.mrf.mxu0  ;;  %v1116_v42 = vpop.f32.mrf.mxu1 }
  0xb0   : > { %480 = vst [vmem:[%s1100_s6 + $0x10] sm:$0xff] %v388_v41  ;;  %v1119_v43 = vpop.f32.mrf.mxu2  ;;  %v1134_v48 = vpop.f32.mrf.mxu3  ;;  %v549_v60 = vmul.f32 %v388_v41, %v388_v41  ;;  %v511_v62 = vadd.f32 %v510_v59, %v388_v41  ;;  %v557_v28 = vmul.f32 %v1116_v42, %v1116_v42 }
  0xb1   : > { %488 = vst [vmem:[%s1100_s6 + $0x50] sm:$0xff] %v1116_v42 }
  0xb2   : > { %495 = vst [vmem:[%s1100_s6 + $0x88] sm:$0xff] %v1119_v43  ;;  %v580_v2 = vadd.f32 %v579_v61, %v549_v60  ;;  %v563_v60 = vmul.f32 %v1110_v40, %v1110_v40 }
  0xb3   : > { %503 = vst [vmem:[%s1100_s6 + $0xc8] sm:$0xff] %v1134_v48 }
  0xb7   : > { %v391_v45 = vpop.f32.mrf.mxu0  ;;  %v1129_v46 = vpop.f32.mrf.mxu1 }
  0xb8   : > { %481 = vst [vmem:[%s1100_s6 + $0x18] sm:$0xff] %v391_v45  ;;  %v1132_v47 = vpop.f32.mrf.mxu2  ;;  %v1147_v52 = vpop.f32.mrf.mxu3  ;;  %v550_v63 = vmul.f32 %v391_v45, %v391_v45  ;;  %v512_v3 = vadd.f32 %v511_v62, %v391_v45  ;;  %v558_v31 = vmul.f32 %v1129_v46, %v1129_v46  ;;  %v564_v62 = vmul.f32 %v1119_v43, %v1119_v43 }
  0xb9   : > { %489 = vst [vmem:[%s1100_s6 + $0x58] sm:$0xff] %v1129_v46 }
  0xba   : > { %496 = vst [vmem:[%s1100_s6 + $0x90] sm:$0xff] %v1132_v47  ;;  %v581_v7 = vadd.f32 %v580_v2, %v550_v63 }
  0xbb   : > { %504 = vst [vmem:[%s1100_s6 + $0xd0] sm:$0xff] %v1147_v52 }
  0xbf   : > { %v394_v49 = vpop.f32.mrf.mxu0  ;;  %v1142_v50 = vpop.f32.mrf.mxu1 }
  0xc0   : > { %482 = vst [vmem:[%s1100_s6 + $0x20] sm:$0xff] %v394_v49  ;;  %v1145_v51 = vpop.f32.mrf.mxu2  ;;  %v1160_v56 = vpop.f32.mrf.mxu3  ;;  %v551_v4 = vmul.f32 %v394_v49, %v394_v49  ;;  %v513_v8 = vadd.f32 %v512_v3, %v394_v49  ;;  %v559_v36 = vmul.f32 %v1142_v50, %v1142_v50 }
  0xc1   : > { %490 = vst [vmem:[%s1100_s6 + $0x60] sm:$0xff] %v1142_v50  ;;  %v566_v3 = vmul.f32 %v1145_v51, %v1145_v51 }
  0xc2   : > { %497 = vst [vmem:[%s1100_s6 + $0x98] sm:$0xff] %v1145_v51  ;;  %v582_v10 = vadd.f32 %v581_v7, %v551_v4 }
  0xc3   : > { %505 = vst [vmem:[%s1100_s6 + $0xd8] sm:$0xff] %v1160_v56 }
  0xc7   : > { %v397_v53 = vpop.f32.mrf.mxu0  ;;  %v1155_v54 = vpop.f32.mrf.mxu1 }
  0xc8   : > { %483 = vst [vmem:[%s1100_s6 + $0x28] sm:$0xff] %v397_v53  ;;  %v1158_v55 = vpop.f32.mrf.mxu2  ;;  %v1171_v6 = vpop.f32.mrf.mxu3  ;;  %v552_v9 = vmul.f32 %v397_v53, %v397_v53  ;;  %v514_v11 = vadd.f32 %v513_v8, %v397_v53  ;;  %v560_v41 = vmul.f32 %v1155_v54, %v1155_v54 }
  0xc9   : > { %491 = vst [vmem:[%s1100_s6 + $0x68] sm:$0xff] %v1155_v54 }
  0xca   : > { %498 = vst [vmem:[%s1100_s6 + $0xa0] sm:$0xff] %v1158_v55  ;;  %v583_v13 = vadd.f32 %v582_v10, %v552_v9 }
  0xcb   : > { %506 = vst [vmem:[%s1100_s6 + $0xe0] sm:$0xff] %v1171_v6 }
  0xcf   : > { %v400_v0 = vpop.f32.mrf.mxu0  ;;  %v424_v1 = vpop.f32.mrf.mxu1 }
  0xd0   : > { %484 = vst [vmem:[%s1100_s6 + $0x30] sm:$0xff] %v400_v0  ;;  %v1169_v5 = vpop.f32.mrf.mxu2  ;;  %v553_v12 = vmul.f32 %v400_v0, %v400_v0  ;;  %v515_v14 = vadd.f32 %v514_v11, %v400_v0  ;;  %v1179_v21 = vpop.f32.mrf.mxu3  ;;  %v565_v0 = vmul.f32 %v1132_v47, %v1132_v47 }
  0xd1   : > { %492 = vst [vmem:[%s1100_s6 + $0x70] sm:$0xff] %v424_v1  ;;  %v568_v10 = vmul.f32 %v1169_v5, %v1169_v5 }
  0xd2   : > { %499 = vst [vmem:[%s1100_s6 + $0xa8] sm:$0xff] %v1169_v5  ;;  %v584_v17 = vadd.f32 %v583_v13, %v553_v12 }
  0xd3   : > { %507 = vst [vmem:[%s1100_s6 + $0xe8] sm:$0xff] %v1179_v21 }
  0xd7   : > { %v403_v15 = vpop.f32.mrf.mxu0  ;;  %v427_v16 = vpop.f32.mrf.mxu1 }
  0xd8   : > { %485 = vst [vmem:[%s1100_s6 + $0x38] sm:$0xff] %v403_v15  ;;  %v516_v18 = vadd.f32 %v515_v14, %v403_v15  ;;  %v554_v19 = vmul.f32 %v403_v15, %v403_v15  ;;  %v448_v20 = vpop.f32.mrf.mxu2  ;;  %v472_v35 = vpop.f32.mrf.mxu3  ;;  %v562_v53 = vmul.f32 %v427_v16, %v427_v16 }
  0xd9   : > { %493 = vst [vmem:[%s1100_s6 + $0x78] sm:$0xff] %v427_v16  ;;  %v569_v13 = vmul.f32 %v448_v20, %v448_v20 }
  0xda   : > { %v517_v23 = vadd.f32 %v516_v18, %v1102_v37  ;;  %v585_v24 = vadd.f32 %v584_v17, %v554_v19  ;;  %500 = vst [vmem:[%s1100_s6 + $0xb0] sm:$0xff] %v448_v20 }
  0xdb   : > { %508 = vst [vmem:[%s1100_s6 + $0xf0] sm:$0xff] %v472_v35 }
  0xdc   : > { %v518_v26 = vadd.f32 %v517_v23, %v1107_v39  ;;  %v586_v27 = vadd.f32 %v585_v24, %v555_v22  ;;  %v574_v24 = vmul.f32 %v1160_v56, %v1160_v56 }
  0xde   : > { %v519_v29 = vadd.f32 %v518_v26, %v1116_v42  ;;  %v587_v30 = vadd.f32 %v586_v27, %v556_v25  ;;  %v575_v26 = vmul.f32 %v1171_v6, %v1171_v6 }
  0xe0   : > { %v588_v32 = vadd.f32 %v587_v30, %v557_v28  ;;  %v520_v33 = vadd.f32 %v519_v29, %v1129_v46  ;;  %v451_v34 = vpop.f32.mrf.mxu2  ;;  %v561_v46 = vmul.f32 %v424_v1, %v424_v1  ;;  %v475_v59 = vpop.f32.mrf.mxu3 }
  0xe1   : > { %501 = vst [vmem:[%s1100_s6 + $0xb8] sm:$0xff] %v451_v34  ;;  %v570_v14 = vmul.f32 %v451_v34, %v451_v34 }
  0xe2   : > { %v521_v37 = vadd.f32 %v520_v33, %v1142_v50  ;;  %v589_v38 = vadd.f32 %v588_v32, %v558_v31  ;;  %509 = vst [vmem:[%s1100_s6 + $0xf8] sm:$0xff] %v475_v59  ;;  %v577_v32 = vmul.f32 %v472_v35, %v472_v35  ;;  %v578_v33 = vmul.f32 %v475_v59, %v475_v59 }
  0xe4   : > { %v522_v39 = vadd.f32 %v521_v37, %v1155_v54  ;;  %v590_v42 = vadd.f32 %v589_v38, %v559_v36 }
  0xe6   : > { %v591_v45 = vadd.f32 %v590_v42, %v560_v41  ;;  %v523_v49 = vadd.f32 %v522_v39, %v424_v1 }
  0xe8   : > { %v592_v57 = vadd.f32 %v591_v45, %v561_v46  ;;  %v524_v58 = vadd.f32 %v523_v49, %v427_v16 }
  0xea   : > { %v525_v50 = vadd.f32 %v524_v58, %v1110_v40  ;;  %v593_v61 = vadd.f32 %v592_v57, %v562_v53  ;;  %v567_v40 = vmul.f32 %v1158_v55, %v1158_v55 }
  0xec   : > { %v526_v54 = vadd.f32 %v525_v50, %v1119_v43  ;;  %v594_v63 = vadd.f32 %v593_v61, %v563_v60 }
  0xee   : > { %v527_v1 = vadd.f32 %v526_v54, %v1132_v47  ;;  %v595_v2 = vadd.f32 %v594_v63, %v564_v62 }
  0xf0   : > { %v596_v4 = vadd.f32 %v595_v2, %v565_v0  ;;  %v528_v7 = vadd.f32 %v527_v1, %v1145_v51  ;;  %v571_v51 = vmul.f32 %v1121_v44, %v1121_v44 }
  0xf2   : > { %v529_v8 = vadd.f32 %v528_v7, %v1158_v55  ;;  %v597_v9 = vadd.f32 %v596_v4, %v566_v3  ;;  %v572_v55 = vmul.f32 %v1134_v48, %v1134_v48 }
  0xf4   : > { %v530_v43 = vadd.f32 %v529_v8, %v1169_v5  ;;  %v598_v11 = vadd.f32 %v597_v9, %v567_v40  ;;  %v573_v5 = vmul.f32 %v1147_v52, %v1147_v52 }
  0xf6   : > { %v599_v47 = vadd.f32 %v598_v11, %v568_v10  ;;  %v531_v12 = vadd.f32 %v530_v43, %v448_v20 }
  0xf8   : > { %v600_v15 = vadd.f32 %v599_v47, %v569_v13  ;;  %v532_v16 = vadd.f32 %v531_v12, %v451_v34 }
  0xfa   : > { %v533_v17 = vadd.f32 %v532_v16, %v1121_v44  ;;  %v601_v18 = vadd.f32 %v600_v15, %v570_v14 }
  0xfc   : > { %v534_v19 = vadd.f32 %v533_v17, %v1134_v48  ;;  %v602_v22 = vadd.f32 %v601_v18, %v571_v51 }
  0xfe   : > { %v535_v20 = vadd.f32 %v534_v19, %v1147_v52  ;;  %v603_v23 = vadd.f32 %v602_v22, %v572_v55  ;;  %v576_v52 = vmul.f32 %v1179_v21, %v1179_v21 }
 0x100   : > { %v604_v25 = vadd.f32 %v603_v23, %v573_v5  ;;  %v536_v44 = vadd.f32 %v535_v20, %v1160_v56 }
 0x102   : > { %v537_v27 = vadd.f32 %v536_v44, %v1171_v6  ;;  %v605_v48 = vadd.f32 %v604_v25, %v574_v24 }
 0x104   : > { %v538_v28 = vadd.f32 %v537_v27, %v1179_v21  ;;  %v606_v29 = vadd.f32 %v605_v48, %v575_v26 }
 0x106   : > { %v607_v30 = vadd.f32 %v606_v29, %v576_v52  ;;  %v539_v31 = vadd.f32 %v538_v28, %v472_v35 }
 0x108   : > { %v608_v34 = vadd.f32 %v607_v30, %v577_v32  ;;  %v540_v36 = vadd.f32 %v539_v31, %v475_v59 }
 0x10a   : > { %v541_v56 = vrot.slane %v540_v36, 4  ;;  %v609_v37 = vadd.f32 %v608_v34, %v578_v33 }
 0x10c   : > { %v542_v38 = vadd.f32 %v541_v56, %v540_v36  ;;  %v610_v39 = vrot.slane %v609_v37, 4 }
 0x10e   : > { %v543_v6 = vrot.slane %v542_v38, 2  ;;  %v611_v41 = vadd.f32 %v610_v39, %v609_v37 }
 0x110   : > { %v544_v42 = vadd.f32 %v543_v6, %v542_v38  ;;  %v612_v45 = vrot.slane %v611_v41, 2 }
 0x112   : > { %v545_v49 = vrot.slane %v544_v42, 1  ;;  %v613_v46 = vadd.f32 %v612_v45, %v611_v41 }
 0x114   : > { %v614_v21 = vrot.slane %v613_v46, 1  ;;  %v546_v35 = vadd.f32 %v545_v49, %v544_v42 }
 0x116   : > { %v615_v53 = vadd.f32 %v614_v21, %v613_v46 }
 0x118   : > { %v617_v57 = vsel %vm616_vm1, %v546_v35, %v615_v53 }
 0x119   : > { %618 = vst [vmem:[%s230_s10] sm:$0x3] %v617_v57 }
 0x11a PF: > { %s17_s17 = sadd.s32 1, %s929_s17   ;;  %s1271_s12 = smov %s913_s13 }
 0x11b   : > { %p14_p1 = scmp.ge.s32.totalorder %s17_s17, 4   ;;  %s1272_s13 = smov %s917_s14 }
 0x11c   : > { %s1273_s14 = smov %s1002_s24  ;;  %s1274_s15 = smov %s925_s16 }
 0x11d   : > { %s1275_s16 = smov %s1277_s19  ;;  %16 = sbr.rel (!%p14_p1) target bundleno = 4 (0x4), region = 80 }
 0x122   :  { %661 = vsyncpa [#allocation3], 1 }
 0x123   :  { %663 = vsyncpa [#allocation3 + $0x1], 1 }

// kernel: bottleneck_forward.7
= control target key start
LH: loop header
LB: loop body
LE: loop exit
PB: predicated region body
PF: predicated region fallthrough
CT: control target
= control target key end

     0   :  { %s655_s15 = smov 0   ;;  %s657_s16 = smov 0   ;;  %s937_s0 = inlined_call_operand.vmem [shape: f32[512,32], index: 0, kind: input, shape index: {}, may-alias: {0,4}]   ;;  %s938_s1 = inlined_call_operand.vmem [shape: f32[1,32], index: 1, kind: input, shape index: {}]   ;;  %s939_s2 = inlined_call_operand.vmem [shape: f32[1,32], index: 2, kind: input, shape index: {}]   ;;  %s940_s3 = inlined_call_operand.vmem [shape: f32[512,32], index: 3, kind: input, shape index: {}]   ;;  %s941_s4 = inlined_call_operand.vmem [shape: f32[512,32], index: 4, kind: output, shape index: {}, may-alias: {0,4}]  }
   0x1   :  { %s659_s17 = smov 0  }
   0x2 LB: > { %s26_s18 = sadd.s32 1, %s624_s16  ;;  %p571_p0 = scmp.ge.s32.totalorder %s628_s17, 1  ;;  %s628_s17 = sphi %s659_s17, %s14_s17   ;;  %s624_s16 = sphi %s657_s16, %s943_s16   ;;  %s620_s15 = sphi %s655_s15, %s942_s15  }
   0x3   : > { %p28_p1 = scmp.ge.s32.totalorder %s26_s18, 2  ;;  %p196_p2 = scmp.lt.s32.totalorder %s628_s17, 3 }
   0x5   : > { %s945_s18 = smov (%p28_p1, %s26_s18), 0  ;;  %p197_p3 = pnand %p571_p0, %p196_p2 }
   0x6   : > { %s572_s19 = sshll.u32 (!%p197_p3), %s620_s15, 5 }
   0x7   : > { %200 = sbr.rel (%p197_p3) target bundleno = 61 (0x3d), region = 36  ;;  %p232_p4 = scmp.lt.s32.totalorder (!%p197_p3), %s572_s19, 63 }
   0xc   : > { %s947_s19 = smov (!%p232_p4, %s572_s19), 63  ;;  %v684_v0 = vld [vmem:[%s938_s1] ss:$0 sm:$0xff]  ;;  %vm454_vm0 = vcmask 261120  }
   0xd   : > { %s673_s20 = sshll.u32 %s947_s19, 3  ;;  %v700_v12 = vld [vmem:[%s939_s2] ss:$0 sm:$0xff] }
   0xe   : > { %s679_s23 = scalar_lea.vmem %s937_s0, %s673_s20  ;;  %s717_s30 = scalar_lea.vmem %s940_s3, %s673_s20 }
   0xf   : > { %v254_v1 = vld [vmem:[%s679_s23] sm:$0xff]  ;;  %v255_v2 = vld [vmem:[%s679_s23 + $0x8] sm:$0xff]  ;;  %v256_v3 = vld [vmem:[%s679_s23 + $0x10] sm:$0xff]  ;;  %s750_s7 = scalar_lea.vmem %s941_s4, %s673_s20 }
  0x10   : > { %v257_v4 = vld [vmem:[%s679_s23 + $0x18] sm:$0xff]  ;;  %v258_v5 = vld [vmem:[%s679_s23 + $0x20] sm:$0xff]  ;;  %v259_v6 = vld [vmem:[%s679_s23 + $0x28] sm:$0xff]  ;;  %v290_v11 = vmul.f32 %v684_v0, %v254_v1  ;;  %v291_v15 = vmul.f32 %v684_v0, %v255_v2  ;;  %v292_v16 = vmul.f32 %v684_v0, %v256_v3 }
  0x11   : > { %v260_v7 = vld [vmem:[%s679_s23 + $0x30] sm:$0xff]  ;;  %v261_v8 = vld [vmem:[%s679_s23 + $0x38] sm:$0xff]  ;;  %v262_v9 = vld [vmem:[%s679_s23 + $0x40] sm:$0xff]  ;;  %v293_v17 = vmul.f32 %v684_v0, %v257_v4  ;;  %v294_v18 = vmul.f32 %v684_v0, %v258_v5  ;;  %v295_v19 = vmul.f32 %v684_v0, %v259_v6 }
  0x12   : > { %v263_v10 = vld [vmem:[%s679_s23 + $0x48] sm:$0xff]  ;;  %v264_v13 = vld [vmem:[%s679_s23 + $0x50] sm:$0xff]  ;;  %v265_v14 = vld [vmem:[%s679_s23 + $0x58] sm:$0xff]  ;;  %v296_v20 = vmul.f32 %v684_v0, %v260_v7  ;;  %v297_v21 = vmul.f32 %v684_v0, %v261_v8  ;;  %v298_v22 = vmul.f32 %v684_v0, %v262_v9  ;;  %v326_v26 = vadd.f32 %v700_v12, %v290_v11 }
  0x13   : > { %v299_v23 = vmul.f32 %v684_v0, %v263_v10  ;;  %v266_v24 = vld [vmem:[%s679_s23 + $0x60] sm:$0xff]  ;;  %v267_v25 = vld [vmem:[%s679_s23 + $0x68] sm:$0xff]  ;;  %v300_v27 = vmul.f32 %v684_v0, %v264_v13  ;;  %v301_v28 = vmul.f32 %v684_v0, %v265_v14  ;;  %v268_v29 = vld [vmem:[%s679_s23 + $0x70] sm:$0xff]  ;;  %v327_v30 = vadd.f32 %v700_v12, %v291_v15 }
  0x14   : > { %v328_v31 = vadd.f32 %v700_v12, %v292_v16  ;;  %v329_v32 = vadd.f32 %v700_v12, %v293_v17  ;;  %v269_v33 = vld [vmem:[%s679_s23 + $0x78] sm:$0xff]  ;;  %v330_v34 = vadd.f32 %v700_v12, %v294_v18  ;;  %v331_v35 = vadd.f32 %v700_v12, %v295_v19  ;;  %v270_v38 = vld [vmem:[%s679_s23 + $0x80] sm:$0xff]  ;;  %v271_v44 = vld [vmem:[%s679_s23 + $0x88] sm:$0xff] }
  0x15   : > { %v332_v36 = vadd.f32 %v700_v12, %v296_v20  ;;  %v333_v37 = vadd.f32 %v700_v12, %v297_v21  ;;  %v358_v39 = vld [vmem:[%s717_s30] sm:$0xff]  ;;  %v334_v40 = vadd.f32 %v700_v12, %v298_v22  ;;  %v335_v41 = vadd.f32 %v700_v12, %v299_v23  ;;  %v359_v46 = vld [vmem:[%s717_s30 + $0x8] sm:$0xff]  ;;  %v360_v47 = vld [vmem:[%s717_s30 + $0x10] sm:$0xff] }
  0x16   : > { %v302_v42 = vmul.f32 %v684_v0, %v266_v24  ;;  %v303_v43 = vmul.f32 %v684_v0, %v267_v25  ;;  %v390_v45 = vadd.f32 %v358_v39, %v326_v26  ;;  %v361_v48 = vld [vmem:[%s717_s30 + $0x18] sm:$0xff]  ;;  %v336_v49 = vadd.f32 %v700_v12, %v300_v27  ;;  %v272_v52 = vld [vmem:[%s679_s23 + $0x90] sm:$0xff]  ;;  %v274_v54 = vld [vmem:[%s679_s23 + $0xa0] sm:$0xff] }
  0x17   : > { %v337_v50 = vadd.f32 %v700_v12, %v301_v28  ;;  %v304_v51 = vmul.f32 %v684_v0, %v268_v29  ;;  %v273_v53 = vld [vmem:[%s679_s23 + $0x98] sm:$0xff]  ;;  %v756_v55 = vld [vmem:[%s679_s23 + $0xa8] sm:$0xff]  ;;  %v759_v56 = vld [vmem:[%s679_s23 + $0xb0] sm:$0xff]  ;;  %v391_v1 = vadd.f32 %v359_v46, %v327_v30  ;;  %v392_v2 = vadd.f32 %v360_v47, %v328_v31 }
  0x18   : > { %v762_v57 = vld [vmem:[%s679_s23 + $0xb8] sm:$0xff]  ;;  %v765_v58 = vld [vmem:[%s679_s23 + $0xc0] sm:$0xff]  ;;  %v768_v59 = vld [vmem:[%s679_s23 + $0xc8] sm:$0xff]  ;;  %v393_v3 = vadd.f32 %v361_v48, %v329_v32  ;;  %v305_v7 = vmul.f32 %v684_v0, %v269_v33  ;;  %v422_v8 = vmax.f32 %v390_v45, 0.0  ;;  %v338_v26 = vadd.f32 %v700_v12, %v302_v42 }
  0x19   : > { %v771_v60 = vld [vmem:[%s679_s23 + $0xd0] sm:$0xff]  ;;  %v774_v61 = vld [vmem:[%s679_s23 + $0xd8] sm:$0xff]  ;;  %v777_v62 = vld [vmem:[%s679_s23 + $0xe0] sm:$0xff]  ;;  %v423_v18 = vmax.f32 %v391_v1, 0.0  ;;  %v424_v19 = vmax.f32 %v392_v2, 0.0  ;;  %v306_v27 = vmul.f32 %v684_v0, %v270_v38  ;;  %v339_v31 = vadd.f32 %v700_v12, %v303_v43 }
  0x1a   : > { %v780_v63 = vld [vmem:[%s679_s23 + $0xe8] sm:$0xff]  ;;  %v362_v4 = vld [vmem:[%s717_s30 + $0x20] sm:$0xff]  ;;  %v364_v6 = vld [vmem:[%s717_s30 + $0x30] sm:$0xff]  ;;  %v425_v20 = vmax.f32 %v393_v3, 0.0  ;;  %v307_v32 = vmul.f32 %v684_v0, %v271_v44  ;;  %v309_v42 = vmul.f32 %v684_v0, %v273_v53  ;;  %v310_v47 = vmul.f32 %v684_v0, %v274_v54 }
  0x1b   : > { %v363_v5 = vld [vmem:[%s717_s30 + $0x28] sm:$0xff]  ;;  %v394_v9 = vadd.f32 %v362_v4, %v330_v34  ;;  %v396_v11 = vadd.f32 %v364_v6, %v332_v36  ;;  %v365_v13 = vld [vmem:[%s717_s30 + $0x38] sm:$0xff]  ;;  %v366_v14 = vld [vmem:[%s717_s30 + $0x40] sm:$0xff]  ;;  %v340_v36 = vadd.f32 %v700_v12, %v304_v51  ;;  %v342_v46 = vadd.f32 %v700_v12, %v306_v27 }
  0x1c   : > { %v395_v10 = vadd.f32 %v363_v5, %v331_v35  ;;  %v367_v15 = vld [vmem:[%s717_s30 + $0x48] sm:$0xff]  ;;  %v790_v16 = vld [vmem:[%s679_s23 + $0xf0] sm:$0xff]  ;;  %v793_v17 = vld [vmem:[%s679_s23 + $0xf8] sm:$0xff]  ;;  %v397_v21 = vadd.f32 %v365_v13, %v333_v37  ;;  %v398_v24 = vadd.f32 %v366_v14, %v334_v40  ;;  %v308_v37 = vmul.f32 %v684_v0, %v272_v52 }
  0x1d   : > { %v368_v22 = vld [vmem:[%s717_s30 + $0x50] sm:$0xff]  ;;  %455 = vst.msk [vmem:[%s750_s7] sm:$0xff] %vm454_vm0, %v422_v8  ;;  %v426_v23 = vmax.f32 %v394_v9, 0.0  ;;  %v369_v25 = vld [vmem:[%s717_s30 + $0x58] sm:$0xff]  ;;  %v399_v29 = vadd.f32 %v367_v15, %v335_v41  ;;  %v370_v30 = vld [vmem:[%s717_s30 + $0x60] sm:$0xff]  ;;  %v428_v33 = vmax.f32 %v396_v11, 0.0  ;;  %v341_v41 = vadd.f32 %v700_v12, %v305_v7 }
  0x1e   : > { %456 = vst.msk [vmem:[%s750_s7 + $0x8] sm:$0xff] %vm454_vm0, %v423_v18  ;;  %v427_v28 = vmax.f32 %v395_v10, 0.0  ;;  %v400_v34 = vadd.f32 %v368_v22, %v336_v49  ;;  %v371_v35 = vld [vmem:[%s717_s30 + $0x68] sm:$0xff]  ;;  %v429_v38 = vmax.f32 %v397_v21, 0.0  ;;  %v401_v39 = vadd.f32 %v369_v25, %v337_v50  ;;  %v372_v40 = vld [vmem:[%s717_s30 + $0x70] sm:$0xff]  ;;  %v373_v45 = vld [vmem:[%s717_s30 + $0x78] sm:$0xff] }
  0x1f   : > { %457 = vst.msk [vmem:[%s750_s7 + $0x10] sm:$0xff] %vm454_vm0, %v424_v19  ;;  %v430_v43 = vmax.f32 %v398_v24, 0.0  ;;  %v402_v44 = vadd.f32 %v370_v30, %v338_v26  ;;  %v431_v48 = vmax.f32 %v399_v29, 0.0  ;;  %v403_v49 = vadd.f32 %v371_v35, %v339_v31  ;;  %v374_v50 = vld [vmem:[%s717_s30 + $0x80] sm:$0xff]  ;;  %v375_v2 = vld [vmem:[%s717_s30 + $0x88] sm:$0xff]  ;;  %v376_v6 = vld [vmem:[%s717_s30 + $0x90] sm:$0xff] }
  0x20   : > { %458 = vst.msk [vmem:[%s750_s7 + $0x18] sm:$0xff] %vm454_vm0, %v425_v20  ;;  %v343_v51 = vadd.f32 %v700_v12, %v307_v32  ;;  %v311_v52 = vmul.f32 %v684_v0, %v756_v55  ;;  %v432_v53 = vmax.f32 %v400_v34, 0.0  ;;  %v404_v1 = vadd.f32 %v372_v40, %v340_v36  ;;  %v377_v10 = vld [vmem:[%s717_s30 + $0x98] sm:$0xff]  ;;  %v378_v15 = vld [vmem:[%s717_s30 + $0xa0] sm:$0xff]  ;;  %v379_v21 = vld [vmem:[%s717_s30 + $0xa8] sm:$0xff] }
  0x21   : > { %459 = vst.msk [vmem:[%s750_s7 + $0x20] sm:$0xff] %vm454_vm0, %v426_v23  ;;  %v344_v54 = vadd.f32 %v700_v12, %v308_v37  ;;  %v312_v3 = vmul.f32 %v684_v0, %v759_v56  ;;  %v433_v4 = vmax.f32 %v401_v39, 0.0  ;;  %v405_v5 = vadd.f32 %v373_v45, %v341_v41  ;;  %v380_v25 = vld [vmem:[%s717_s30 + $0xb0] sm:$0xff]  ;;  %v381_v29 = vld [vmem:[%s717_s30 + $0xb8] sm:$0xff]  ;;  %v383_v37 = vld [vmem:[%s717_s30 + $0xc8] sm:$0xff] }
  0x22   : > { %460 = vst.msk [vmem:[%s750_s7 + $0x28] sm:$0xff] %vm454_vm0, %v427_v28  ;;  %v345_v55 = vadd.f32 %v700_v12, %v309_v42  ;;  %v313_v7 = vmul.f32 %v684_v0, %v762_v57  ;;  %v434_v8 = vmax.f32 %v402_v44, 0.0  ;;  %v406_v9 = vadd.f32 %v374_v50, %v342_v46  ;;  %v384_v41 = vld [vmem:[%s717_s30 + $0xd0] sm:$0xff]  ;;  %v385_v45 = vld [vmem:[%s717_s30 + $0xd8] sm:$0xff]  ;;  %v387_v50 = vld [vmem:[%s717_s30 + $0xe8] sm:$0xff] }
  0x23   : > { %461 = vst.msk [vmem:[%s750_s7 + $0x30] sm:$0xff] %vm454_vm0, %v428_v33  ;;  %v346_v56 = vadd.f32 %v700_v12, %v310_v47  ;;  %v314_v11 = vmul.f32 %v684_v0, %v765_v58  ;;  %v435_v13 = vmax.f32 %v403_v49, 0.0  ;;  %v407_v14 = vadd.f32 %v375_v2, %v343_v51  ;;  %v382_v33 = vld [vmem:[%s717_s30 + $0xc0] sm:$0xff] }
  0x24   : > { %462 = vst.msk [vmem:[%s750_s7 + $0x38] sm:$0xff] %vm454_vm0, %v429_v38  ;;  %v347_v57 = vadd.f32 %v700_v12, %v311_v52  ;;  %v315_v18 = vmul.f32 %v684_v0, %v768_v59  ;;  %v436_v19 = vmax.f32 %v404_v1, 0.0  ;;  %v408_v20 = vadd.f32 %v376_v6, %v344_v54  ;;  %v388_v1 = vld [vmem:[%s717_s30 + $0xf0] sm:$0xff] }
  0x25   : > { %463 = vst.msk [vmem:[%s750_s7 + $0x40] sm:$0xff] %vm454_vm0, %v430_v43  ;;  %v348_v58 = vadd.f32 %v700_v12, %v312_v3  ;;  %v316_v22 = vmul.f32 %v684_v0, %v771_v60  ;;  %v437_v23 = vmax.f32 %v405_v5, 0.0  ;;  %v409_v24 = vadd.f32 %v377_v10, %v345_v55 }
  0x26   : > { %464 = vst.msk [vmem:[%s750_s7 + $0x48] sm:$0xff] %vm454_vm0, %v431_v48  ;;  %v349_v59 = vadd.f32 %v700_v12, %v313_v7  ;;  %v317_v26 = vmul.f32 %v684_v0, %v774_v61  ;;  %v438_v27 = vmax.f32 %v406_v9, 0.0  ;;  %v410_v28 = vadd.f32 %v378_v15, %v346_v56  ;;  %v386_v48 = vld [vmem:[%s717_s30 + $0xe0] sm:$0xff] }
  0x27   : > { %465 = vst.msk [vmem:[%s750_s7 + $0x50] sm:$0xff] %vm454_vm0, %v432_v53  ;;  %v350_v60 = vadd.f32 %v700_v12, %v314_v11  ;;  %v318_v30 = vmul.f32 %v684_v0, %v777_v62  ;;  %v439_v31 = vmax.f32 %v407_v14, 0.0  ;;  %v411_v32 = vadd.f32 %v379_v21, %v347_v57 }
  0x28   : > { %466 = vst.msk [vmem:[%s750_s7 + $0x58] sm:$0xff] %vm454_vm0, %v433_v4  ;;  %v351_v61 = vadd.f32 %v700_v12, %v315_v18  ;;  %v319_v34 = vmul.f32 %v684_v0, %v780_v63  ;;  %v440_v35 = vmax.f32 %v408_v20, 0.0  ;;  %v412_v36 = vadd.f32 %v380_v25, %v348_v58  ;;  %v389_v4 = vld [vmem:[%s717_s30 + $0xf8] sm:$0xff] }
  0x29   : > { %467 = vst.msk [vmem:[%s750_s7 + $0x60] sm:$0xff] %vm454_vm0, %v434_v8  ;;  %v352_v62 = vadd.f32 %v700_v12, %v316_v22  ;;  %v320_v38 = vmul.f32 %v684_v0, %v790_v16  ;;  %v441_v39 = vmax.f32 %v409_v24, 0.0  ;;  %v413_v40 = vadd.f32 %v381_v29, %v349_v59 }
  0x2a   : > { %468 = vst.msk [vmem:[%s750_s7 + $0x68] sm:$0xff] %vm454_vm0, %v435_v13  ;;  %v353_v63 = vadd.f32 %v700_v12, %v317_v26  ;;  %v321_v42 = vmul.f32 %v684_v0, %v793_v17  ;;  %v442_v43 = vmax.f32 %v410_v28, 0.0  ;;  %v414_v44 = vadd.f32 %v382_v33, %v350_v60 }
  0x2b   : > { %469 = vst.msk [vmem:[%s750_s7 + $0x70] sm:$0xff] %vm454_vm0, %v436_v19  ;;  %v354_v16 = vadd.f32 %v700_v12, %v318_v30  ;;  %v443_v46 = vmax.f32 %v411_v32, 0.0  ;;  %v415_v47 = vadd.f32 %v383_v37, %v351_v61  ;;  %v355_v49 = vadd.f32 %v700_v12, %v319_v34 }
  0x2c   : > { %470 = vst.msk [vmem:[%s750_s7 + $0x78] sm:$0xff] %vm454_vm0, %v437_v23  ;;  %v444_v0 = vmax.f32 %v412_v36, 0.0  ;;  %v416_v17 = vadd.f32 %v384_v41, %v352_v62  ;;  %v356_v51 = vadd.f32 %v700_v12, %v320_v38  ;;  %v445_v52 = vmax.f32 %v413_v40, 0.0 }
  0x2d   : > { %471 = vst.msk [vmem:[%s750_s7 + $0x80] sm:$0xff] %vm454_vm0, %v438_v27  ;;  %v417_v53 = vadd.f32 %v385_v45, %v353_v63  ;;  %v357_v2 = vadd.f32 %v700_v12, %v321_v42  ;;  %v446_v54 = vmax.f32 %v414_v44, 0.0  ;;  %v418_v3 = vadd.f32 %v386_v48, %v354_v16 }
  0x2e   : > { %472 = vst.msk [vmem:[%s750_s7 + $0x88] sm:$0xff] %vm454_vm0, %v439_v31  ;;  %v447_v5 = vmax.f32 %v415_v47, 0.0  ;;  %v419_v6 = vadd.f32 %v387_v50, %v355_v49  ;;  %v448_v55 = vmax.f32 %v416_v17, 0.0  ;;  %v420_v12 = vadd.f32 %v388_v1, %v356_v51 }
  0x2f   : > { %473 = vst.msk [vmem:[%s750_s7 + $0x90] sm:$0xff] %vm454_vm0, %v440_v35  ;;  %v449_v7 = vmax.f32 %v417_v53, 0.0  ;;  %v421_v8 = vadd.f32 %v389_v4, %v357_v2  ;;  %v450_v9 = vmax.f32 %v418_v3, 0.0 }
  0x30   : > { %474 = vst.msk [vmem:[%s750_s7 + $0x98] sm:$0xff] %vm454_vm0, %v441_v39  ;;  %v451_v10 = vmax.f32 %v419_v6, 0.0  ;;  %v452_v56 = vmax.f32 %v420_v12, 0.0 }
  0x31   : > { %475 = vst.msk [vmem:[%s750_s7 + $0xa0] sm:$0xff] %vm454_vm0, %v442_v43  ;;  %v453_v11 = vmax.f32 %v421_v8, 0.0 }
  0x32   : > { %476 = vst.msk [vmem:[%s750_s7 + $0xa8] sm:$0xff] %vm454_vm0, %v443_v46 }
  0x33   : > { %477 = vst.msk [vmem:[%s750_s7 + $0xb0] sm:$0xff] %vm454_vm0, %v444_v0 }
  0x34   : > { %478 = vst.msk [vmem:[%s750_s7 + $0xb8] sm:$0xff] %vm454_vm0, %v445_v52 }
  0x35   : > { %479 = vst.msk [vmem:[%s750_s7 + $0xc0] sm:$0xff] %vm454_vm0, %v446_v54 }
  0x36   : > { %480 = vst.msk [vmem:[%s750_s7 + $0xc8] sm:$0xff] %vm454_vm0, %v447_v5 }
  0x37   : > { %481 = vst.msk [vmem:[%s750_s7 + $0xd0] sm:$0xff] %vm454_vm0, %v448_v55 }
  0x38   : > { %482 = vst.msk [vmem:[%s750_s7 + $0xd8] sm:$0xff] %vm454_vm0, %v449_v7 }
  0x39   : > { %483 = vst.msk [vmem:[%s750_s7 + $0xe0] sm:$0xff] %vm454_vm0, %v450_v9 }
  0x3a   : > { %484 = vst.msk [vmem:[%s750_s7 + $0xe8] sm:$0xff] %vm454_vm0, %v451_v10 }
  0x3b   : > { %485 = vst.msk [vmem:[%s750_s7 + $0xf0] sm:$0xff] %vm454_vm0, %v452_v56 }
  0x3c   : > { %486 = vst.msk [vmem:[%s750_s7 + $0xf8] sm:$0xff] %vm454_vm0, %v453_v11 }
  0x3d PF: > { %s14_s17 = sadd.s32 1, %s628_s17   ;;  %s942_s15 = smov %s624_s16 }
  0x3e   : > { %p11_p5 = scmp.ge.s32.totalorder %s14_s17, 4   ;;  %s943_s16 = smov %s945_s18 }
  0x40   :  { %13 = sbr.rel (!%p11_p5) target bundleno = 2 (0x2), region = 69 }

// kernel: bottleneck_forward.6
= control target key start
LH: loop header
LB: loop body
LE: loop exit
PB: predicated region body
PF: predicated region fallthrough
CT: control target
= control target key end

     0   :  { %s982_s18 = smov 0   ;;  %s984_s19 = smov 0   ;;  %s1448_s0 = inlined_call_operand.vmem [shape: f32[512,128], index: 0, kind: input, shape index: {}]   ;;  %s1449_s1 = inlined_call_operand.vmem [shape: f32[1,128], index: 1, kind: input, shape index: {}]   ;;  %s1450_s2 = inlined_call_operand.vmem [shape: f32[1,128], index: 2, kind: input, shape index: {}]   ;;  %s1451_s3 = inlined_call_operand.vmem [shape: f32[128,32], index: 3, kind: input, shape index: {}]   ;;  %s1452_s4 = inlined_call_operand.vmem [shape: f32[512,32], index: 4, kind: output, shape index: {0}]   ;;  %s1453_s5 = inlined_call_operand.vmem [shape: f32[2,2,32], index: 5, kind: output, shape index: {1}]  }
   0x1   :  { %s986_s20 = smov 0  }
   0x2 LB: > { %s28_s21 = sadd.s32 1, %s946_s19  ;;  %p846_p0 = scmp.ge.s32.totalorder %s950_s20, 1  ;;  %s950_s20 = sphi %s986_s20, %s16_s20   ;;  %s946_s19 = sphi %s984_s19, %s1455_s19   ;;  %s942_s18 = sphi %s982_s18, %s1454_s18  }
   0x3   : > { %p30_p1 = scmp.ge.s32.totalorder %s28_s21, 2  ;;  %p211_p2 = scmp.lt.s32.totalorder %s950_s20, 3 }
   0x5   : > { %s1457_s21 = smov (%p30_p1, %s28_s21), 0  ;;  %p212_p3 = pnand %p846_p0, %p211_p2 }
   0x6   : > { %s847_s26 = sshll.u32 (!%p212_p3), %s942_s18, 5  ;;  %p263_p5 = scmp.lt.s32.totalorder (!%p212_p3), %s942_s18, 1 }
   0x7   : > { %215 = sbr.rel (%p212_p3) target bundleno = 293 (0x125), region = 36  ;;  %p248_p4 = scmp.lt.s32.totalorder (!%p212_p3), %s847_s26, 63 }
   0xc   : > { %v419_v0 = vld [vmem:[%s1451_s3 + $0x78] sm:$0xff]  ;;  %v418_v1 = vld [vmem:[%s1451_s3 + $0x70] sm:$0xff]  ;;  %v417_v2 = vld [vmem:[%s1451_s3 + $0x68] sm:$0xff]  ;;  %s1459_s26 = smov (!%p248_p4, %s847_s26), 63  ;;  %vm533_vm0 = vcmask 261120   ;;  %s1461_s18 = smov (!%p263_p5, %s942_s18), 1 }
   0xd   : > { %420 = vmatpush.msra.mxu0 %v419_v0  ;;  %854 = vmatpush.msra.mxu1 %v419_v0  ;;  %v416_v3 = vld [vmem:[%s1451_s3 + $0x60] sm:$0xff]  ;;  %v415_v4 = vld [vmem:[%s1451_s3 + $0x58] sm:$0xff]  ;;  %v414_v5 = vld [vmem:[%s1451_s3 + $0x50] sm:$0xff]  ;;  %s848_s12 = sshll.u32 %s1459_s26, 3  ;;  %s851_s26 = sshll.u32 %s1461_s18, 1  ;;  %vm736_vm1 = vcmask 1040384  }
   0xe   : > { %855 = vmatpush.msra.mxu2 %v419_v0  ;;  %856 = vmatpush.msra.mxu3 %v419_v0  ;;  %v413_v6 = vld [vmem:[%s1451_s3 + $0x48] sm:$0xff]  ;;  %v412_v7 = vld [vmem:[%s1451_s3 + $0x40] sm:$0xff]  ;;  %v411_v8 = vld [vmem:[%s1451_s3 + $0x38] sm:$0xff]  ;;  %s1038_s23 = scalar_lea.vmem %s1448_s0, %s848_s12  ;;  %s1172_s25 = scalar_lea.vmem %s1452_s4, %s848_s12  ;;  %vm738_vm2 = vcmask 254976  }
   0xf   : > { %421 = vmatpush.msra.mxu0 %v418_v1  ;;  %857 = vmatpush.msra.mxu1 %v418_v1  ;;  %v410_v9 = vld [vmem:[%s1451_s3 + $0x30] sm:$0xff]  ;;  %v1046_v10 = vld [vmem:[%s1449_s1] ss:$0 sm:$0xff]  ;;  %v409_v13 = vld [vmem:[%s1451_s3 + $0x28] sm:$0xff]  ;;  %s266_s28 = scalar_lea.vmem %s1453_s5, %s851_s26 }
  0x10   : > { %858 = vmatpush.msra.mxu2 %v418_v1  ;;  %859 = vmatpush.msra.mxu3 %v418_v1  ;;  %v268_v11 = vld [vmem:[%s1038_s23] sm:$0xff]  ;;  %v407_v19 = vld [vmem:[%s1451_s3 + $0x18] sm:$0xff]  ;;  %v406_v21 = vld [vmem:[%s1451_s3 + $0x10] sm:$0xff] }
  0x11   : > { %422 = vmatpush.msra.mxu0 %v417_v2  ;;  %860 = vmatpush.msra.mxu1 %v417_v2  ;;  %v276_v12 = vld [vmem:[%s1038_s23 + $0x40] sm:$0xff]  ;;  %v304_v16 = vmul.f32 %v1046_v10, %v268_v11  ;;  %v269_v24 = vld [vmem:[%s1038_s23 + $0x8] sm:$0xff]  ;;  %v270_v37 = vld [vmem:[%s1038_s23 + $0x10] sm:$0xff] }
  0x12   : > { %861 = vmatpush.msra.mxu2 %v417_v2  ;;  %862 = vmatpush.msra.mxu3 %v417_v2  ;;  %v284_v14 = vld [vmem:[%s1038_s23 + $0x80] sm:$0xff]  ;;  %v312_v18 = vmul.f32 %v1046_v10, %v276_v12  ;;  %v277_v25 = vld [vmem:[%s1038_s23 + $0x48] sm:$0xff]  ;;  %v305_v31 = vmul.f32 %v1046_v10, %v269_v24  ;;  %v278_v39 = vld [vmem:[%s1038_s23 + $0x50] sm:$0xff]  ;;  %v306_v41 = vmul.f32 %v1046_v10, %v270_v37 }
  0x13   : > { %423 = vmatpush.msra.mxu0 %v416_v3  ;;  %863 = vmatpush.msra.mxu1 %v416_v3  ;;  %v408_v15 = vld [vmem:[%s1451_s3 + $0x20] sm:$0xff]  ;;  %v320_v20 = vmul.f32 %v1046_v10, %v284_v14  ;;  %v405_v26 = vld [vmem:[%s1451_s3 + $0x8] sm:$0xff]  ;;  %v313_v33 = vmul.f32 %v1046_v10, %v277_v25  ;;  %v286_v42 = vld [vmem:[%s1038_s23 + $0x90] sm:$0xff]  ;;  %v314_v46 = vmul.f32 %v1046_v10, %v278_v39 }
  0x14   : > { %864 = vmatpush.msra.mxu2 %v416_v3  ;;  %865 = vmatpush.msra.mxu3 %v416_v3  ;;  %v1061_v17 = vld [vmem:[%s1450_s2] ss:$0 sm:$0xff]  ;;  %v285_v28 = vld [vmem:[%s1038_s23 + $0x88] sm:$0xff]  ;;  %v322_v49 = vmul.f32 %v1046_v10, %v286_v42  ;;  %v271_v52 = vld [vmem:[%s1038_s23 + $0x18] sm:$0xff] }
  0x15   : > { %424 = vmatpush.msra.mxu0 %v415_v4  ;;  %866 = vmatpush.msra.mxu1 %v415_v4  ;;  %v340_v22 = vadd.f32 %v1061_v17, %v304_v16  ;;  %v348_v23 = vadd.f32 %v1061_v17, %v312_v18  ;;  %v356_v27 = vadd.f32 %v1061_v17, %v320_v20  ;;  %v404_v29 = vld [vmem:[%s1451_s3] sm:$0xff]  ;;  %v279_v55 = vld [vmem:[%s1038_s23 + $0x58] sm:$0xff]  ;;  %v293_v59 = vld [vmem:[%s1038_s23 + $0xc8] sm:$0xff] }
  0x16   : > { %867 = vmatpush.msra.mxu2 %v415_v4  ;;  %868 = vmatpush.msra.mxu3 %v415_v4  ;;  %v321_v35 = vmul.f32 %v1046_v10, %v285_v28  ;;  %v341_v36 = vadd.f32 %v1061_v17, %v305_v31  ;;  %v349_v38 = vadd.f32 %v1061_v17, %v313_v33  ;;  %v292_v43 = vld [vmem:[%s1038_s23 + $0xc0] sm:$0xff]  ;;  %v287_v58 = vld [vmem:[%s1038_s23 + $0x98] sm:$0xff]  ;;  %v294_v12 = vld [vmem:[%s1038_s23 + $0xd0] sm:$0xff] }
  0x17   : > { %425 = vmatpush.msra.mxu0 %v414_v5  ;;  %869 = vmatpush.msra.mxu1 %v414_v5  ;;  %v372_v30 = vmax.f32 %v340_v22, 0.0  ;;  %v380_v32 = vmax.f32 %v348_v23, 0.0  ;;  %v388_v34 = vmax.f32 %v356_v27, 0.0  ;;  %v328_v47 = vmul.f32 %v1046_v10, %v292_v43  ;;  %v288_v11 = vld [vmem:[%s1038_s23 + $0xa0] sm:$0xff]  ;;  %v295_v24 = vld [vmem:[%s1038_s23 + $0xd8] sm:$0xff]  ;;  %v273_v25 = vld [vmem:[%s1038_s23 + $0x28] sm:$0xff] }
  0x18   : > { %870 = vmatpush.msra.mxu2 %v414_v5  ;;  %871 = vmatpush.msra.mxu3 %v414_v5  ;;  %v357_v40 = vadd.f32 %v1061_v17, %v321_v35  ;;  %v373_v44 = vmax.f32 %v341_v36, 0.0  ;;  %v381_v45 = vmax.f32 %v349_v38, 0.0  ;;  %v342_v51 = vadd.f32 %v1061_v17, %v306_v41  ;;  %v296_v31 = vld [vmem:[%s1038_s23 + $0xe0] sm:$0xff]  ;;  %v299_v36 = vld [vmem:[%s1038_s23 + $0xf8] sm:$0xff] }
  0x19   : > { %426 = vmatpush.msra.mxu0 %v413_v6  ;;  %872 = vmatpush.msra.mxu1 %v413_v6  ;;  %v364_v50 = vadd.f32 %v1061_v17, %v328_v47  ;;  %v350_v53 = vadd.f32 %v1061_v17, %v314_v46  ;;  %v358_v56 = vadd.f32 %v1061_v17, %v322_v49  ;;  %v290_v49 = vld [vmem:[%s1038_s23 + $0xb0] sm:$0xff] }
  0x1a   : > { %873 = vmatpush.msra.mxu2 %v413_v6  ;;  %874 = vmatpush.msra.mxu3 %v413_v6  ;;  %v389_v48 = vmax.f32 %v357_v40, 0.0  ;;  %v307_v57 = vmul.f32 %v1046_v10, %v271_v52  ;;  %v374_v60 = vmax.f32 %v342_v51, 0.0  ;;  %v315_v62 = vmul.f32 %v1046_v10, %v279_v55  ;;  %v272_v6 = vld [vmem:[%s1038_s23 + $0x20] sm:$0xff] }
  0x1b   : > { %427 = vmatpush.msra.mxu0 %v412_v7  ;;  %875 = vmatpush.msra.mxu1 %v412_v7  ;;  %v396_v54 = vmax.f32 %v364_v50, 0.0  ;;  %v382_v61 = vmax.f32 %v350_v53, 0.0  ;;  %v329_v63 = vmul.f32 %v1046_v10, %v293_v59  ;;  %v390_v0 = vmax.f32 %v358_v56, 0.0  ;;  %v297_v50 = vld [vmem:[%s1038_s23 + $0xe8] sm:$0xff] }
  0x1c   : > { %876 = vmatpush.msra.mxu2 %v412_v7  ;;  %877 = vmatpush.msra.mxu3 %v412_v7  ;;  %v323_v1 = vmul.f32 %v1046_v10, %v287_v58  ;;  %v343_v3 = vadd.f32 %v1061_v17, %v307_v57  ;;  %v351_v4 = vadd.f32 %v1061_v17, %v315_v62  ;;  %v280_v7 = vld [vmem:[%s1038_s23 + $0x60] sm:$0xff]  ;;  %v283_v62 = vld [vmem:[%s1038_s23 + $0x78] sm:$0xff] }
  0x1d   : > { %428 = vmatpush.msra.mxu0 %v411_v8  ;;  %878 = vmatpush.msra.mxu1 %v411_v8  ;;  %v365_v2 = vadd.f32 %v1061_v17, %v329_v63  ;;  %v330_v16 = vmul.f32 %v1046_v10, %v294_v12  ;;  %v331_v27 = vmul.f32 %v1046_v10, %v295_v24 }
  0x1e   : > { %879 = vmatpush.msra.mxu2 %v411_v8  ;;  %880 = vmatpush.msra.mxu3 %v411_v8  ;;  %v359_v8 = vadd.f32 %v1061_v17, %v323_v1  ;;  %v383_v14 = vmax.f32 %v351_v4, 0.0  ;;  %v309_v33 = vmul.f32 %v1046_v10, %v273_v25  ;;  %v332_v40 = vmul.f32 %v1046_v10, %v296_v31  ;;  %v291_v1 = vld [vmem:[%s1038_s23 + $0xb8] sm:$0xff] }
  0x1f   : > { %429 = vmatpush.msra.mxu0 %v410_v9  ;;  %881 = vmatpush.msra.mxu1 %v410_v9  ;;  %v397_v5 = vmax.f32 %v365_v2, 0.0  ;;  %v366_v20 = vadd.f32 %v1061_v17, %v330_v16  ;;  %v335_v41 = vmul.f32 %v1046_v10, %v299_v36  ;;  %v326_v56 = vmul.f32 %v1046_v10, %v290_v49  ;;  %v298_v2 = vld [vmem:[%s1038_s23 + $0xf0] sm:$0xff] }
  0x20   : > { %882 = vmatpush.msra.mxu2 %v410_v9  ;;  %883 = vmatpush.msra.mxu3 %v410_v9  ;;  %v375_v9 = vmax.f32 %v343_v3, 0.0  ;;  %v391_v18 = vmax.f32 %v359_v8, 0.0  ;;  %v345_v42 = vadd.f32 %v1061_v17, %v309_v33  ;;  %v333_v58 = vmul.f32 %v1046_v10, %v297_v50 }
  0x21   : > { %430 = vmatpush.msra.mxu0 %v409_v13  ;;  %884 = vmatpush.msra.mxu1 %v409_v13  ;;  %v398_v23 = vmax.f32 %v366_v20, 0.0  ;;  %v371_v46 = vadd.f32 %v1061_v17, %v335_v41  ;;  %v362_v63 = vadd.f32 %v1061_v17, %v326_v56  ;;  %v327_v8 = vmul.f32 %v1046_v10, %v291_v1 }
  0x22   : > { %885 = vmatpush.msra.mxu2 %v409_v13  ;;  %886 = vmatpush.msra.mxu3 %v409_v13  ;;  %v308_v13 = vmul.f32 %v1046_v10, %v272_v6  ;;  %v377_v51 = vmax.f32 %v345_v42, 0.0  ;;  %v319_v6 = vmul.f32 %v1046_v10, %v283_v62 }
  0x23   : > { %431 = vmatpush.msra.mxu0 %v408_v15  ;;  %887 = vmatpush.msra.mxu1 %v408_v15 }
  0x24   : > { %888 = vmatpush.msra.mxu2 %v408_v15  ;;  %889 = vmatpush.msra.mxu3 %v408_v15  ;;  %v316_v15 = vmul.f32 %v1046_v10, %v280_v7  ;;  %v394_v7 = vmax.f32 %v362_v63, 0.0 }
  0x25   : > { %432 = vmatpush.msra.mxu0 %v407_v19  ;;  %890 = vmatpush.msra.mxu1 %v407_v19 }
  0x26   : > { %891 = vmatpush.msra.mxu2 %v407_v19  ;;  %892 = vmatpush.msra.mxu3 %v407_v19  ;;  %v324_v19 = vmul.f32 %v1046_v10, %v288_v11  ;;  %v352_v22 = vadd.f32 %v1061_v17, %v316_v15  ;;  %v334_v11 = vmul.f32 %v1046_v10, %v298_v2 }
  0x27   : > { %433 = vmatpush.msra.mxu0 %v406_v21  ;;  %893 = vmatpush.msra.mxu1 %v406_v21 }
  0x28   : > { %894 = vmatpush.msra.mxu2 %v406_v21  ;;  %895 = vmatpush.msra.mxu3 %v406_v21  ;;  %v344_v21 = vadd.f32 %v1061_v17, %v308_v13  ;;  %v360_v28 = vadd.f32 %v1061_v17, %v324_v19  ;;  %v355_v13 = vadd.f32 %v1061_v17, %v319_v6 }
  0x29   : > { %434 = vmatpush.msra.mxu0 %v405_v26  ;;  %896 = vmatpush.msra.mxu1 %v405_v26  ;;  %v370_v15 = vadd.f32 %v1061_v17, %v334_v11 }
  0x2a   : > { %897 = vmatpush.msra.mxu2 %v405_v26  ;;  %898 = vmatpush.msra.mxu3 %v405_v26  ;;  %v281_v26 = vld [vmem:[%s1038_s23 + $0x68] sm:$0xff]  ;;  %v392_v37 = vmax.f32 %v360_v28, 0.0 }
  0x2b   : > { %435 = vmatpush.msra.mxu0 %v404_v29  ;;  %899 = vmatpush.msra.mxu1 %v404_v29  ;;  %v317_v35 = vmul.f32 %v1046_v10, %v281_v26  ;;  %v402_v20 = vmax.f32 %v370_v15, 0.0 }
  0x2c   : > { %436 = vmatmul.f32.vlgmr.msra.gmra.mxu0 %v372_v30  ;;  %460 = vmatmul.f32.vlgmr.msra.gmra.mxu1 %v380_v32  ;;  %v367_v30 = vadd.f32 %v1061_v17, %v331_v27  ;;  %v376_v32 = vmax.f32 %v344_v21, 0.0 }
  0x2d   : > { %900 = vmatpush.msra.mxu2 %v404_v29  ;;  %901 = vmatpush.msra.mxu3 %v404_v29  ;;  %v289_v29 = vld [vmem:[%s1038_s23 + $0xa8] sm:$0xff]  ;;  %v353_v43 = vadd.f32 %v1061_v17, %v317_v35 }
  0x2e   : > { %484 = vmatmul.f32.vlgmr.msra.gmra.mxu2 %v388_v34  ;;  %508 = vmatmul.f32.vlgmr.msra.gmra.mxu3 %v396_v54  ;;  %v384_v34 = vmax.f32 %v352_v22, 0.0  ;;  %v325_v38 = vmul.f32 %v1046_v10, %v289_v29  ;;  %v399_v39 = vmax.f32 %v367_v30, 0.0 }
  0x2f   : > { %v385_v53 = vmax.f32 %v353_v43, 0.0 }
  0x30   : > { %v361_v47 = vadd.f32 %v1061_v17, %v325_v38 }
  0x32   : > { %v393_v55 = vmax.f32 %v361_v47, 0.0 }
  0x34   : > { %439 = vmatmul.f32.gmra.mxu0 %v373_v44  ;;  %463 = vmatmul.f32.gmra.mxu1 %v381_v45  ;;  %v274_v44 = vld [vmem:[%s1038_s23 + $0x30] sm:$0xff] }
  0x35   : > { %v282_v45 = vld [vmem:[%s1038_s23 + $0x70] sm:$0xff]  ;;  %v310_v52 = vmul.f32 %v1046_v10, %v274_v44 }
  0x36   : > { %487 = vmatmul.f32.gmra.mxu2 %v389_v48  ;;  %511 = vmatmul.f32.gmra.mxu3 %v397_v5  ;;  %v368_v48 = vadd.f32 %v1061_v17, %v332_v40  ;;  %v318_v54 = vmul.f32 %v1046_v10, %v282_v45 }
  0x37   : > { %v346_v59 = vadd.f32 %v1061_v17, %v310_v52 }
  0x38   : > { %v400_v57 = vmax.f32 %v368_v48, 0.0 }
  0x39   : > { %v378_v3 = vmax.f32 %v346_v59, 0.0 }
  0x3c   : > { %442 = vmatmul.f32.gmra.mxu0 %v374_v60  ;;  %466 = vmatmul.f32.gmra.mxu1 %v382_v61  ;;  %v354_v60 = vadd.f32 %v1061_v17, %v318_v54  ;;  %v275_v61 = vld [vmem:[%s1038_s23 + $0x38] sm:$0xff] }
  0x3d   : > { %v311_v4 = vmul.f32 %v1046_v10, %v275_v61  ;;  %v403_v10 = vmax.f32 %v371_v46, 0.0 }
  0x3e   : > { %490 = vmatmul.f32.gmra.mxu2 %v390_v0  ;;  %514 = vmatmul.f32.gmra.mxu3 %v398_v23  ;;  %v369_v0 = vadd.f32 %v1061_v17, %v333_v58  ;;  %v386_v5 = vmax.f32 %v354_v60, 0.0 }
  0x3f   : > { %v347_v12 = vadd.f32 %v1061_v17, %v311_v4 }
  0x41   : > { %v379_v16 = vmax.f32 %v347_v12, 0.0 }
  0x44   : > { %445 = vmatmul.f32.gmra.mxu0 %v375_v9  ;;  %469 = vmatmul.f32.gmra.mxu1 %v383_v14  ;;  %v401_v9 = vmax.f32 %v369_v0, 0.0  ;;  %v363_v14 = vadd.f32 %v1061_v17, %v327_v8 }
  0x46   : > { %493 = vmatmul.f32.gmra.mxu2 %v391_v18  ;;  %517 = vmatmul.f32.gmra.mxu3 %v399_v39  ;;  %v387_v18 = vmax.f32 %v355_v13, 0.0  ;;  %v395_v19 = vmax.f32 %v363_v14, 0.0 }
  0x4c   : > { %448 = vmatmul.f32.gmra.mxu0 %v376_v32  ;;  %472 = vmatmul.f32.gmra.mxu1 %v384_v34 }
  0x4e   : > { %496 = vmatmul.f32.gmra.mxu2 %v392_v37  ;;  %520 = vmatmul.f32.gmra.mxu3 %v400_v57 }
  0x54   : > { %451 = vmatmul.f32.gmra.mxu0 %v377_v51  ;;  %475 = vmatmul.f32.gmra.mxu1 %v385_v53 }
  0x56   : > { %499 = vmatmul.f32.gmra.mxu2 %v393_v55  ;;  %523 = vmatmul.f32.gmra.mxu3 %v401_v9 }
  0x5c   : > { %454 = vmatmul.f32.gmra.mxu0 %v378_v3  ;;  %478 = vmatmul.f32.gmra.mxu1 %v386_v5 }
  0x5e   : > { %502 = vmatmul.f32.gmra.mxu2 %v394_v7  ;;  %526 = vmatmul.f32.gmra.mxu3 %v402_v20 }
  0x64   : > { %457 = vmatmul.f32.gmra.mxu0 %v379_v16  ;;  %481 = vmatmul.f32.gmra.mxu1 %v387_v18 }
  0x66   : > { %505 = vmatmul.f32.gmra.mxu2 %v395_v19  ;;  %529 = vmatmul.f32.gmra.mxu3 %v403_v10 }
  0xa9   : > { %v437_v17 = vpop.f32.mrf.mxu0  ;;  %v1174_v21 = vpop.f32.mrf.mxu1 }
  0xaa   : > { %534 = vst.msk [vmem:[%s1172_s25] sm:$0xff] %vm533_vm0, %v437_v17  ;;  %v635_v42 = vmul.f32 %v437_v17, %v437_v17  ;;  %v566_v45 = vsel %vm533_vm0, %v437_v17, 0.0  ;;  %v643_v16 = vmul.f32 %v1174_v21, %v1174_v21 }
  0xab   : > { %542 = vst.msk [vmem:[%s1172_s25 + $0x40] sm:$0xff] %vm533_vm0, %v1174_v21 }
  0xac   : > { %v667_v50 = vsel %vm533_vm0, %v635_v42, 0.0  ;;  %v682_v42 = vsel %vm533_vm0, %v643_v16, 0.0 }
  0xb1   : > { %v440_v22 = vpop.f32.mrf.mxu0  ;;  %v1181_v23 = vpop.f32.mrf.mxu1 }
  0xb2   : > { %535 = vst.msk [vmem:[%s1172_s25 + $0x8] sm:$0xff] %vm533_vm0, %v440_v22  ;;  %v1185_v24 = vpop.f32.mrf.mxu2  ;;  %v1199_v28 = vpop.f32.mrf.mxu3  ;;  %v636_v39 = vmul.f32 %v440_v22, %v440_v22  ;;  %v567_v43 = vsel %vm533_vm0, %v440_v22, 0.0 }
  0xb3   : > { %543 = vst.msk [vmem:[%s1172_s25 + $0x48] sm:$0xff] %vm533_vm0, %v1181_v23  ;;  %v568_v49 = vadd.f32 %v567_v43, %v566_v45  ;;  %v583_v43 = vsel %vm533_vm0, %v1181_v23, 0.0 }
  0xb4   : > { %550 = vst.msk [vmem:[%s1172_s25 + $0x80] sm:$0xff] %vm533_vm0, %v1185_v24  ;;  %v668_v46 = vsel %vm533_vm0, %v636_v39, 0.0 }
  0xb5   : > { %558 = vst.msk [vmem:[%s1172_s25 + $0xc0] sm:$0xff] %vm533_vm0, %v1199_v28  ;;  %v669_v54 = vadd.f32 %v668_v46, %v667_v50 }
  0xb9   : > { %v443_v25 = vpop.f32.mrf.mxu0  ;;  %v1193_v26 = vpop.f32.mrf.mxu1 }
  0xba   : > { %536 = vst.msk [vmem:[%s1172_s25 + $0x10] sm:$0xff] %vm533_vm0, %v443_v25  ;;  %v1197_v27 = vpop.f32.mrf.mxu2  ;;  %v1216_v32 = vpop.f32.mrf.mxu3  ;;  %v637_v44 = vmul.f32 %v443_v25, %v443_v25  ;;  %v569_v47 = vsel %vm533_vm0, %v443_v25, 0.0  ;;  %v581_v25 = vsel %vm533_vm0, %v1174_v21, 0.0  ;;  %v645_v21 = vmul.f32 %v1193_v26, %v1193_v26 }
  0xbb   : > { %544 = vst.msk [vmem:[%s1172_s25 + $0x50] sm:$0xff] %vm533_vm0, %v1193_v26  ;;  %v570_v55 = vadd.f32 %v569_v47, %v568_v49  ;;  %v585_v47 = vsel %vm533_vm0, %v1193_v26, 0.0 }
  0xbc   : > { %551 = vst.msk [vmem:[%s1172_s25 + $0x88] sm:$0xff] %vm533_vm0, %v1197_v27  ;;  %v670_v51 = vsel %vm533_vm0, %v637_v44, 0.0 }
  0xbd   : > { %559 = vst.msk [vmem:[%s1172_s25 + $0xc8] sm:$0xff] %vm533_vm0, %v1216_v32  ;;  %v671_v63 = vadd.f32 %v670_v51, %v669_v54  ;;  %v686_v51 = vsel %vm533_vm0, %v645_v21, 0.0 }
  0xc1   : > { %v446_v29 = vpop.f32.mrf.mxu0  ;;  %v1210_v30 = vpop.f32.mrf.mxu1 }
  0xc2   : > { %537 = vst.msk [vmem:[%s1172_s25 + $0x18] sm:$0xff] %vm533_vm0, %v446_v29  ;;  %v1214_v31 = vpop.f32.mrf.mxu2  ;;  %v1233_v36 = vpop.f32.mrf.mxu3  ;;  %v638_v48 = vmul.f32 %v446_v29, %v446_v29  ;;  %v571_v52 = vsel %vm533_vm0, %v446_v29, 0.0  ;;  %v644_v29 = vmul.f32 %v1181_v23, %v1181_v23  ;;  %v587_v23 = vsel %vm533_vm0, %v1210_v30, 0.0 }
  0xc3   : > { %545 = vst.msk [vmem:[%s1172_s25 + $0x58] sm:$0xff] %vm533_vm0, %v1210_v30  ;;  %v572_v0 = vadd.f32 %v571_v52, %v570_v55 }
  0xc4   : > { %552 = vst.msk [vmem:[%s1172_s25 + $0x90] sm:$0xff] %vm533_vm0, %v1214_v31  ;;  %v672_v58 = vsel %vm533_vm0, %v638_v48, 0.0  ;;  %v684_v46 = vsel %vm533_vm0, %v644_v29, 0.0  ;;  %v646_v48 = vmul.f32 %v1210_v30, %v1210_v30 }
  0xc5   : > { %560 = vst.msk [vmem:[%s1172_s25 + $0xd0] sm:$0xff] %vm533_vm0, %v1233_v36  ;;  %v673_v4 = vadd.f32 %v672_v58, %v671_v63 }
  0xc6   : > { %v688_v26 = vsel %vm533_vm0, %v646_v48, 0.0 }
  0xc9   : > { %v449_v33 = vpop.f32.mrf.mxu0  ;;  %v1227_v34 = vpop.f32.mrf.mxu1 }
  0xca   : > { %538 = vst.msk [vmem:[%s1172_s25 + $0x20] sm:$0xff] %vm533_vm0, %v449_v33  ;;  %v1231_v35 = vpop.f32.mrf.mxu2  ;;  %v1250_v41 = vpop.f32.mrf.mxu3  ;;  %v639_v53 = vmul.f32 %v449_v33, %v449_v33  ;;  %v573_v59 = vsel %vm533_vm0, %v449_v33, 0.0  ;;  %v647_v52 = vmul.f32 %v1227_v34, %v1227_v34  ;;  %v589_v58 = vsel %vm533_vm0, %v1227_v34, 0.0 }
  0xcb   : > { %546 = vst.msk [vmem:[%s1172_s25 + $0x60] sm:$0xff] %vm533_vm0, %v1227_v34  ;;  %v574_v5 = vadd.f32 %v573_v59, %v572_v0 }
  0xcc   : > { %553 = vst.msk [vmem:[%s1172_s25 + $0x98] sm:$0xff] %vm533_vm0, %v1231_v35  ;;  %v674_v1 = vsel %vm533_vm0, %v639_v53, 0.0  ;;  %v690_v63 = vsel %vm533_vm0, %v647_v52, 0.0 }
  0xcd   : > { %561 = vst.msk [vmem:[%s1172_s25 + $0xd8] sm:$0xff] %vm533_vm0, %v1250_v41  ;;  %v675_v8 = vadd.f32 %v674_v1, %v673_v4 }
  0xd1   : > { %v452_v37 = vpop.f32.mrf.mxu0  ;;  %v1244_v38 = vpop.f32.mrf.mxu1 }
  0xd2   : > { %539 = vst.msk [vmem:[%s1172_s25 + $0x28] sm:$0xff] %vm533_vm0, %v452_v37  ;;  %v1248_v40 = vpop.f32.mrf.mxu2  ;;  %v640_v60 = vmul.f32 %v452_v37, %v452_v37  ;;  %v1276_v62 = vpop.f32.mrf.mxu3  ;;  %v575_v2 = vsel %vm533_vm0, %v452_v37, 0.0  ;;  %v648_v59 = vmul.f32 %v1244_v38, %v1244_v38  ;;  %v591_v0 = vsel %vm533_vm0, %v1244_v38, 0.0 }
  0xd3   : > { %547 = vst.msk [vmem:[%s1172_s25 + $0x68] sm:$0xff] %vm533_vm0, %v1244_v38  ;;  %v576_v9 = vadd.f32 %v575_v2, %v574_v5  ;;  %v655_v21 = vmul.f32 %v1248_v40, %v1248_v40 }
  0xd4   : > { %554 = vst.msk [vmem:[%s1172_s25 + $0xa0] sm:$0xff] %vm533_vm0, %v1248_v40  ;;  %v676_v6 = vsel %vm533_vm0, %v640_v60, 0.0  ;;  %v692_v4 = vsel %vm533_vm0, %v648_v59, 0.0 }
  0xd5   : > { %562 = vst.msk [vmem:[%s1172_s25 + $0xe0] sm:$0xff] %vm533_vm0, %v1276_v62  ;;  %v677_v12 = vadd.f32 %v676_v6, %v675_v8 }
  0xd9   : > { %v455_v56 = vpop.f32.mrf.mxu0  ;;  %v1268_v57 = vpop.f32.mrf.mxu1 }
  0xda   : > { %540 = vst.msk [vmem:[%s1172_s25 + $0x30] sm:$0xff] %vm533_vm0, %v455_v56  ;;  %v1274_v61 = vpop.f32.mrf.mxu2  ;;  %v641_v3 = vmul.f32 %v455_v56, %v455_v56  ;;  %v577_v7 = vsel %vm533_vm0, %v455_v56, 0.0  ;;  %v1299_v10 = vpop.f32.mrf.mxu3  ;;  %v649_v1 = vmul.f32 %v1268_v57, %v1268_v57  ;;  %v593_v5 = vsel %vm533_vm0, %v1268_v57, 0.0 }
  0xdb   : > { %548 = vst.msk [vmem:[%s1172_s25 + $0x70] sm:$0xff] %vm533_vm0, %v1268_v57  ;;  %v578_v13 = vadd.f32 %v577_v7, %v576_v9  ;;  %v651_v9 = vmul.f32 %v1185_v24, %v1185_v24  ;;  %v597_v57 = vsel %vm533_vm0, %v1185_v24, 0.0  ;;  %v601_v24 = vsel %vm533_vm0, %v1214_v31, 0.0 }
  0xdc   : > { %555 = vst.msk [vmem:[%s1172_s25 + $0xa8] sm:$0xff] %vm533_vm0, %v1274_v61  ;;  %v678_v11 = vsel %vm533_vm0, %v641_v3, 0.0  ;;  %v694_v38 = vsel %vm533_vm0, %v649_v1, 0.0  ;;  %v613_v1 = vsel %vm533_vm0, %v1199_v28, 0.0 }
  0xdd   : > { %v679_v17 = vadd.f32 %v678_v11, %v677_v12  ;;  %563 = vst.msk [vmem:[%s1172_s25 + $0xe8] sm:$0xff] %vm533_vm0, %v1299_v10 }
  0xe1   : > { %v458_v14 = vpop.f32.mrf.mxu0  ;;  %v482_v15 = vpop.f32.mrf.mxu1 }
  0xe2   : > { %541 = vst.msk [vmem:[%s1172_s25 + $0x38] sm:$0xff] %vm533_vm0, %v458_v14  ;;  %v579_v18 = vsel %vm533_vm0, %v458_v14, 0.0  ;;  %v642_v19 = vmul.f32 %v458_v14, %v458_v14  ;;  %v1297_v20 = vpop.f32.mrf.mxu2  ;;  %v1329_v54 = vpop.f32.mrf.mxu3  ;;  %v650_v2 = vmul.f32 %v482_v15, %v482_v15  ;;  %v595_v6 = vsel %vm533_vm0, %v482_v15, 0.0 }
  0xe3   : > { %v580_v22 = vadd.f32 %v579_v18, %v578_v13  ;;  %549 = vst.msk [vmem:[%s1172_s25 + $0x78] sm:$0xff] %vm533_vm0, %v482_v15  ;;  %v652_v15 = vmul.f32 %v1197_v27, %v1197_v27 }
  0xe4   : > { %v680_v33 = vsel %vm533_vm0, %v642_v19, 0.0  ;;  %556 = vst.msk [vmem:[%s1172_s25 + $0xb0] sm:$0xff] %vm533_vm0, %v1297_v20  ;;  %v696_v11 = vsel %vm533_vm0, %v650_v2, 0.0  ;;  %v698_v19 = vsel %vm533_vm0, %v651_v9, 0.0  ;;  %v660_v2 = vmul.f32 %v1216_v32, %v1216_v32 }
  0xe5   : > { %v582_v37 = vadd.f32 %v581_v25, %v580_v22  ;;  %v681_v39 = vadd.f32 %v680_v33, %v679_v17  ;;  %564 = vst.msk [vmem:[%s1172_s25 + $0xf0] sm:$0xff] %vm533_vm0, %v1329_v54  ;;  %v599_v17 = vsel %vm533_vm0, %v1197_v27, 0.0  ;;  %v653_v22 = vmul.f32 %v1214_v31, %v1214_v31 }
  0xe6   : > { %v700_v33 = vsel %vm533_vm0, %v652_v15, 0.0  ;;  %v603_v27 = vsel %vm533_vm0, %v1231_v35, 0.0  ;;  %v605_v31 = vsel %vm533_vm0, %v1248_v40, 0.0  ;;  %v609_v40 = vsel %vm533_vm0, %v1297_v20, 0.0 }
  0xe7   : > { %v584_v44 = vadd.f32 %v583_v43, %v582_v37  ;;  %v683_v45 = vadd.f32 %v682_v42, %v681_v39  ;;  %v654_v37 = vmul.f32 %v1231_v35, %v1231_v35  ;;  %v702_v43 = vsel %vm533_vm0, %v653_v22, 0.0 }
  0xe8   : > { %v607_v35 = vsel %vm533_vm0, %v1274_v61, 0.0  ;;  %v665_v22 = vmul.f32 %v1329_v54, %v1329_v54 }
  0xe9   : > { %v586_v49 = vadd.f32 %v585_v47, %v584_v44  ;;  %v685_v50 = vadd.f32 %v684_v46, %v683_v45  ;;  %v704_v46 = vsel %vm533_vm0, %v654_v37, 0.0  ;;  %v656_v47 = vmul.f32 %v1274_v61, %v1274_v61 }
  0xea   : > { %v506_v53 = vpop.f32.mrf.mxu2  ;;  %v1354_v12 = vpop.f32.mrf.mxu3 }
  0xeb   : > { %v687_v55 = vadd.f32 %v686_v51, %v685_v50  ;;  %v588_v56 = vadd.f32 %v587_v23, %v586_v49  ;;  %557 = vst.msk [vmem:[%s1172_s25 + $0xb8] sm:$0xff] %vm533_vm0, %v506_v53  ;;  %v706_v50 = vsel %vm533_vm0, %v655_v21, 0.0  ;;  %v657_v51 = vmul.f32 %v1297_v20, %v1297_v20 }
  0xec   : > { %565 = vst.msk [vmem:[%s1172_s25 + $0xf8] sm:$0xff] %vm533_vm0, %v1354_v12  ;;  %v658_v23 = vmul.f32 %v506_v53, %v506_v53  ;;  %v627_v37 = vsel %vm533_vm0, %v1354_v12, 0.0 }
  0xed   : > { %v590_v30 = vadd.f32 %v589_v58, %v588_v56  ;;  %v689_v60 = vadd.f32 %v688_v26, %v687_v55  ;;  %v708_v56 = vsel %vm533_vm0, %v656_v47, 0.0  ;;  %v611_v26 = vsel %vm533_vm0, %v506_v53, 0.0 }
  0xee   : > { %v710_v61 = vsel %vm533_vm0, %v657_v51, 0.0 }
  0xef   : > { %v592_v3 = vadd.f32 %v591_v0, %v590_v30  ;;  %v691_v34 = vadd.f32 %v690_v63, %v689_v60  ;;  %v659_v30 = vmul.f32 %v1199_v28, %v1199_v28  ;;  %v712_v60 = vsel %vm533_vm0, %v658_v23, 0.0 }
  0xf0   : > { %v617_v28 = vsel %vm533_vm0, %v1233_v36, 0.0 }
  0xf1   : > { %v693_v7 = vadd.f32 %v692_v4, %v691_v34  ;;  %v594_v8 = vadd.f32 %v593_v5, %v592_v3  ;;  %v714_v53 = vsel %vm533_vm0, %v659_v30, 0.0  ;;  %v615_v34 = vsel %vm533_vm0, %v1216_v32, 0.0 }
  0xf2   : > { %v661_v4 = vmul.f32 %v1233_v36, %v1233_v36  ;;  %v619_v32 = vsel %vm533_vm0, %v1250_v41, 0.0  ;;  %v621_v36 = vsel %vm533_vm0, %v1276_v62, 0.0 }
  0xf3   : > { %v695_v13 = vadd.f32 %v694_v38, %v693_v7  ;;  %v596_v14 = vadd.f32 %v595_v6, %v594_v8  ;;  %v716_v7 = vsel %vm533_vm0, %v660_v2, 0.0  ;;  %v662_v8 = vmul.f32 %v1250_v41, %v1250_v41 }
  0xf4   : > { %v623_v41 = vsel %vm533_vm0, %v1299_v10, 0.0 }
  0xf5   : > { %v598_v16 = vadd.f32 %v597_v57, %v596_v14  ;;  %v697_v18 = vadd.f32 %v696_v11, %v695_v13  ;;  %v718_v11 = vsel %vm533_vm0, %v661_v4, 0.0  ;;  %v663_v13 = vmul.f32 %v1276_v62, %v1276_v62 }
  0xf6   : > { %v720_v15 = vsel %vm533_vm0, %v662_v8, 0.0 }
  0xf7   : > { %v600_v25 = vadd.f32 %v599_v17, %v598_v16  ;;  %v699_v29 = vadd.f32 %v698_v19, %v697_v18  ;;  %v664_v16 = vmul.f32 %v1299_v10, %v1299_v10  ;;  %v722_v17 = vsel %vm533_vm0, %v663_v13, 0.0 }
  0xf9   : > { %v602_v39 = vadd.f32 %v601_v24, %v600_v25  ;;  %v701_v42 = vadd.f32 %v700_v33, %v699_v29  ;;  %v666_v25 = vmul.f32 %v1354_v12, %v1354_v12  ;;  %v724_v62 = vsel %vm533_vm0, %v664_v16, 0.0 }
  0xfa   : > { %v625_v24 = vsel %vm533_vm0, %v1329_v54, 0.0 }
  0xfb   : > { %v703_v44 = vadd.f32 %v702_v43, %v701_v42  ;;  %v604_v45 = vadd.f32 %v603_v27, %v602_v39  ;;  %v726_v42 = vsel %vm533_vm0, %v665_v22, 0.0  ;;  %v728_v43 = vsel %vm533_vm0, %v666_v25, 0.0 }
  0xfd   : > { %v606_v48 = vadd.f32 %v605_v31, %v604_v45  ;;  %v705_v49 = vadd.f32 %v704_v46, %v703_v44 }
  0xff   : > { %v608_v52 = vadd.f32 %v607_v35, %v606_v48  ;;  %v707_v55 = vadd.f32 %v706_v50, %v705_v49 }
 0x101   : > { %v709_v58 = vadd.f32 %v708_v56, %v707_v55  ;;  %v610_v59 = vadd.f32 %v609_v40, %v608_v52 }
 0x103   : > { %v711_v63 = vadd.f32 %v710_v61, %v709_v58  ;;  %v612_v0 = vadd.f32 %v611_v26, %v610_v59 }
 0x105   : > { %v614_v20 = vadd.f32 %v613_v1, %v612_v0  ;;  %v713_v3 = vadd.f32 %v712_v60, %v711_v63 }
 0x107   : > { %v616_v5 = vadd.f32 %v615_v34, %v614_v20  ;;  %v715_v6 = vadd.f32 %v714_v53, %v713_v3 }
 0x109   : > { %v618_v9 = vadd.f32 %v617_v28, %v616_v5  ;;  %v717_v38 = vadd.f32 %v716_v7, %v715_v6 }
 0x10b   : > { %v719_v14 = vadd.f32 %v718_v11, %v717_v38  ;;  %v620_v57 = vadd.f32 %v619_v32, %v618_v9 }
 0x10d   : > { %v622_v18 = vadd.f32 %v621_v36, %v620_v57  ;;  %v721_v19 = vadd.f32 %v720_v15, %v719_v14 }
 0x10f   : > { %v624_v29 = vadd.f32 %v623_v41, %v622_v18  ;;  %v723_v33 = vadd.f32 %v722_v17, %v721_v19 }
 0x111   : > { %v725_v39 = vadd.f32 %v724_v62, %v723_v33  ;;  %v626_v10 = vadd.f32 %v625_v24, %v624_v29 }
 0x113   : > { %v727_v27 = vadd.f32 %v726_v42, %v725_v39  ;;  %v628_v21 = vadd.f32 %v627_v37, %v626_v10 }
 0x115   : > { %v629_v44 = vrot.slane %v628_v21, 4  ;;  %v729_v45 = vadd.f32 %v728_v43, %v727_v27 }
 0x117   : > { %v630_v46 = vadd.f32 %v629_v44, %v628_v21  ;;  %v730_v31 = vrot.slane %v729_v45, 4 }
 0x119   : > { %v631_v47 = vrot.slane %v630_v46, 2  ;;  %v731_v48 = vadd.f32 %v730_v31, %v729_v45 }
 0x11b   : > { %v632_v54 = vadd.f32 %v631_v47, %v630_v46  ;;  %v732_v49 = vrot.slane %v731_v48, 2 }
 0x11d   : > { %v633_v50 = vrot.slane %v632_v54, 1  ;;  %v733_v12 = vadd.f32 %v732_v49, %v731_v48 }
 0x11f   : > { %v734_v35 = vrot.slane %v733_v12, 1  ;;  %v634_v51 = vadd.f32 %v633_v50, %v632_v54 }
 0x121   : > { %v735_v23 = vadd.f32 %v734_v35, %v733_v12 }
 0x123   : > { %v737_v52 = vsel %vm736_vm1, %v634_v51, %v735_v23 }
 0x124   : > { %739 = vst.msk [vmem:[%s266_s28] sm:$0x3] %vm738_vm2, %v737_v52 }
 0x125 PF: > { %s16_s20 = sadd.s32 1, %s950_s20   ;;  %s1454_s18 = smov %s946_s19 }
 0x126   : > { %p13_p6 = scmp.ge.s32.totalorder %s16_s20, 4   ;;  %s1455_s19 = smov %s1457_s21 }
 0x128   :  { %15 = sbr.rel (!%p13_p6) target bundleno = 2 (0x2), region = 78 }

// kernel: bottleneck_forward.5
= control target key start
LH: loop header
LB: loop body
LE: loop exit
PB: predicated region body
PF: predicated region fallthrough
CT: control target
= control target key end

     0   :  { %s2666_s24 = smov 0   ;;  %s4639_s0 = inlined_call_operand.vmem [shape: f32[512,128], index: 0, kind: input, shape index: {}]   ;;  %s4640_s1 = inlined_call_operand.vmem [shape: f32[1,128], index: 1, kind: input, shape index: {}]   ;;  %s4641_s2 = inlined_call_operand.vmem [shape: f32[1,128], index: 2, kind: input, shape index: {}]   ;;  %s4642_s3 = inlined_call_operand.vmem [shape: f32[256,1], index: 3, kind: input, shape index: {}]   ;;  %s4643_s4 = inlined_call_operand.vmem [shape: f32[256,1], index: 4, kind: input, shape index: {}]   ;;  %s4644_s5 = inlined_call_operand.vmem [shape: f32[384,384], index: 5, kind: input, shape index: {}]   ;;  %s4645_s6 = inlined_call_operand.vmem [shape: f32[512,128], index: 6, kind: output, shape index: {0}]   ;;  %s4646_s7 = inlined_call_operand.vmem [shape: f32[2,2,128], index: 7, kind: output, shape index: {1}]  }
   0x1 LB: > { %s2672_s25 = sadd.s32 4294967295, %s2623_s24   ;;  %p2547_p0 = scmp.ge.s32.totalorder %s2623_s24, 1  ;;  %s2623_s24 = sphi %s2666_s24, %s18_s24  }
   0x2   : > { %p241_p1 = scmp.lt.s32.totalorder %s2623_s24, 3 }
   0x4   : > { %p242_p2 = pnand %p2547_p0, %p241_p1 }
   0x6   : > { %245 = sbr.rel (%p242_p2) target bundleno = 876 (0x36c), region = 44 }
   0xb   : > { %v583_v0 = vld [vmem:[%s4642_s3 + $0xc8] sm:$0xff]  ;;  %v574_v1 = vld [vmem:[%s4642_s3 + $0x80] sm:$0xff]  ;;  %v2625_v3 = vmov 0   ;;  %v584_v7 = vld [vmem:[%s4642_s3 + $0xd0] sm:$0xff]  ;;  %s2548_s29 = sshll.u32 %s2672_s25, 5  ;;  %vm461_vm0 = vcmask 1040384  }
   0xc   : > { %v558_v2 = vld [vmem:[%s4642_s3] sm:$0xff]  ;;  %2614 = vset.pattern.permute.xlu2 %v2625_v3  ;;  %2613 = vset.pattern.permute.xlu1 %v2625_v3  ;;  %v575_v6 = vld [vmem:[%s4642_s3 + $0x88] sm:$0xff]  ;;  %v576_v9 = vld [vmem:[%s4642_s3 + $0x90] sm:$0xff]  ;;  %p278_p3 = scmp.lt.s32.totalorder %s2548_s29, 63  ;;  %vm782_vm1 = vcmask 1046528   ;;  %p289_p4 = scmp.lt.s32.totalorder %s2672_s25, 1 }
   0xd   : > { %2612 = vset.pattern.permute.xlu0 %v2625_v3  ;;  %717 = vperm.xlu2 %2614, %v583_v0   ;;  %v566_v4 = vld [vmem:[%s4642_s3 + $0x40] sm:$0xff]  ;;  %v559_v8 = vld [vmem:[%s4642_s3 + $0x8] sm:$0xff]  ;;  %v577_v10 = vld [vmem:[%s4642_s3 + $0x98] sm:$0xff] }
   0xe   : > { %672 = vperm.xlu0 %2612, %v574_v1   ;;  %592 = vperm.xlu1 %2613, %v558_v2   ;;  %v582_v5 = vld [vmem:[%s4642_s3 + $0xc0] sm:$0xff]  ;;  %v567_v11 = vld [vmem:[%s4642_s3 + $0x48] sm:$0xff]  ;;  %v560_v12 = vld [vmem:[%s4642_s3 + $0x10] sm:$0xff]  ;;  %s5108_s29 = smov (!%p278_p3, %s2548_s29), 63  ;;  %s5110_s25 = smov (!%p289_p4, %s2672_s25), 1 }
   0xf   : > { %v561_v13 = vld [vmem:[%s4642_s3 + $0x18] sm:$0xff]  ;;  %v568_v15 = vld [vmem:[%s4642_s3 + $0x50] sm:$0xff]  ;;  %v578_v17 = vld [vmem:[%s4642_s3 + $0xa0] sm:$0xff]  ;;  %s2549_s21 = sshll.u32 %s5108_s29, 3  ;;  %s2552_s29 = sshll.u32 %s5110_s25, 1 }
  0x10   : > { %v585_v14 = vld [vmem:[%s4642_s3 + $0xd8] sm:$0xff]  ;;  %v586_v18 = vld [vmem:[%s4642_s3 + $0xe0] sm:$0xff]  ;;  %v587_v19 = vld [vmem:[%s4642_s3 + $0xe8] sm:$0xff]  ;;  %s2814_s10 = scalar_lea.vmem %s4639_s0, %s2549_s21  ;;  %s4399_s15 = scalar_lea.vmem %s4645_s6, %s2549_s21 }
  0x11   : > { %v569_v16 = vld [vmem:[%s4642_s3 + $0x58] sm:$0xff]  ;;  %v562_v20 = vld [vmem:[%s4642_s3 + $0x20] sm:$0xff]  ;;  %v579_v21 = vld [vmem:[%s4642_s3 + $0xa8] sm:$0xff]  ;;  %s292_s17 = scalar_lea.vmem %s4646_s7, %s2552_s29 }
  0x12   : > { %v1148_v22 = vld [vmem:[%s4644_s5 + $0x168] sm:$0xff]  ;;  %v1145_v23 = vld [vmem:[%s4644_s5 + $0x150] sm:$0xff]  ;;  %v570_v25 = vld [vmem:[%s4642_s3 + $0x60] sm:$0xff] }
  0x13   : > { %1247 = vmatpush.msra.mxu0 %v1148_v22  ;;  %2556 = vmatpush.msra.mxu2 %v1148_v22  ;;  %v580_v24 = vld [vmem:[%s4642_s3 + $0xb0] sm:$0xff]  ;;  %v563_v26 = vld [vmem:[%s4642_s3 + $0x28] sm:$0xff]  ;;  %v1142_v27 = vld [vmem:[%s4644_s5 + $0x138] sm:$0xff] }
  0x14   : > { %2555 = vmatpush.msra.mxu1 %v1148_v22  ;;  %2557 = vmatpush.msra.mxu3 %v1148_v22  ;;  %v1139_v28 = vld [vmem:[%s4644_s5 + $0x120] sm:$0xff]  ;;  %v1136_v29 = vld [vmem:[%s4644_s5 + $0x108] sm:$0xff]  ;;  %v564_v30 = vld [vmem:[%s4642_s3 + $0x30] sm:$0xff] }
  0x15   : > { %632 = vperm.xlu2 %2614, %v566_v4   ;;  %1248 = vmatpush.msra.mxu0 %v1145_v23  ;;  %v1133_v31 = vld [vmem:[%s4644_s5 + $0xf0] sm:$0xff]  ;;  %v571_v33 = vld [vmem:[%s4642_s3 + $0x68] sm:$0xff]  ;;  %v1130_v34 = vld [vmem:[%s4644_s5 + $0xd8] sm:$0xff] }
  0x16   : > { %712 = vperm.xlu0 %2612, %v582_v5   ;;  %677 = vperm.xlu1 %2613, %v575_v6   ;;  %v588_v32 = vld [vmem:[%s4642_s3 + $0xf0] sm:$0xff]  ;;  %v1127_v35 = vld [vmem:[%s4644_s5 + $0xc0] sm:$0xff]  ;;  %v1124_v36 = vld [vmem:[%s4644_s5 + $0xa8] sm:$0xff] }
  0x17   : > { %2559 = vmatpush.msra.mxu2 %v1145_v23  ;;  %2558 = vmatpush.msra.mxu1 %v1145_v23  ;;  %v572_v37 = vld [vmem:[%s4642_s3 + $0x70] sm:$0xff]  ;;  %v581_v38 = vld [vmem:[%s4642_s3 + $0xb8] sm:$0xff]  ;;  %v1115_v42 = vld [vmem:[%s4644_s5 + $0x60] sm:$0xff] }
  0x18   : > { %2560 = vmatpush.msra.mxu3 %v1145_v23  ;;  %1249 = vmatpush.msra.mxu0 %v1142_v27  ;;  %v589_v39 = vld [vmem:[%s4642_s3 + $0xf8] sm:$0xff]  ;;  %v1121_v40 = vld [vmem:[%s4644_s5 + $0x90] sm:$0xff]  ;;  %v301_v45 = vld [vmem:[%s2814_s10 + $0x40] sm:$0xff] }
  0x19   : > { %2562 = vmatpush.msra.mxu2 %v1142_v27  ;;  %2561 = vmatpush.msra.mxu1 %v1142_v27  ;;  %v1118_v41 = vld [vmem:[%s4644_s5 + $0x78] sm:$0xff]  ;;  %v1112_v46 = vld [vmem:[%s4644_s5 + $0x48] sm:$0xff]  ;;  %v879_v48 = vld [vmem:[%s4643_s4] sm:$0xff] }
  0x1a   : > { %2563 = vmatpush.msra.mxu3 %v1142_v27  ;;  %1250 = vmatpush.msra.mxu0 %v1139_v28  ;;  %v573_v43 = vld [vmem:[%s4642_s3 + $0x78] sm:$0xff]  ;;  %v2830_v49 = vld [vmem:[%s4640_s1] ss:$0 sm:$0xff]  ;;  %v1109_v52 = vld [vmem:[%s4644_s5 + $0x30] sm:$0xff] }
  0x1b   : > { %2565 = vmatpush.msra.mxu2 %v1139_v28  ;;  %2564 = vmatpush.msra.mxu1 %v1139_v28  ;;  %v300_v44 = vld [vmem:[%s2814_s10 + $0x38] sm:$0xff]  ;;  %v337_v51 = vmul.f32 %v2830_v49, %v301_v45  ;;  %v2840_v53 = vld [vmem:[%s4641_s2] ss:$0 sm:$0xff]  ;;  %v880_v59 = vld [vmem:[%s4643_s4 + $0x8] sm:$0xff] }
  0x1c   : > { %2566 = vmatpush.msra.mxu3 %v1139_v28  ;;  %1251 = vmatpush.msra.mxu0 %v1136_v29  ;;  %v565_v47 = vld [vmem:[%s4642_s3 + $0x38] sm:$0xff]  ;;  %v336_v50 = vmul.f32 %v2830_v49, %v300_v44  ;;  %v1103_v57 = vld [vmem:[%s4644_s5] sm:$0xff]  ;;  %v881_v60 = vld [vmem:[%s4643_s4 + $0x10] sm:$0xff] }
  0x1d   : > { %722 = vperm.xlu2 %2614, %v584_v7   ;;  %2568 = vmatpush.msra.mxu2 %v1136_v29  ;;  %v1106_v54 = vld [vmem:[%s4644_s5 + $0x18] sm:$0xff]  ;;  %v373_v56 = vadd.f32 %v2840_v53, %v337_v51  ;;  %v885_v2 = vld [vmem:[%s4643_s4 + $0x30] sm:$0xff]  ;;  %v309_v4 = vld [vmem:[%s2814_s10 + $0x80] sm:$0xff] }
  0x1e   : > { %597 = vperm.xlu0 %2612, %v559_v8   ;;  %682 = vperm.xlu1 %2613, %v576_v9   ;;  %v372_v55 = vadd.f32 %v2840_v53, %v336_v50  ;;  %v882_v58 = vld [vmem:[%s4643_s4 + $0x18] sm:$0xff]  ;;  %v883_v5 = vld [vmem:[%s4643_s4 + $0x20] sm:$0xff]  ;;  %v884_v6 = vld [vmem:[%s4643_s4 + $0x28] sm:$0xff] }
  0x1f   : > { %2567 = vmatpush.msra.mxu1 %v1136_v29  ;;  %2569 = vmatpush.msra.mxu3 %v1136_v29  ;;  %v2861_v62 = vmax.f32 %v373_v56, 0.0  ;;  %v308_v3 = vld [vmem:[%s2814_s10 + $0x78] sm:$0xff]  ;;  %v293_v7 = vld [vmem:[%s2814_s10] sm:$0xff]  ;;  %v1244_v22 = vld [vmem:[%s4644_s5 + $0x468] sm:$0xff] }
  0x20   : > { %1252 = vmatpush.msra.mxu0 %v1133_v31  ;;  %2571 = vmatpush.msra.mxu2 %v1133_v31  ;;  %v2859_v61 = vmax.f32 %v372_v55, 0.0  ;;  %v344_v9 = vmul.f32 %v2830_v49, %v308_v3  ;;  %v1149_v23 = vld [vmem:[%s4644_s5 + $0x170] sm:$0xff]  ;;  %v1238_v44 = vld [vmem:[%s4644_s5 + $0x438] sm:$0xff]  ;;  %v1143_v45 = vld [vmem:[%s4644_s5 + $0x140] sm:$0xff] }
  0x21   : > { %2570 = vmatpush.msra.mxu1 %v1133_v31  ;;  %2572 = vmatpush.msra.mxu3 %v1133_v31  ;;  %v477_v1 = vrot.slane %v2861_v62, 7  ;;  %v1146_v31 = vld [vmem:[%s4644_s5 + $0x158] sm:$0xff]  ;;  %v311_v50 = vld [vmem:[%s2814_s10 + $0x90] sm:$0xff]  ;;  %v1196_v56 = vld [vmem:[%s4644_s5 + $0x2e8] sm:$0xff] }
  0x22   : > { %1253 = vmatpush.msra.mxu0 %v1130_v34  ;;  %2574 = vmatpush.msra.mxu2 %v1130_v34  ;;  %4745 = vst [vmem:[#allocation2_spill] sm:$0xff] %v2859_v61  ;;  %v4647_v0 = vrot.slane %v2859_v61, 7 }
  0x23   : > { %2573 = vmatpush.msra.mxu1 %v1130_v34  ;;  %2575 = vmatpush.msra.mxu3 %v1130_v34 }
  0x24   : > { %1254 = vmatpush.msra.mxu0 %v1127_v35  ;;  %2577 = vmatpush.msra.mxu2 %v1127_v35  ;;  %v478_v8 = vsel %vm461_vm0, %v4647_v0, %v477_v1  ;;  %v1166_v0 = vld [vmem:[%s4644_s5 + $0x1f8] sm:$0xff] }
  0x25   : > { %687 = vperm.xlu2 %2614, %v577_v10   ;;  %2576 = vmatpush.msra.mxu1 %v1127_v35  ;;  %v345_v10 = vmul.f32 %v2830_v49, %v309_v4  ;;  %v347_v4 = vmul.f32 %v2830_v49, %v311_v50 }
  0x26   : > { %637 = vperm.xlu0 %2612, %v567_v11   ;;  %602 = vperm.xlu1 %2613, %v560_v12   ;;  %v329_v11 = vmul.f32 %v2830_v49, %v293_v7 }
  0x27   : > { %1255 = vmatpush.msra.mxu0 %v1124_v36  ;;  %2578 = vmatpush.msra.mxu3 %v1127_v35  ;;  %v318_v35 = vld [vmem:[%s2814_s10 + $0xc8] sm:$0xff] }
  0x28   : > { %2580 = vmatpush.msra.mxu2 %v1124_v36  ;;  %2579 = vmatpush.msra.mxu1 %v1124_v36 }
  0x29   : > { %1256 = vmatpush.msra.mxu0 %v1121_v40  ;;  %2581 = vmatpush.msra.mxu3 %v1124_v36  ;;  %v891_v36 = vld [vmem:[%s4643_s4 + $0x60] sm:$0xff] }
  0x2a   : > { %2583 = vmatpush.msra.mxu2 %v1121_v40  ;;  %2582 = vmatpush.msra.mxu1 %v1121_v40 }
  0x2b   : > { %1257 = vmatpush.msra.mxu0 %v1118_v41  ;;  %2584 = vmatpush.msra.mxu3 %v1121_v40  ;;  %v889_v40 = vld [vmem:[%s4643_s4 + $0x50] sm:$0xff] }
  0x2c   : > { %2586 = vmatpush.msra.mxu2 %v1118_v41  ;;  %2585 = vmatpush.msra.mxu1 %v1118_v41 }
  0x2d   : > { %607 = vperm.xlu2 %2614, %v561_v13   ;;  %1258 = vmatpush.msra.mxu0 %v1115_v42 }
  0x2e   : > { %727 = vperm.xlu0 %2612, %v585_v14   ;;  %642 = vperm.xlu1 %2613, %v568_v15   ;;  %v380_v14 = vadd.f32 %v2840_v53, %v344_v9  ;;  %v381_v15 = vadd.f32 %v2840_v53, %v345_v10  ;;  %v312_v9 = vld [vmem:[%s2814_s10 + $0x98] sm:$0xff] }
  0x2f   : > { %2589 = vmatpush.msra.mxu2 %v1115_v42  ;;  %2587 = vmatpush.msra.mxu3 %v1118_v41  ;;  %v890_v41 = vld [vmem:[%s4643_s4 + $0x58] sm:$0xff] }
  0x30   : > { %1259 = vmatpush.msra.mxu0 %v1112_v46  ;;  %2588 = vmatpush.msra.mxu1 %v1115_v42  ;;  %v894_v10 = vld [vmem:[%s4643_s4 + $0x78] sm:$0xff] }
  0x31   : > { %2592 = vmatpush.msra.mxu2 %v1112_v46  ;;  %2590 = vmatpush.msra.mxu3 %v1115_v42  ;;  %v294_v42 = vld [vmem:[%s2814_s10 + $0x8] sm:$0xff] }
  0x32   : > { %1260 = vmatpush.msra.mxu0 %v1109_v52  ;;  %2591 = vmatpush.msra.mxu1 %v1112_v46  ;;  %v330_v55 = vmul.f32 %v2830_v49, %v294_v42  ;;  %v1188_v42 = vld [vmem:[%s4644_s5 + $0x2a8] sm:$0xff] }
  0x33   : > { %2595 = vmatpush.msra.mxu2 %v1109_v52  ;;  %2593 = vmatpush.msra.mxu3 %v1112_v46  ;;  %v1197_v46 = vld [vmem:[%s4644_s5 + $0x2f0] sm:$0xff] }
  0x34   : > { %1261 = vmatpush.msra.mxu0 %v1106_v54  ;;  %2594 = vmatpush.msra.mxu1 %v1109_v52 }
  0x35   : > { %647 = vperm.xlu2 %2614, %v569_v16   ;;  %2598 = vmatpush.msra.mxu2 %v1106_v54  ;;  %v888_v16 = vld [vmem:[%s4643_s4 + $0x48] sm:$0xff] }
  0x36   : > { %692 = vperm.xlu0 %2612, %v578_v17   ;;  %732 = vperm.xlu1 %2613, %v586_v18   ;;  %v886_v17 = vld [vmem:[%s4643_s4 + $0x38] sm:$0xff]  ;;  %v365_v18 = vadd.f32 %v2840_v53, %v329_v11 }
  0x37   : > { %1262 = vmatpush.msra.mxu0 %v1103_v57  ;;  %2596 = vmatpush.msra.mxu3 %v1109_v52 }
  0x38   : > { %2601 = vmatpush.msra.mxu2 %v1103_v57  ;;  %2597 = vmatpush.msra.mxu1 %v1106_v54  ;;  %v2915_v27 = vmax.f32 %v365_v18, 0.0  ;;  %v302_v18 = vld [vmem:[%s2814_s10 + $0x48] sm:$0xff] }
  0x39   : > { %2599 = vmatpush.msra.mxu3 %v1106_v54  ;;  %1693 = vmatpush.msrb.mxu0 %v1197_v46 }
  0x3a   : > { %2600 = vmatpush.msra.mxu1 %v1103_v57  ;;  %1469 = vmatpush.msrb.mxu2 %v1244_v22  ;;  %v1232_v22 = vld [vmem:[%s4644_s5 + $0x408] sm:$0xff] }
  0x3b   : > { %2602 = vmatpush.msra.mxu3 %v1103_v57  ;;  %v1235_v57 = vld [vmem:[%s4644_s5 + $0x420] sm:$0xff] }
  0x3c   : > { %1358 = vmatpush.msrb.mxu1 %v1196_v56 }
  0x3d   : > { %737 = vperm.xlu2 %2614, %v587_v19   ;;  %v887_v19 = vld [vmem:[%s4643_s4 + $0x40] sm:$0xff]  ;;  %1580 = vmatpush.msrb.mxu3 %v1149_v23  ;;  %v1137_v23 = vld [vmem:[%s4644_s5 + $0x110] sm:$0xff] }
  0x3e   : > { %612 = vperm.xlu0 %2612, %v562_v20   ;;  %697 = vperm.xlu1 %2613, %v579_v21   ;;  %v316_v20 = vld [vmem:[%s2814_s10 + $0xb8] sm:$0xff]  ;;  %v310_v21 = vld [vmem:[%s2814_s10 + $0x88] sm:$0xff] }
  0x3f   : > { %v352_v28 = vmul.f32 %v2830_v49, %v316_v20  ;;  %v346_v29 = vmul.f32 %v2830_v49, %v310_v21  ;;  %1581 = vmatpush.msrb.mxu3 %v1146_v31  ;;  %v383_v20 = vadd.f32 %v2840_v53, %v347_v4  ;;  %v1193_v21 = vld [vmem:[%s4644_s5 + $0x2d0] sm:$0xff]  ;;  %v896_v4 = vld [vmem:[%s4643_s4 + $0x88] sm:$0xff] }
  0x40   : > { %1359 = vmatpush.msrb.mxu1 %v1193_v21 }
  0x41   : > { %1582 = vmatpush.msrb.mxu3 %v1143_v45 }
  0x45   : > { %702 = vperm.xlu2 %2614, %v580_v24   ;;  %v317_v24 = vld [vmem:[%s2814_s10 + $0xc0] sm:$0xff] }
  0x46   : > { %652 = vperm.xlu0 %2612, %v570_v25   ;;  %617 = vperm.xlu1 %2613, %v563_v26   ;;  %v2911_v25 = vmax.f32 %v380_v14, 0.0  ;;  %v2913_v26 = vmax.f32 %v381_v15, 0.0  ;;  %v366_v14 = vadd.f32 %v2840_v53, %v330_v55  ;;  %v897_v55 = vld [vmem:[%s4643_s4 + $0x90] sm:$0xff] }
  0x48   : > { %4747 = vst [vmem:[#allocation4_spill] sm:$0xff] %v2911_v25  ;;  %v493_v34 = vrot.slane %v2913_v26, 7  ;;  %v3031_v31 = vmax.f32 %v366_v14, 0.0  ;;  %v1226_v14 = vld [vmem:[%s4644_s5 + $0x3d8] sm:$0xff] }
  0x4a   : > { %v463_v56 = vrot.slane %v3031_v31, 7 }
  0x4d   : > { %622 = vperm.xlu2 %2614, %v564_v30   ;;  %v1241_v30 = vld [vmem:[%s4644_s5 + $0x450] sm:$0xff] }
  0x4e   : > { %742 = vperm.xlu0 %2612, %v588_v32   ;;  %657 = vperm.xlu1 %2613, %v571_v33   ;;  %v353_v32 = vmul.f32 %v2830_v49, %v317_v24  ;;  %v4648_v33 = vrot.slane %v2911_v25, 7  ;;  %v295_v24 = vld [vmem:[%s2814_s10 + $0x10] sm:$0xff] }
  0x4f   : > { %1470 = vmatpush.msrb.mxu2 %v1241_v30  ;;  %v331_v45 = vmul.f32 %v2830_v49, %v295_v24  ;;  %v1184_v24 = vld [vmem:[%s4644_s5 + $0x288] sm:$0xff] }
  0x51   : > { %1471 = vmatpush.msrb.mxu2 %v1238_v44 }
  0x53   : > { %1472 = vmatpush.msrb.mxu2 %v1235_v57 }
  0x55   : > { %662 = vperm.xlu2 %2614, %v572_v37   ;;  %v462_v37 = vrot.slane %v2915_v27, 7  ;;  %1473 = vmatpush.msrb.mxu2 %v1232_v22 }
  0x56   : > { %707 = vperm.xlu0 %2612, %v581_v38   ;;  %747 = vperm.xlu1 %2613, %v589_v39   ;;  %v388_v38 = vadd.f32 %v2840_v53, %v352_v28  ;;  %v382_v39 = vadd.f32 %v2840_v53, %v346_v29  ;;  %v1191_v28 = vld [vmem:[%s4644_s5 + $0x2c0] sm:$0xff] }
  0x57   : > { %v557_v51 = vsel %vm461_vm0, 0.0, %v462_v37 }
  0x58   : > { %v2963_v52 = vmax.f32 %v388_v38, 0.0  ;;  %v2965_v54 = vmax.f32 %v382_v39, 0.0 }
  0x5a   : > { %v4649_v11 = vrot.slane %v2963_v52, 7 }
  0x5d   : > { %667 = vperm.xlu2 %2614, %v573_v43   ;;  %v389_v43 = vadd.f32 %v2840_v53, %v353_v32  ;;  %v338_v32 = vmul.f32 %v2830_v49, %v302_v18  ;;  %v1185_v18 = vld [vmem:[%s4644_s5 + $0x290] sm:$0xff] }
  0x5e   : > { %627 = vperm.xlu0 %2612, %v565_v47   ;;  %913 = vperm.xlu1 %2613, %v879_v48   ;;  %v494_v48 = vsel %vm461_vm0, %v4648_v33, %v493_v34 }
  0x5f   : > { %v374_v57 = vadd.f32 %v2840_v53, %v338_v32  ;;  %v1182_v32 = vld [vmem:[%s4644_s5 + $0x278] sm:$0xff] }
  0x61   : > { %v3103_v22 = vmax.f32 %v374_v57, 0.0 }
  0x65   : > { %928 = vperm.xlu2 %2614, %v882_v58   ;;  %v354_v58 = vmul.f32 %v2830_v49, %v318_v35  ;;  %v1190_v35 = vld [vmem:[%s4644_s5 + $0x2b8] sm:$0xff] }
  0x66   : > { %918 = vperm.xlu0 %2612, %v880_v59   ;;  %923 = vperm.xlu1 %2613, %v881_v60   ;;  %v1140_v59 = vld [vmem:[%s4644_s5 + $0x128] sm:$0xff]  ;;  %v1194_v60 = vld [vmem:[%s4644_s5 + $0x2d8] sm:$0xff] }
  0x67   : > { %v2863_v63 = vpop.permute.xlu2 %717  ;;  %1583 = vmatpush.msrb.mxu3 %v1140_v59  ;;  %1694 = vmatpush.msrb.mxu0 %v1194_v60  ;;  %v390_v15 = vadd.f32 %v2840_v53, %v354_v58 }
  0x68   : > { %1360 = vmatpush.msrb.mxu1 %v1190_v35 }
  0x69   : > { %v3040_v38 = vmax.f32 %v390_v15, 0.0  ;;  %1584 = vmatpush.msrb.mxu3 %v1137_v23  ;;  %1695 = vmatpush.msrb.mxu0 %v1191_v28  ;;  %v1131_v15 = vld [vmem:[%s4644_s5 + $0xe0] sm:$0xff] }
  0x6a   : > { %v1223_v28 = vld [vmem:[%s4644_s5 + $0x3c0] sm:$0xff] }
  0x6b   : > { %4750 = vst [vmem:[#allocation7_spill] sm:$0xff] %v3040_v38  ;;  %1696 = vmatpush.msrb.mxu0 %v1188_v42  ;;  %v511_v58 = vrot.slane %v3040_v38, 7 }
  0x6d   : > { %943 = vperm.xlu2 %2614, %v885_v2   ;;  %v2981_v2 = vmax.f32 %v389_v43, 0.0  ;;  %v3052_v43 = vmax.f32 %v383_v20, 0.0  ;;  %v464_v20 = vsel %vm461_vm0, %v462_v37, %v463_v56  ;;  %1697 = vmatpush.msrb.mxu0 %v1185_v18  ;;  %v321_v18 = vld [vmem:[%s2814_s10 + $0xe0] sm:$0xff] }
  0x6e   : > { %933 = vperm.xlu0 %2612, %v883_v5   ;;  %938 = vperm.xlu1 %2613, %v884_v6  }
  0x6f   : > { %v633_v12 = vpop.permute.xlu2 %632  ;;  %4748 = vst [vmem:[#allocation5_spill] sm:$0xff] %v2981_v2  ;;  %1698 = vmatpush.msrb.mxu0 %v1182_v32 }
  0x70   : > { %v2887_v13 = vmul.f32 %v633_v12, %v478_v8  ;;  %v319_v8 = vld [vmem:[%s2814_s10 + $0xd0] sm:$0xff]  ;;  %v495_v12 = vrot.slane %v2965_v54, 7 }
  0x71   : > { %v355_v39 = vmul.f32 %v2830_v49, %v319_v8  ;;  %v497_v8 = vrot.slane %v3052_v43, 7 }
  0x72   : > { %4746 = vst [vmem:[#allocation3_spill] sm:$0xff] %v2887_v13  ;;  %1287 = vmatmul.f32.vlgmr.msra.gmra.mxu1 %v2887_v13  ;;  %v496_v30 = vsel %vm461_vm0, %v493_v34, %v495_v12  ;;  %v348_v34 = vmul.f32 %v2830_v49, %v312_v9  ;;  %v367_v9 = vadd.f32 %v2840_v53, %v331_v45 }
  0x73   : > { %v391_v59 = vadd.f32 %v2840_v53, %v355_v39  ;;  %v498_v21 = vsel %vm461_vm0, %v495_v12, %v497_v8 }
  0x74   : > { %v384_v60 = vadd.f32 %v2840_v53, %v348_v34  ;;  %v3127_v35 = vmax.f32 %v367_v9, 0.0 }
  0x75   : > { %958 = vperm.xlu2 %2614, %v888_v16   ;;  %v892_v16 = vld [vmem:[%s4643_s4 + $0x68] sm:$0xff] }
  0x76   : > { %948 = vperm.xlu0 %2612, %v886_v17   ;;  %953 = vperm.xlu1 %2613, %v887_v19   ;;  %v893_v17 = vld [vmem:[%s4643_s4 + $0x70] sm:$0xff]  ;;  %v509_v19 = vrot.slane %v2981_v2, 7  ;;  %v3119_v12 = vmax.f32 %v384_v60, 0.0 }
  0x77   : > { %v2952_v47 = vpop.permute.xlu2 %722 }
  0x78   : > { %v510_v29 = vsel %vm461_vm0, %v4649_v11, %v509_v19  ;;  %v512_v37 = vsel %vm461_vm0, %v509_v19, %v511_v58  ;;  %v499_v60 = vrot.slane %v3119_v12, 7 }
  0x79   : > { %v3138_v45 = vmul.f32 %v2863_v63, %v512_v37  ;;  %v898_v63 = vld [vmem:[%s4643_s4 + $0x98] sm:$0xff] }
  0x7a   : > { %v1178_v37 = vld [vmem:[%s4644_s5 + $0x258] sm:$0xff]  ;;  %v500_v32 = vsel %vm461_vm0, %v497_v8, %v499_v60 }
  0x7b   : > { %4753 = vst [vmem:[#allocation10_spill] sm:$0xff] %v3138_v45 }
  0x7d   : > { %973 = vperm.xlu2 %2614, %v891_v36   ;;  %v1229_v36 = vld [vmem:[%s4644_s5 + $0x3f0] sm:$0xff] }
  0x7e   : > { %963 = vperm.xlu0 %2612, %v889_v40   ;;  %968 = vperm.xlu1 %2613, %v890_v41   ;;  %v1134_v41 = vld [vmem:[%s4644_s5 + $0xf8] sm:$0xff] }
  0x7f   : > { %v3043_v40 = vpop.permute.xlu2 %687  ;;  %1474 = vmatpush.msrb.mxu2 %v1229_v36  ;;  %1585 = vmatpush.msrb.mxu3 %v1134_v41 }
  0x80   : > { %v673_v3 = vpop.permute.xlu0 %672  ;;  %v593_v5 = vpop.permute.xlu1 %592 }
  0x81   : > { %v2984_v6 = vmul.f32 %v673_v3, %v494_v48  ;;  %v2986_v7 = vmul.f32 %v593_v5, %v557_v51  ;;  %v296_v51 = vld [vmem:[%s2814_s10 + $0x18] sm:$0xff]  ;;  %v895_v3 = vld [vmem:[%s4643_s4 + $0x80] sm:$0xff]  ;;  %1475 = vmatpush.msrb.mxu2 %v1226_v14  ;;  %1586 = vmatpush.msrb.mxu3 %v1131_v15  ;;  %v1220_v14 = vld [vmem:[%s4644_s5 + $0x3a8] sm:$0xff] }
  0x82   : > { %v320_v5 = vld [vmem:[%s2814_s10 + $0xd8] sm:$0xff]  ;;  %v1125_v15 = vld [vmem:[%s4644_s5 + $0xb0] sm:$0xff] }
  0x83   : > { %4749 = vst [vmem:[#allocation6_spill] sm:$0xff] %v2984_v6  ;;  %1263 = vmatmul.f32.vlgmr.msra.gmra.mxu0 %v2986_v7  ;;  %1311 = vmatmul.f32.vlgmr.msra.gmra.mxu2 %v2984_v6  ;;  %v356_v23 = vmul.f32 %v2830_v49, %v320_v5  ;;  %v465_v5 = vrot.slane %v3127_v35, 7 }
  0x84   : > { %1476 = vmatpush.msrb.mxu2 %v1223_v28 }
  0x85   : > { %988 = vperm.xlu2 %2614, %v894_v10   ;;  %v1187_v10 = vld [vmem:[%s4644_s5 + $0x2a0] sm:$0xff]  ;;  %v392_v57 = vadd.f32 %v2840_v53, %v356_v23  ;;  %v466_v23 = vsel %vm461_vm0, %v463_v56, %v465_v5 }
  0x86   : > { %978 = vperm.xlu0 %2612, %v892_v16   ;;  %983 = vperm.xlu1 %2613, %v893_v17   ;;  %v332_v16 = vmul.f32 %v2830_v49, %v296_v51  ;;  %v303_v17 = vld [vmem:[%s2814_s10 + $0x50] sm:$0xff]  ;;  %v900_v51 = vld [vmem:[%s4643_s4 + $0xa8] sm:$0xff] }
  0x87   : > { %1361 = vmatpush.msrb.mxu1 %v1187_v10  ;;  %v339_v36 = vmul.f32 %v2830_v49, %v303_v17  ;;  %v3130_v34 = vpop.permute.xlu2 %607  ;;  %v1181_v10 = vld [vmem:[%s4644_s5 + $0x270] sm:$0xff]  ;;  %1477 = vmatpush.msrb.mxu2 %v1220_v14 }
  0x88   : > { %v713_v44 = vpop.permute.xlu0 %712  ;;  %v678_v46 = vpop.permute.xlu1 %677  ;;  %v368_v41 = vadd.f32 %v2840_v53, %v332_v16 }
  0x89   : > { %v3055_v48 = vmul.f32 %v713_v44, %v510_v29  ;;  %v3057_v50 = vmul.f32 %v678_v46, %v496_v30  ;;  %v3117_v29 = vmax.f32 %v391_v59, 0.0  ;;  %v1128_v30 = vld [vmem:[%s4644_s5 + $0xc8] sm:$0xff]  ;;  %1362 = vmatpush.msrb.mxu1 %v1184_v24  ;;  %v304_v46 = vld [vmem:[%s2814_s10 + $0x58] sm:$0xff]  ;;  %v375_v9 = vadd.f32 %v2840_v53, %v339_v36 }
  0x8a   : > { %1587 = vmatpush.msrb.mxu3 %v1128_v30  ;;  %v3169_v16 = vmax.f32 %v368_v41, 0.0  ;;  %v340_v17 = vmul.f32 %v2830_v49, %v304_v46  ;;  %v3184_v24 = vmax.f32 %v392_v57, 0.0  ;;  %v1217_v30 = vld [vmem:[%s4644_s5 + $0x390] sm:$0xff]  ;;  %v1176_v36 = vld [vmem:[%s4644_s5 + $0x248] sm:$0xff] }
  0x8b   : > { %4751 = vst [vmem:[#allocation8_spill] sm:$0xff] %v3055_v48  ;;  %1314 = vmatmul.f32.gmra.mxu2 %v3057_v50  ;;  %1335 = vmatmul.f32.vlgmr.msra.gmra.mxu3 %v3055_v48  ;;  %v513_v59 = vrot.slane %v3117_v29, 7 }
  0x8c   : > { %4752 = vst [vmem:[#allocation9_spill] sm:$0xff] %v3117_v29  ;;  %1363 = vmatpush.msrb.mxu1 %v1181_v10  ;;  %1588 = vmatpush.msrb.mxu3 %v1125_v15  ;;  %v515_v10 = vrot.slane %v3184_v24, 7 }
  0x8d   : > { %1003 = vperm.xlu2 %2614, %v897_v55   ;;  %v479_v55 = vrot.slane %v3103_v22, 7  ;;  %4754 = vst [vmem:[#allocation11_spill] sm:$0xff] %v3184_v24  ;;  %v514_v56 = vsel %vm461_vm0, %v511_v58, %v513_v59  ;;  %v467_v58 = vrot.slane %v3169_v16, 7  ;;  %1478 = vmatpush.msrb.mxu2 %v1217_v30 }
  0x8e   : > { %993 = vperm.xlu0 %2612, %v895_v3   ;;  %998 = vperm.xlu1 %2613, %v896_v4   ;;  %v899_v3 = vld [vmem:[%s4643_s4 + $0xa0] sm:$0xff] }
  0x8f   : > { %v313_v4 = vld [vmem:[%s2814_s10 + $0xa0] sm:$0xff]  ;;  %1364 = vmatpush.msrb.mxu1 %v1178_v37  ;;  %v3230_v15 = vpop.permute.xlu2 %647  ;;  %v468_v37 = vsel %vm461_vm0, %v465_v5, %v467_v58  ;;  %v516_v5 = vsel %vm461_vm0, %v513_v59, %v515_v10 }
  0x90   : > { %v598_v19 = vpop.permute.xlu0 %597  ;;  %v683_v39 = vpop.permute.xlu1 %682  ;;  %v349_v28 = vmul.f32 %v2830_v49, %v313_v4  ;;  %v322_v4 = vld [vmem:[%s2814_s10 + $0xe8] sm:$0xff] }
  0x91   : > { %v3133_v42 = vmul.f32 %v598_v19, %v464_v20  ;;  %v3135_v44 = vmul.f32 %v683_v39, %v498_v21  ;;  %v1179_v20 = vld [vmem:[%s4644_s5 + $0x260] sm:$0xff]  ;;  %v480_v21 = vsel %vm461_vm0, %v477_v1, %v479_v55  ;;  %v1122_v1 = vld [vmem:[%s4644_s5 + $0x98] sm:$0xff]  ;;  %v3209_v19 = vmax.f32 %v375_v9, 0.0 }
  0x92   : > { %v357_v39 = vmul.f32 %v2830_v49, %v321_v18  ;;  %1699 = vmatpush.msrb.mxu0 %v1179_v20  ;;  %1589 = vmatpush.msrb.mxu3 %v1122_v1  ;;  %v903_v9 = vld [vmem:[%s4643_s4 + $0xc0] sm:$0xff]  ;;  %v385_v14 = vadd.f32 %v2840_v53, %v349_v28  ;;  %v314_v1 = vld [vmem:[%s2814_s10 + $0xa8] sm:$0xff] }
  0x93   : > { %1266 = vmatmul.f32.gmra.mxu0 %v3133_v42  ;;  %1317 = vmatmul.f32.gmra.mxu2 %v3135_v44  ;;  %v481_v18 = vrot.slane %v3209_v19, 7  ;;  %v1119_v28 = vld [vmem:[%s4644_s5 + $0x80] sm:$0xff] }
  0x94   : > { %1338 = vmatmul.f32.gmra.mxu3 %v3138_v45  ;;  %1700 = vmatpush.msrb.mxu0 %v1176_v36  ;;  %v393_v20 = vadd.f32 %v2840_v53, %v357_v39  ;;  %v3274_v39 = vmax.f32 %v385_v14, 0.0  ;;  %v350_v14 = vmul.f32 %v2830_v49, %v314_v1 }
  0x95   : > { %1018 = vperm.xlu2 %2614, %v900_v51   ;;  %v376_v51 = vadd.f32 %v2840_v53, %v340_v17  ;;  %v297_v17 = vld [vmem:[%s2814_s10 + $0x20] sm:$0xff]  ;;  %v482_v36 = vsel %vm461_vm0, %v479_v55, %v481_v18  ;;  %1590 = vmatpush.msrb.mxu3 %v1119_v28  ;;  %v1170_v55 = vld [vmem:[%s4644_s5 + $0x218] sm:$0xff] }
  0x96   : > { %1008 = vperm.xlu0 %2612, %v898_v63   ;;  %1013 = vperm.xlu1 %2613, %v899_v3   ;;  %v3219_v63 = vmul.f32 %v2952_v47, %v514_v56  ;;  %v3222_v3 = vmul.f32 %v3043_v40, %v500_v32  ;;  %v901_v47 = vld [vmem:[%s4643_s4 + $0xb0] sm:$0xff]  ;;  %v902_v40 = vld [vmem:[%s4643_s4 + $0xb8] sm:$0xff]  ;;  %v1172_v32 = vld [vmem:[%s4644_s5 + $0x228] sm:$0xff]  ;;  %v3287_v59 = vmax.f32 %v393_v20, 0.0  ;;  %v4652_v1 = vrot.slane %v3274_v39, 7 }
  0x97   : > { %v3257_v30 = vmax.f32 %v376_v51, 0.0  ;;  %v1173_v56 = vld [vmem:[%s4644_s5 + $0x230] sm:$0xff]  ;;  %v1116_v51 = vld [vmem:[%s4644_s5 + $0x68] sm:$0xff]  ;;  %v906_v28 = vld [vmem:[%s4643_s4 + $0xd8] sm:$0xff] }
  0x98   : > { %v638_v41 = vpop.permute.xlu0 %637  ;;  %v603_v46 = vpop.permute.xlu1 %602  ;;  %4755 = vst [vmem:[#allocation12_spill] sm:$0xff] %v3219_v63  ;;  %1701 = vmatpush.msrb.mxu0 %v1173_v56  ;;  %1591 = vmatpush.msrb.mxu3 %v1116_v51  ;;  %v315_v20 = vld [vmem:[%s2814_s10 + $0xb0] sm:$0xff]  ;;  %v1208_v51 = vld [vmem:[%s4644_s5 + $0x348] sm:$0xff] }
  0x99   : > { %v3214_v8 = vmul.f32 %v638_v41, %v480_v21  ;;  %v3216_v57 = vmul.f32 %v603_v46, %v466_v23  ;;  %4756 = vst [vmem:[#allocation13_spill] sm:$0xff] %v3222_v3  ;;  %v1175_v21 = vld [vmem:[%s4644_s5 + $0x240] sm:$0xff]  ;;  %v1214_v23 = vld [vmem:[%s4644_s5 + $0x378] sm:$0xff]  ;;  %v333_v41 = vmul.f32 %v2830_v49, %v297_v17  ;;  %v3291_v17 = vmul.f32 %v3130_v34, %v468_v37  ;;  %v904_v37 = vld [vmem:[%s4643_s4 + $0xc8] sm:$0xff] }
  0x9a   : > { %1365 = vmatpush.msrb.mxu1 %v1175_v21  ;;  %v1211_v46 = vld [vmem:[%s4644_s5 + $0x360] sm:$0xff]  ;;  %1479 = vmatpush.msrb.mxu2 %v1214_v23  ;;  %4757 = vst [vmem:[#allocation14_spill] sm:$0xff] %v3287_v59 }
  0x9b   : > { %1269 = vmatmul.f32.gmra.mxu0 %v3216_v57  ;;  %1290 = vmatmul.f32.gmra.mxu1 %v3214_v8  ;;  %v369_v56 = vadd.f32 %v2840_v53, %v333_v41  ;;  %v386_v41 = vadd.f32 %v2840_v53, %v350_v14  ;;  %v298_v14 = vld [vmem:[%s2814_s10 + $0x28] sm:$0xff] }
  0x9c   : > { %1320 = vmatmul.f32.gmra.mxu2 %v3222_v3  ;;  %1341 = vmatmul.f32.gmra.mxu3 %v3219_v63 }
  0x9d   : > { %1033 = vperm.xlu2 %2614, %v903_v9   ;;  %v358_v9 = vmul.f32 %v2830_v49, %v322_v4  ;;  %1366 = vmatpush.msrb.mxu1 %v1172_v32  ;;  %v4650_v4 = vrot.slane %v3257_v30, 7  ;;  %v905_v32 = vld [vmem:[%s4643_s4 + $0xd0] sm:$0xff] }
  0x9e   : > { %1023 = vperm.xlu0 %2612, %v901_v47   ;;  %1028 = vperm.xlu1 %2613, %v902_v40  }
  0x9f   : > { %1480 = vmatpush.msrb.mxu2 %v1211_v46  ;;  %1702 = vmatpush.msrb.mxu0 %v1170_v55  ;;  %v394_v34 = vadd.f32 %v2840_v53, %v358_v9  ;;  %v1169_v46 = vld [vmem:[%s4644_s5 + $0x210] sm:$0xff]  ;;  %v484_v55 = vsel %vm461_vm0, %v481_v18, %v4650_v4  ;;  %v502_v18 = vsel %vm461_vm0, %v499_v60, %v4652_v1 }
  0xa0   : > { %v728_v47 = vpop.permute.xlu0 %727  ;;  %v643_v40 = vpop.permute.xlu1 %642  ;;  %v1113_v9 = vld [vmem:[%s4644_s5 + $0x50] sm:$0xff]  ;;  %1367 = vmatpush.msrb.mxu1 %v1169_v46  ;;  %v3348_v46 = vmax.f32 %v369_v56, 0.0  ;;  %v351_v60 = vmul.f32 %v2830_v49, %v315_v20  ;;  %v3363_v56 = vmax.f32 %v386_v41, 0.0 }
  0xa1   : > { %v3294_v21 = vmul.f32 %v728_v47, %v516_v5  ;;  %v3296_v23 = vmul.f32 %v643_v40, %v482_v36  ;;  %v305_v5 = vld [vmem:[%s2814_s10 + $0x60] sm:$0xff]  ;;  %v4651_v36 = vrot.slane %v3287_v59, 7  ;;  %v3329_v47 = vpop.permute.xlu2 %737  ;;  %v3357_v11 = vmax.f32 %v394_v34, 0.0  ;;  %1481 = vmatpush.msrb.mxu2 %v1208_v51  ;;  %1592 = vmatpush.msrb.mxu3 %v1113_v9  ;;  %v299_v51 = vld [vmem:[%s2814_s10 + $0x30] sm:$0xff] }
  0xa2   : > { %v1167_v40 = vld [vmem:[%s4644_s5 + $0x200] sm:$0xff]  ;;  %v341_v33 = vmul.f32 %v2830_v49, %v305_v5  ;;  %4761 = vst [vmem:[#allocation18_spill] sm:$0xff] %v3363_v56  ;;  %v334_v5 = vmul.f32 %v2830_v49, %v298_v14  ;;  %1368 = vmatpush.msrb.mxu1 %v1166_v0  ;;  %v3367_v34 = vmul.f32 %v3230_v15, %v484_v55  ;;  %v909_v41 = vld [vmem:[%s4643_s4 + $0xf0] sm:$0xff]  ;;  %v4655_v9 = vrot.slane %v3348_v46, 7 }
  0xa3   : > { %4758 = vst [vmem:[#allocation15_spill] sm:$0xff] %v3294_v21  ;;  %1272 = vmatmul.f32.gmra.mxu0 %v3291_v17  ;;  %1293 = vmatmul.f32.gmra.mxu1 %v3296_v23  ;;  %v387_v15 = vadd.f32 %v2840_v53, %v351_v60  ;;  %v323_v55 = vld [vmem:[%s2814_s10 + $0xf0] sm:$0xff]  ;;  %v306_v60 = vld [vmem:[%s2814_s10 + $0x68] sm:$0xff] }
  0xa4   : > { %4759 = vst [vmem:[#allocation16_spill] sm:$0xff] %v3296_v23  ;;  %1344 = vmatmul.f32.gmra.mxu3 %v3294_v21  ;;  %1703 = vmatpush.msrb.mxu0 %v1167_v40  ;;  %v377_v14 = vadd.f32 %v2840_v53, %v341_v33  ;;  %v4660_v33 = vrot.slane %v3363_v56, 7  ;;  %v370_v40 = vadd.f32 %v2840_v53, %v334_v5  ;;  %v1160_v5 = vld [vmem:[%s4644_s5 + $0x1c8] sm:$0xff] }
  0xa5   : > { %1048 = vperm.xlu2 %2614, %v906_v28   ;;  %v518_v28 = vsel %vm461_vm0, %v515_v10, %v4651_v36  ;;  %4760 = vst [vmem:[#allocation17_spill] sm:$0xff] %v3357_v11  ;;  %v1164_v10 = vld [vmem:[%s4644_s5 + $0x1e8] sm:$0xff]  ;;  %v470_v0 = vsel %vm461_vm0, %v467_v58, %v4655_v9  ;;  %v4765_v58 = vrot.slane %v3357_v11, 7  ;;  %v4766_v9 = vrot.slane %v3287_v59, 7 }
  0xa6   : > { %1038 = vperm.xlu0 %2612, %v904_v37   ;;  %1043 = vperm.xlu1 %2613, %v905_v32   ;;  %v1205_v37 = vld [vmem:[%s4644_s5 + $0x330] sm:$0xff]  ;;  %v1110_v32 = vld [vmem:[%s4644_s5 + $0x38] sm:$0xff] }
  0xa7   : > { %1482 = vmatpush.msrb.mxu2 %v1205_v37  ;;  %1593 = vmatpush.msrb.mxu3 %v1110_v32  ;;  %v1107_v37 = vld [vmem:[%s4644_s5 + $0x20] sm:$0xff]  ;;  %v335_v32 = vmul.f32 %v2830_v49, %v299_v51  ;;  %v4764_v51 = vrot.slane %v3274_v39, 7  ;;  %v520_v21 = vsel %vm461_vm0, %v4766_v9, %v4765_v58 }
  0xa8   : > { %v693_v4 = vpop.permute.xlu0 %692  ;;  %v733_v36 = vpop.permute.xlu1 %732  ;;  %1704 = vmatpush.msrb.mxu0 %v1164_v10  ;;  %v1161_v10 = vld [vmem:[%s4644_s5 + $0x1d0] sm:$0xff] }
  0xa9   : > { %v3369_v1 = vmul.f32 %v693_v4, %v502_v18  ;;  %v3371_v20 = vmul.f32 %v733_v36, %v518_v28  ;;  %v907_v4 = vld [vmem:[%s4643_s4 + $0xe0] sm:$0xff]  ;;  %v908_v36 = vld [vmem:[%s4643_s4 + $0xe8] sm:$0xff]  ;;  %v1202_v28 = vld [vmem:[%s4644_s5 + $0x318] sm:$0xff]  ;;  %v703_v63 = vpop.permute.xlu2 %702  ;;  %1594 = vmatpush.msrb.mxu3 %v1107_v37  ;;  %v371_v9 = vadd.f32 %v2840_v53, %v335_v32 }
  0xaa   : > { %v1163_v18 = vld [vmem:[%s4644_s5 + $0x1e0] sm:$0xff]  ;;  %1483 = vmatpush.msrb.mxu2 %v1202_v28  ;;  %1705 = vmatpush.msrb.mxu0 %v1161_v10  ;;  %v3448_v28 = vmul.f32 %v3329_v47, %v520_v21  ;;  %v1157_v21 = vld [vmem:[%s4644_s5 + $0x1b0] sm:$0xff]  ;;  %v1150_v32 = vld [vmem:[%s4644_s5 + $0x178] sm:$0xff] }
  0xab   : > { %4762 = vst [vmem:[#allocation19_spill] sm:$0xff] %v3369_v1  ;;  %1296 = vmatmul.f32.gmra.mxu1 %v3367_v34  ;;  %1323 = vmatmul.f32.gmra.mxu2 %v3369_v1 }
  0xac   : > { %4763 = vst [vmem:[#allocation20_spill] sm:$0xff] %v3371_v20  ;;  %1347 = vmatmul.f32.gmra.mxu3 %v3371_v20  ;;  %1369 = vmatpush.msrb.mxu1 %v1163_v18  ;;  %v3420_v18 = vmax.f32 %v377_v14, 0.0  ;;  %v359_v20 = vmul.f32 %v2830_v49, %v323_v55  ;;  %v1158_v14 = vld [vmem:[%s4644_s5 + $0x1b8] sm:$0xff]  ;;  %v3439_v55 = vmax.f32 %v370_v40, 0.0  ;;  %v307_v40 = vld [vmem:[%s2814_s10 + $0x70] sm:$0xff] }
  0xad   : > { %1063 = vperm.xlu2 %2614, %v909_v41   ;;  %v504_v41 = vsel %vm461_vm0, %v4764_v51, %v4660_v33  ;;  %v3434_v51 = vmax.f32 %v387_v15, 0.0  ;;  %v342_v33 = vmul.f32 %v2830_v49, %v306_v60  ;;  %4768 = vst [vmem:[#allocation22_spill] sm:$0xff] %v3448_v28  ;;  %1706 = vmatpush.msrb.mxu0 %v1158_v14  ;;  %v4769_v14 = vrot.slane %v3257_v30, 7 }
  0xae   : > { %1053 = vperm.xlu0 %2612, %v907_v4   ;;  %1058 = vperm.xlu1 %2613, %v908_v36   ;;  %v1199_v4 = vld [vmem:[%s4644_s5 + $0x300] sm:$0xff]  ;;  %v1104_v36 = vld [vmem:[%s4644_s5 + $0x8] sm:$0xff]  ;;  %v485_v37 = vrot.slane %v3420_v18, 7  ;;  %v395_v60 = vadd.f32 %v2840_v53, %v359_v20  ;;  %v471_v47 = vrot.slane %v3439_v55, 7 }
  0xaf   : > { %1370 = vmatpush.msrb.mxu1 %v1160_v5  ;;  %1484 = vmatpush.msrb.mxu2 %v1199_v4  ;;  %v378_v20 = vadd.f32 %v2840_v53, %v342_v33  ;;  %v1198_v5 = vld [vmem:[%s4644_s5 + $0x2f8] sm:$0xff]  ;;  %v343_v4 = vmul.f32 %v2830_v49, %v307_v40 }
  0xb0   : > { %v613_v24 = vpop.permute.xlu0 %612  ;;  %v698_v45 = vpop.permute.xlu1 %697  ;;  %1595 = vmatpush.msrb.mxu3 %v1104_v36  ;;  %v1154_v33 = vld [vmem:[%s4644_s5 + $0x198] sm:$0xff]  ;;  %v1152_v36 = vld [vmem:[%s4644_s5 + $0x188] sm:$0xff]  ;;  %v3490_v40 = vmax.f32 %v395_v60, 0.0 }
  0xb1   : > { %v3443_v15 = vmul.f32 %v613_v24, %v470_v0  ;;  %v3445_v58 = vmul.f32 %v698_v45, %v504_v41  ;;  %v910_v45 = vld [vmem:[%s4643_s4 + $0xf8] sm:$0xff]  ;;  %1371 = vmatpush.msrb.mxu1 %v1157_v21  ;;  %v1155_v0 = vld [vmem:[%s4644_s5 + $0x1a0] sm:$0xff]  ;;  %v3475_v41 = vmax.f32 %v371_v9, 0.0  ;;  %1919 = vmatpush.msra.mxu2 %v1150_v32  ;;  %v486_v21 = vsel %vm461_vm0, %v4769_v14, %v485_v37 }
  0xb2   : > { %v324_v24 = vld [vmem:[%s2814_s10 + $0xf8] sm:$0xff]  ;;  %1707 = vmatpush.msrb.mxu0 %v1155_v0  ;;  %v4770_v9 = vrot.slane %v3348_v46, 7  ;;  %4771 = vst [vmem:[#allocation23_spill] sm:$0xff] %v3490_v40  ;;  %2030 = vmatpush.msra.mxu3 %v1198_v5  ;;  %v4772_v32 = vrot.slane %v3434_v51, 7  ;;  %v623_v5 = vpop.permute.xlu2 %622 }
  0xb3   : > { %4767 = vst [vmem:[#allocation21_spill] sm:$0xff] %v3445_v58  ;;  %1275 = vmatmul.f32.gmra.mxu0 %v3443_v15  ;;  %1326 = vmatmul.f32.gmra.mxu2 %v3445_v58  ;;  %v360_v0 = vmul.f32 %v2830_v49, %v324_v24  ;;  %v473_v29 = vrot.slane %v3475_v41, 7  ;;  %v1151_v49 = vld [vmem:[%s4644_s5 + $0x180] sm:$0xff] }
  0xb4   : > { %1350 = vmatmul.f32.gmra.mxu3 %v3448_v28  ;;  %v472_v10 = vsel %vm461_vm0, %v4770_v9, %v471_v47  ;;  %v4773_v28 = vrot.slane %v3363_v56, 7  ;;  %1372 = vmatpush.msrb.mxu1 %v1154_v33 }
  0xb5   : > { %1708 = vmatpush.msrb.mxu0 %v1152_v36  ;;  %v396_v33 = vadd.f32 %v2840_v53, %v360_v0 }
  0xb6   : > { %1068 = vperm.xlu0 %2612, %v910_v45   ;;  %v506_v59 = vsel %vm461_vm0, %v4773_v28, %v4772_v32  ;;  %v3498_v45 = vmax.f32 %v378_v20, 0.0  ;;  %v379_v28 = vadd.f32 %v2840_v53, %v343_v4  ;;  %v521_v20 = vrot.slane %v3490_v40, 7  ;;  %1373 = vmatpush.msrb.mxu1 %v1151_v49 }
  0xb7   : > { %v3508_v24 = vmul.f32 %v703_v63, %v506_v59  ;;  %v1246_v63 = vld [vmem:[%s4644_s5 + $0x478] sm:$0xff]  ;;  %v1245_v59 = vld [vmem:[%s4644_s5 + $0x470] sm:$0xff]  ;;  %v4775_v4 = vrot.slane %v3357_v11, 7  ;;  %v3530_v0 = vmax.f32 %v396_v33, 0.0 }
  0xb8   : > { %v653_v14 = vpop.permute.xlu0 %652  ;;  %v618_v48 = vpop.permute.xlu1 %617  ;;  %2141 = vmatpush.msra.mxu0 %v1246_v63  ;;  %1806 = vmatpush.msra.mxu1 %v1245_v59  ;;  %v3524_v53 = vmax.f32 %v379_v28, 0.0  ;;  %v4779_v59 = vrot.slane %v2963_v52, 7 }
  0xb9   : > { %v3501_v9 = vmul.f32 %v653_v14, %v486_v21  ;;  %v3503_v60 = vmul.f32 %v618_v48, %v472_v10  ;;  %4774 = vst [vmem:[#allocation24_spill] sm:$0xff] %v3508_v24  ;;  %v487_v48 = vrot.slane %v3498_v45, 7  ;;  %v474_v10 = vsel %vm461_vm0, %v471_v47, %v473_v29 }
  0xba   : > { %v522_v36 = vsel %vm461_vm0, %v4775_v4, %v521_v20  ;;  %4776 = vst [vmem:[#allocation25_spill] sm:$0xff] %v3530_v0  ;;  %v3532_v49 = vmul.f32 %v623_v5, %v474_v10  ;;  %v489_v47 = vrot.slane %v3524_v53, 7  ;;  %v523_v28 = vrot.slane %v3530_v0, 7  ;;  %v663_v63 = vpop.permute.xlu2 %662  ;;  %v1195_v5 = vld [vmem:[%s4644_s5 + $0x2e0] sm:$0xff] }
  0xbb   : > { %1278 = vmatmul.f32.gmra.mxu0 %v3503_v60  ;;  %1299 = vmatmul.f32.gmra.mxu1 %v3501_v9  ;;  %v488_v21 = vsel %vm461_vm0, %v485_v37, %v487_v48  ;;  %v1147_v37 = vld [vmem:[%s4644_s5 + $0x160] sm:$0xff]  ;;  %v4780_v10 = vrot.slane %v3434_v51, 7 }
  0xbc   : > { %1329 = vmatmul.f32.gmra.mxu2 %v3508_v24  ;;  %2031 = vmatpush.msra.mxu3 %v1195_v5  ;;  %v490_v33 = vsel %vm461_vm0, %v487_v48, %v489_v47  ;;  %v784_v48 = vrot.slane %v3031_v31, 1  ;;  %v4784_v5 = vrot.slane %v2911_v25, 7 }
  0xbd   : > { %1920 = vmatpush.msra.mxu2 %v1147_v37  ;;  %v508_v4 = vsel %vm461_vm0, %v4780_v10, %v4779_v59  ;;  %v783_v37 = vrot.slane %v2915_v27, 1  ;;  %v4785_v59 = vrot.slane %v2859_v61, 7 }
  0xbf   : > { %v476_v10 = vsel %vm461_vm0, %v473_v29, %v4785_v59  ;;  %v1144_v29 = vld [vmem:[%s4644_s5 + $0x148] sm:$0xff] }
  0xc0   : > { %v743_v32 = vpop.permute.xlu0 %742  ;;  %v658_v14 = vpop.permute.xlu1 %657  ;;  %1921 = vmatpush.msra.mxu2 %v1144_v29 }
  0xc1   : > { %v3534_v40 = vmul.f32 %v743_v32, %v522_v36  ;;  %v3536_v38 = vmul.f32 %v658_v14, %v488_v21  ;;  %v524_v36 = vsel %vm461_vm0, %v521_v20, %v523_v28  ;;  %v3556_v14 = vmul.f32 %v663_v63, %v490_v33  ;;  %v1243_v20 = vld [vmem:[%s4644_s5 + $0x460] sm:$0xff]  ;;  %v1242_v28 = vld [vmem:[%s4644_s5 + $0x458] sm:$0xff] }
  0xc2   : > { %2142 = vmatpush.msra.mxu0 %v1243_v20  ;;  %1807 = vmatpush.msra.mxu1 %v1242_v28  ;;  %v668_v63 = vpop.permute.xlu2 %667  ;;  %v492_v33 = vsel %vm461_vm0, %v489_v47, %v4784_v5  ;;  %v786_v20 = vrot.slane %v3127_v35, 1  ;;  %v1192_v47 = vld [vmem:[%s4644_s5 + $0x2c8] sm:$0xff] }
  0xc3   : > { %4777 = vst [vmem:[#allocation26_spill] sm:$0xff] %v3534_v40  ;;  %1281 = vmatmul.f32.gmra.mxu0 %v3532_v49  ;;  %1302 = vmatmul.f32.gmra.mxu1 %v3536_v38  ;;  %v1240_v5 = vld [vmem:[%s4644_s5 + $0x448] sm:$0xff] }
  0xc4   : > { %4778 = vst [vmem:[#allocation27_spill] sm:$0xff] %v3536_v38  ;;  %1353 = vmatmul.f32.gmra.mxu3 %v3534_v40  ;;  %2143 = vmatpush.msra.mxu0 %v1240_v5  ;;  %v1237_v5 = vld [vmem:[%s4644_s5 + $0x430] sm:$0xff] }
  0xc5   : > { %4781 = vst [vmem:[#allocation28_spill] sm:$0xff] %v3556_v14  ;;  %2032 = vmatpush.msra.mxu3 %v1192_v47 }
  0xc6   : > { %2144 = vmatpush.msra.mxu0 %v1237_v5 }
  0xc8   : > { %v708_v21 = vpop.permute.xlu0 %707  ;;  %v748_v32 = vpop.permute.xlu1 %747 }
  0xc9   : > { %v3558_v40 = vmul.f32 %v708_v21, %v508_v4  ;;  %v3560_v0 = vmul.f32 %v748_v32, %v524_v36  ;;  %v785_v4 = vsel %vm782_vm1, %v783_v37, %v784_v48  ;;  %v3580_v32 = vmul.f32 %v668_v63, %v492_v33  ;;  %v1239_v33 = vld [vmem:[%s4644_s5 + $0x440] sm:$0xff] }
  0xca   : > { %v787_v37 = vsel %vm782_vm1, %v784_v48, %v786_v20  ;;  %v788_v48 = vrot.slane %v3169_v16, 1  ;;  %1808 = vmatpush.msra.mxu1 %v1239_v33  ;;  %v929_v29 = vpop.permute.xlu2 %928  ;;  %v1236_v33 = vld [vmem:[%s4644_s5 + $0x428] sm:$0xff] }
  0xcb   : > { %4782 = vst [vmem:[#allocation29_spill] sm:$0xff] %v3558_v40  ;;  %1305 = vmatmul.f32.gmra.mxu1 %v3556_v14  ;;  %1332 = vmatmul.f32.gmra.mxu2 %v3558_v40 }
  0xcc   : > { %4783 = vst [vmem:[#allocation30_spill] sm:$0xff] %v3560_v0  ;;  %1355 = vmatmul.f32.gmra.mxu3 %v3560_v0  ;;  %1809 = vmatpush.msra.mxu1 %v1236_v33  ;;  %v796_v33 = vrot.slane %v2859_v61, 1 }
  0xd0   : > { %v628_v36 = vpop.permute.xlu0 %627  ;;  %v914_v21 = vpop.permute.xlu1 %913 }
  0xd1   : > { %v3582_v0 = vmul.f32 %v628_v36, %v476_v10  ;;  %v3584_v11 = vmul.f32 %v914_v21, %v785_v4  ;;  %v789_v10 = vsel %vm782_vm1, %v786_v20, %v788_v48  ;;  %v790_v36 = vrot.slane %v3348_v46, 1  ;;  %v1141_v21 = vld [vmem:[%s4644_s5 + $0x130] sm:$0xff] }
  0xd2   : > { %v1189_v20 = vld [vmem:[%s4644_s5 + $0x2b0] sm:$0xff]  ;;  %1922 = vmatpush.msra.mxu2 %v1141_v21  ;;  %v1138_v21 = vld [vmem:[%s4644_s5 + $0x118] sm:$0xff] }
  0xd3   : > { %4786 = vst [vmem:[#allocation31_spill] sm:$0xff] %v3582_v0  ;;  %1284 = vmatmul.f32.gmra.mxu0 %v3582_v0  ;;  %1308 = vmatmul.f32.gmra.mxu1 %v3580_v32  ;;  %v791_v47 = vsel %vm782_vm1, %v788_v48, %v790_v36 }
  0xd4   : > { %1485 = vmatmul.f32.vlgmr.msrb.gmra.mxu2 %v3584_v11  ;;  %1596 = vmatmul.f32.vlgmr.msrb.gmra.mxu3 %v2986_v7 }
  0xd5   : > { %2033 = vmatpush.msra.mxu3 %v1189_v20  ;;  %v1186_v20 = vld [vmem:[%s4644_s5 + $0x298] sm:$0xff]  ;;  %1923 = vmatpush.msra.mxu2 %v1138_v21  ;;  %v1233_v21 = vld [vmem:[%s4644_s5 + $0x410] sm:$0xff] }
  0xd6   : > { %1810 = vmatpush.msra.mxu1 %v1233_v21 }
  0xd7   : > { %2034 = vmatpush.msra.mxu3 %v1186_v20 }
  0xd8   : > { %v919_v28 = vpop.permute.xlu0 %918  ;;  %v924_v59 = vpop.permute.xlu1 %923 }
  0xd9   : > { %v3598_v63 = vmul.f32 %v919_v28, %v787_v37  ;;  %v3612_v4 = vmul.f32 %v924_v59, %v789_v10  ;;  %v3626_v37 = vmul.f32 %v929_v29, %v791_v47  ;;  %v792_v28 = vrot.slane %v3439_v55, 1 }
  0xdb   : > { %1374 = vmatmul.f32.vlgmr.msrb.gmra.mxu1 %v2915_v27  ;;  %1709 = vmatmul.f32.vlgmr.msrb.gmra.mxu0 %v2915_v27  ;;  %v793_v59 = vsel %vm782_vm1, %v790_v36, %v792_v28  ;;  %v794_v36 = vrot.slane %v3475_v41, 1 }
  0xdc   : > { %1488 = vmatmul.f32.gmra.mxu2 %v3598_v63  ;;  %1599 = vmatmul.f32.gmra.mxu3 %v3133_v42 }
  0xdd   : > { %v795_v47 = vsel %vm782_vm1, %v792_v28, %v794_v36  ;;  %v797_v28 = vsel %vm782_vm1, %v794_v36, %v796_v33  ;;  %v1135_v36 = vld [vmem:[%s4644_s5 + $0x100] sm:$0xff] }
  0xde   : > { %1924 = vmatpush.msra.mxu2 %v1135_v36  ;;  %v1231_v36 = vld [vmem:[%s4644_s5 + $0x400] sm:$0xff] }
  0xe0   : > { %v934_v48 = vpop.permute.xlu0 %933  ;;  %v939_v29 = vpop.permute.xlu1 %938 }
  0xe1   : > { %v3640_v10 = vmul.f32 %v934_v48, %v793_v59  ;;  %v3654_v5 = vmul.f32 %v939_v29, %v795_v47  ;;  %v1234_v48 = vld [vmem:[%s4644_s5 + $0x418] sm:$0xff]  ;;  %v944_v59 = vpop.permute.xlu2 %943  ;;  %v798_v29 = vrot.slane %v2861_v62, 1  ;;  %v1183_v47 = vld [vmem:[%s4644_s5 + $0x280] sm:$0xff] }
  0xe2   : > { %2145 = vmatpush.msra.mxu0 %v1234_v48  ;;  %v3668_v20 = vmul.f32 %v944_v59, %v797_v28  ;;  %2035 = vmatpush.msra.mxu3 %v1183_v47  ;;  %v800_v47 = vrot.slane %v3103_v22, 1 }
  0xe3   : > { %1377 = vmatmul.f32.gmra.mxu1 %v3031_v31  ;;  %1712 = vmatmul.f32.gmra.mxu0 %v3031_v31  ;;  %v799_v59 = vsel %vm782_vm1, %v796_v33, %v798_v29 }
  0xe4   : > { %1491 = vmatmul.f32.gmra.mxu2 %v3612_v4  ;;  %1602 = vmatmul.f32.gmra.mxu3 %v3216_v57  ;;  %4787 = vst [vmem:[#allocation32_spill] sm:$0xff] %v3668_v20 }
  0xe5   : > { %2146 = vmatpush.msra.mxu0 %v1231_v36 }
  0xe8   : > { %v949_v48 = vpop.permute.xlu0 %948 }
  0xe9   : > { %v3682_v28 = vmul.f32 %v949_v48, %v799_v59  ;;  %v954_v48 = vpop.permute.xlu1 %953  ;;  %v801_v59 = vsel %vm782_vm1, %v798_v29, %v800_v47  ;;  %v1132_v29 = vld [vmem:[%s4644_s5 + $0xe8] sm:$0xff] }
  0xea   : > { %1925 = vmatpush.msra.mxu2 %v1132_v29 }
  0xeb   : > { %1380 = vmatmul.f32.gmra.mxu1 %v3127_v35  ;;  %1715 = vmatmul.f32.gmra.mxu0 %v3127_v35  ;;  %4788 = vst [vmem:[#allocation33_spill] sm:$0xff] %v3682_v28 }
  0xec   : > { %1494 = vmatmul.f32.gmra.mxu2 %v3626_v37  ;;  %1605 = vmatmul.f32.gmra.mxu3 %v3291_v17 }
  0xef   : > { %v3707_v36 = vpop.f32.mrf.mxu1 }
  0xf0   : > { %4793 = vst [vmem:[#allocation38_spill] sm:$0xff] %v3707_v36  ;;  %v964_v29 = vpop.permute.xlu0 %963 }
  0xf3   : > { %1383 = vmatmul.f32.gmra.mxu1 %v3169_v16  ;;  %1718 = vmatmul.f32.gmra.mxu0 %v3169_v16 }
  0xf4   : > { %1497 = vmatmul.f32.gmra.mxu2 %v3640_v10  ;;  %1608 = vmatmul.f32.gmra.mxu3 %v3443_v15 }
  0xfb   : > { %1386 = vmatmul.f32.gmra.mxu1 %v3348_v46  ;;  %1721 = vmatmul.f32.gmra.mxu0 %v3348_v46 }
  0xfc   : > { %1500 = vmatmul.f32.gmra.mxu2 %v3654_v5  ;;  %1611 = vmatmul.f32.gmra.mxu3 %v3503_v60 }
 0x103   : > { %1389 = vmatmul.f32.gmra.mxu1 %v3439_v55  ;;  %1724 = vmatmul.f32.gmra.mxu0 %v3439_v55 }
 0x104   : > { %1503 = vmatmul.f32.gmra.mxu2 %v3668_v20  ;;  %1614 = vmatmul.f32.gmra.mxu3 %v3532_v49  ;;  %v3700_v20 = vpop.f32.mrf.mxu0 }
 0x105   : > { %4791 = vst [vmem:[#allocation36_spill] sm:$0xff] %v3700_v20 }
 0x106   : > { %v3686_v21 = vpop.f32.mrf.mxu2 }
 0x107   : > { %4789 = vst [vmem:[#allocation34_spill] sm:$0xff] %v3686_v21  ;;  %v1230_v21 = vld [vmem:[%s4644_s5 + $0x3f8] sm:$0xff] }
 0x108   : > { %1811 = vmatpush.msra.mxu1 %v1230_v21  ;;  %v1180_v21 = vld [vmem:[%s4644_s5 + $0x268] sm:$0xff] }
 0x109   : > { %2036 = vmatpush.msra.mxu3 %v1180_v21  ;;  %v1227_v21 = vld [vmem:[%s4644_s5 + $0x3e0] sm:$0xff] }
 0x10a   : > { %1812 = vmatpush.msra.mxu1 %v1227_v21  ;;  %v969_v21 = vpop.permute.xlu1 %968 }
 0x10b   : > { %1392 = vmatmul.f32.gmra.mxu1 %v3475_v41  ;;  %1727 = vmatmul.f32.gmra.mxu0 %v3475_v41 }
 0x10c   : > { %1506 = vmatmul.f32.gmra.mxu2 %v3682_v28  ;;  %1617 = vmatmul.f32.gmra.mxu3 %v3582_v0  ;;  %v3702_v28 = vmul.f32 %v954_v48, %v801_v59  ;;  %v802_v0 = vrot.slane %v3209_v19, 1  ;;  %v959_v59 = vpop.permute.xlu2 %958 }
 0x10e   : > { %v3694_v33 = vpop.f32.mrf.mxu3  ;;  %4792 = vst [vmem:[#allocation37_spill] sm:$0xff] %v3702_v28  ;;  %v3717_v48 = vpop.f32.mrf.mxu2 }
 0x10f   : > { %4790 = vst [vmem:[#allocation35_spill] sm:$0xff] %v3694_v33  ;;  %v803_v33 = vsel %vm782_vm1, %v800_v47, %v802_v0  ;;  %v1228_v47 = vld [vmem:[%s4644_s5 + $0x3e8] sm:$0xff] }
 0x110   : > { %4794 = vst [vmem:[#allocation39_spill] sm:$0xff] %v3717_v48  ;;  %v3722_v20 = vpop.f32.mrf.mxu0  ;;  %2147 = vmatpush.msra.mxu0 %v1228_v47  ;;  %v1177_v47 = vld [vmem:[%s4644_s5 + $0x250] sm:$0xff] }
 0x111   : > { %4796 = vst [vmem:[#allocation41_spill] sm:$0xff] %v3722_v20  ;;  %2037 = vmatpush.msra.mxu3 %v1177_v47  ;;  %v808_v20 = vrot.slane %v3498_v45, 1  ;;  %v1224_v47 = vld [vmem:[%s4644_s5 + $0x3c8] sm:$0xff] }
 0x112   : > { %1813 = vmatpush.msra.mxu1 %v1224_v47  ;;  %v979_v47 = vpop.permute.xlu0 %978 }
 0x113   : > { %1395 = vmatmul.f32.gmra.mxu1 %v2859_v61  ;;  %1730 = vmatmul.f32.gmra.mxu0 %v2859_v61 }
 0x114   : > { %1509 = vmatmul.f32.gmra.mxu2 %v3702_v28  ;;  %1620 = vmatmul.f32.gmra.mxu3 %v2887_v13  ;;  %v3724_v28 = vmul.f32 %v959_v59, %v803_v33  ;;  %v804_v13 = vrot.slane %v3257_v30, 1 }
 0x116   : > { %v805_v33 = vsel %vm782_vm1, %v802_v0, %v804_v13  ;;  %v3740_v59 = vpop.f32.mrf.mxu2  ;;  %v1129_v0 = vld [vmem:[%s4644_s5 + $0xd0] sm:$0xff] }
 0x117   : > { %v3720_v36 = vpop.f32.mrf.mxu3  ;;  %4798 = vst [vmem:[#allocation43_spill] sm:$0xff] %v3740_v59  ;;  %v3744_v48 = vmul.f32 %v964_v29, %v805_v33  ;;  %v806_v29 = vrot.slane %v3420_v18, 1  ;;  %1926 = vmatpush.msra.mxu2 %v1129_v0 }
 0x118   : > { %4795 = vst [vmem:[#allocation40_spill] sm:$0xff] %v3720_v36  ;;  %v3729_v61 = vpop.f32.mrf.mxu1 }
 0x119   : > { %4797 = vst [vmem:[#allocation42_spill] sm:$0xff] %v3729_v61  ;;  %v3746_v61 = vpop.f32.mrf.mxu0  ;;  %v809_v0 = vsel %vm782_vm1, %v806_v29, %v808_v20 }
 0x11a   : > { %4800 = vst [vmem:[#allocation45_spill] sm:$0xff] %v3744_v48 }
 0x11b   : > { %1398 = vmatmul.f32.gmra.mxu1 %v2861_v62  ;;  %1733 = vmatmul.f32.gmra.mxu0 %v2861_v62  ;;  %4801 = vst [vmem:[#allocation46_spill] sm:$0xff] %v3746_v61 }
 0x11c   : > { %1512 = vmatmul.f32.gmra.mxu2 %v3724_v28  ;;  %1623 = vmatmul.f32.gmra.mxu3 %v3214_v8 }
 0x11f   : > { %v3742_v36 = vpop.f32.mrf.mxu3  ;;  %v3764_v61 = vpop.f32.mrf.mxu2 }
 0x120   : > { %4799 = vst [vmem:[#allocation44_spill] sm:$0xff] %v3742_v36  ;;  %v3759_v33 = vpop.f32.mrf.mxu1  ;;  %v807_v36 = vsel %vm782_vm1, %v804_v13, %v806_v29  ;;  %v1225_v13 = vld [vmem:[%s4644_s5 + $0x3d0] sm:$0xff]  ;;  %v1126_v29 = vld [vmem:[%s4644_s5 + $0xb8] sm:$0xff] }
 0x121   : > { %4802 = vst [vmem:[#allocation47_spill] sm:$0xff] %v3759_v33  ;;  %v3762_v59 = vmul.f32 %v969_v21, %v807_v36  ;;  %2148 = vmatpush.msra.mxu0 %v1225_v13  ;;  %v974_v36 = vpop.permute.xlu2 %973  ;;  %v810_v33 = vrot.slane %v3524_v53, 1  ;;  %1927 = vmatpush.msra.mxu2 %v1126_v29  ;;  %v1222_v29 = vld [vmem:[%s4644_s5 + $0x3b8] sm:$0xff] }
 0x122   : > { %4803 = vst [vmem:[#allocation48_spill] sm:$0xff] %v3764_v61 }
 0x123   : > { %1401 = vmatmul.f32.gmra.mxu1 %v3103_v22  ;;  %1736 = vmatmul.f32.gmra.mxu0 %v3103_v22 }
 0x124   : > { %1515 = vmatmul.f32.gmra.mxu2 %v3744_v48  ;;  %1626 = vmatmul.f32.gmra.mxu3 %v3296_v23  ;;  %v3771_v23 = vpop.f32.mrf.mxu0 }
 0x125   : > { %4805 = vst [vmem:[#allocation50_spill] sm:$0xff] %v3771_v23  ;;  %2149 = vmatpush.msra.mxu0 %v1222_v29 }
 0x127   : > { %v3767_v48 = vpop.f32.mrf.mxu3 }
 0x128   : > { %4804 = vst [vmem:[#allocation49_spill] sm:$0xff] %v3767_v48  ;;  %v3782_v21 = vpop.f32.mrf.mxu1  ;;  %v3784_v48 = vmul.f32 %v974_v36, %v809_v0  ;;  %v1174_v36 = vld [vmem:[%s4644_s5 + $0x238] sm:$0xff] }
 0x129   : > { %4806 = vst [vmem:[#allocation51_spill] sm:$0xff] %v3782_v21  ;;  %2038 = vmatpush.msra.mxu3 %v1174_v36 }
 0x12b   : > { %1404 = vmatmul.f32.gmra.mxu1 %v3209_v19  ;;  %1739 = vmatmul.f32.gmra.mxu0 %v3209_v19 }
 0x12c   : > { %1518 = vmatmul.f32.gmra.mxu2 %v3762_v59  ;;  %1629 = vmatmul.f32.gmra.mxu3 %v3367_v34 }
 0x12e   : > { %v3786_v61 = vpop.f32.mrf.mxu2 }
 0x12f   : > { %4807 = vst [vmem:[#allocation52_spill] sm:$0xff] %v3786_v61  ;;  %v3801_v0 = vpop.f32.mrf.mxu3  ;;  %v811_v61 = vsel %vm782_vm1, %v808_v20, %v810_v33  ;;  %v812_v20 = vrot.slane %v2911_v25, 1 }
 0x130   : > { %v3791_v13 = vpop.f32.mrf.mxu0  ;;  %4809 = vst [vmem:[#allocation54_spill] sm:$0xff] %v3801_v0 }
 0x131   : > { %4808 = vst [vmem:[#allocation53_spill] sm:$0xff] %v3791_v13  ;;  %v3806_v13 = vmul.f32 %v979_v47, %v811_v61  ;;  %v984_v61 = vpop.permute.xlu1 %983  ;;  %v813_v47 = vsel %vm782_vm1, %v810_v33, %v812_v20  ;;  %v1123_v33 = vld [vmem:[%s4644_s5 + $0xa0] sm:$0xff] }
 0x132   : > { %1928 = vmatpush.msra.mxu2 %v1123_v33  ;;  %v994_v33 = vpop.permute.xlu0 %993 }
 0x133   : > { %1407 = vmatmul.f32.gmra.mxu1 %v3257_v30  ;;  %1742 = vmatmul.f32.gmra.mxu0 %v3257_v30  ;;  %4811 = vst [vmem:[#allocation56_spill] sm:$0xff] %v3806_v13 }
 0x134   : > { %1521 = vmatmul.f32.gmra.mxu2 %v3784_v48  ;;  %1632 = vmatmul.f32.gmra.mxu3 %v3501_v9 }
 0x136   : > { %v3810_v23 = vpop.f32.mrf.mxu2 }
 0x137   : > { %4812 = vst [vmem:[#allocation57_spill] sm:$0xff] %v3810_v23  ;;  %v3821_v0 = vpop.f32.mrf.mxu3  ;;  %v1221_v23 = vld [vmem:[%s4644_s5 + $0x3b0] sm:$0xff] }
 0x138   : > { %v3804_v21 = vpop.f32.mrf.mxu1  ;;  %v3818_v36 = vpop.f32.mrf.mxu0  ;;  %4814 = vst [vmem:[#allocation59_spill] sm:$0xff] %v3821_v0  ;;  %1814 = vmatpush.msra.mxu1 %v1221_v23  ;;  %v1171_v23 = vld [vmem:[%s4644_s5 + $0x220] sm:$0xff] }
 0x139   : > { %4810 = vst [vmem:[#allocation55_spill] sm:$0xff] %v3804_v21  ;;  %2039 = vmatpush.msra.mxu3 %v1171_v23 }
 0x13a   : > { %4813 = vst [vmem:[#allocation58_spill] sm:$0xff] %v3818_v36 }
 0x13b   : > { %1410 = vmatmul.f32.gmra.mxu1 %v3420_v18  ;;  %1745 = vmatmul.f32.gmra.mxu0 %v3420_v18 }
 0x13c   : > { %1524 = vmatmul.f32.gmra.mxu2 %v3806_v13  ;;  %1635 = vmatmul.f32.gmra.mxu3 %v3536_v38  ;;  %v3828_v13 = vmul.f32 %v984_v61, %v813_v47  ;;  %v814_v38 = vrot.slane %v2913_v26, 1  ;;  %v989_v61 = vpop.permute.xlu2 %988 }
 0x13e   : > { %4816 = vst [vmem:[#allocation61_spill] sm:$0xff] %v3828_v13  ;;  %v815_v47 = vsel %vm782_vm1, %v812_v20, %v814_v38 }
 0x13f   : > { %v3841_v29 = vpop.f32.mrf.mxu2 }
 0x140   : > { %v3826_v21 = vpop.f32.mrf.mxu1  ;;  %4817 = vst [vmem:[#allocation62_spill] sm:$0xff] %v3841_v29 }
 0x141   : > { %4815 = vst [vmem:[#allocation60_spill] sm:$0xff] %v3826_v21  ;;  %v3844_v21 = vpop.f32.mrf.mxu0 }
 0x143   : > { %1413 = vmatmul.f32.gmra.mxu1 %v3498_v45  ;;  %1748 = vmatmul.f32.gmra.mxu0 %v3498_v45 }
 0x144   : > { %1527 = vmatmul.f32.gmra.mxu2 %v3828_v13  ;;  %1638 = vmatmul.f32.gmra.mxu3 %v3556_v14  ;;  %v3848_v13 = vmul.f32 %v989_v61, %v815_v47  ;;  %v816_v14 = vrot.slane %v2965_v54, 1  ;;  %v1218_v47 = vld [vmem:[%s4644_s5 + $0x398] sm:$0xff] }
 0x145   : > { %1815 = vmatpush.msra.mxu1 %v1218_v47 }
 0x146   : > { %4819 = vst [vmem:[#allocation64_spill] sm:$0xff] %v3848_v13  ;;  %v817_v23 = vsel %vm782_vm1, %v814_v38, %v816_v14  ;;  %v1120_v38 = vld [vmem:[%s4644_s5 + $0x88] sm:$0xff] }
 0x147   : > { %v1354_v0 = vpop.f32.mrf.mxu3  ;;  %1929 = vmatpush.msra.mxu2 %v1120_v38  ;;  %v1004_v38 = vpop.permute.xlu2 %1003 }
 0x148   : > { %v3846_v36 = vpop.f32.mrf.mxu1  ;;  %v1219_v0 = vld [vmem:[%s4644_s5 + $0x3a0] sm:$0xff] }
 0x149   : > { %4818 = vst [vmem:[#allocation63_spill] sm:$0xff] %v3846_v36  ;;  %2150 = vmatpush.msra.mxu0 %v1219_v0  ;;  %v1168_v0 = vld [vmem:[%s4644_s5 + $0x208] sm:$0xff] }
 0x14a   : > { %2040 = vmatpush.msra.mxu3 %v1168_v0 }
 0x14b   : > { %1416 = vmatmul.f32.gmra.mxu1 %v3524_v53  ;;  %1751 = vmatmul.f32.gmra.mxu0 %v3524_v53 }
 0x14c   : > { %1530 = vmatmul.f32.gmra.mxu2 %v3848_v13  ;;  %1641 = vmatmul.f32.gmra.mxu3 %v3580_v32  ;;  %v3868_v13 = vmul.f32 %v994_v33, %v817_v23  ;;  %v999_v33 = vpop.permute.xlu1 %998 }
 0x14e   : > { %v3858_v20 = vpop.f32.mrf.mxu2  ;;  %4822 = vst [vmem:[#allocation67_spill] sm:$0xff] %v3868_v13 }
 0x14f   : > { %4820 = vst [vmem:[#allocation65_spill] sm:$0xff] %v3858_v20  ;;  %v1356_v61 = vpop.f32.mrf.mxu3 }
 0x150   : > { %v3864_v29 = vpop.f32.mrf.mxu0  ;;  %v3866_v36 = vpop.f32.mrf.mxu1  ;;  %v818_v61 = vrot.slane %v3052_v43, 1 }
 0x151   : > { %4821 = vst [vmem:[#allocation66_spill] sm:$0xff] %v3866_v36 }
 0x152   : > { %v819_v23 = vsel %vm782_vm1, %v816_v14, %v818_v61  ;;  %v1216_v14 = vld [vmem:[%s4644_s5 + $0x388] sm:$0xff] }
 0x153   : > { %1419 = vmatmul.f32.gmra.mxu1 %v2911_v25  ;;  %1754 = vmatmul.f32.gmra.mxu0 %v2911_v25  ;;  %v820_v25 = vrot.slane %v3119_v12, 1 }
 0x154   : > { %1533 = vmatmul.f32.gmra.mxu2 %v3868_v13  ;;  %1644 = vmatmul.f32.gmra.mxu3 %v2984_v6  ;;  %v3890_v6 = vmul.f32 %v999_v33, %v819_v23 }
 0x155   : > { %2151 = vmatpush.msra.mxu0 %v1216_v14  ;;  %v821_v0 = vsel %vm782_vm1, %v818_v61, %v820_v25  ;;  %v822_v14 = vrot.slane %v3274_v39, 1  ;;  %v1117_v61 = vld [vmem:[%s4644_s5 + $0x70] sm:$0xff] }
 0x156   : > { %1930 = vmatpush.msra.mxu2 %v1117_v61  ;;  %v824_v61 = vrot.slane %v3363_v56, 1 }
 0x157   : > { %v3882_v47 = vpop.f32.mrf.mxu2  ;;  %v3884_v20 = vpop.f32.mrf.mxu3 }
 0x158   : > { %4823 = vst [vmem:[#allocation68_spill] sm:$0xff] %v3882_v47  ;;  %v3886_v36 = vpop.f32.mrf.mxu1  ;;  %v3888_v13 = vpop.f32.mrf.mxu0  ;;  %v1215_v47 = vld [vmem:[%s4644_s5 + $0x380] sm:$0xff] }
 0x159   : > { %4824 = vst [vmem:[#allocation69_spill] sm:$0xff] %v3884_v20  ;;  %1816 = vmatpush.msra.mxu1 %v1215_v47  ;;  %v1165_v47 = vld [vmem:[%s4644_s5 + $0x1f0] sm:$0xff] }
 0x15a   : > { %4825 = vst [vmem:[#allocation70_spill] sm:$0xff] %v3886_v36  ;;  %v3912_v36 = vmul.f32 %v1004_v38, %v821_v0  ;;  %2041 = vmatpush.msra.mxu3 %v1165_v47  ;;  %v1009_v38 = vpop.permute.xlu0 %1008  ;;  %v823_v0 = vsel %vm782_vm1, %v820_v25, %v822_v14  ;;  %v1213_v25 = vld [vmem:[%s4644_s5 + $0x370] sm:$0xff]  ;;  %v1014_v47 = vpop.permute.xlu1 %1013 }
 0x15b   : > { %4826 = vst [vmem:[#allocation71_spill] sm:$0xff] %v3888_v13  ;;  %1422 = vmatmul.f32.gmra.mxu1 %v2913_v26  ;;  %1757 = vmatmul.f32.gmra.mxu0 %v2913_v26 }
 0x15c   : > { %1536 = vmatmul.f32.gmra.mxu2 %v3890_v6  ;;  %1647 = vmatmul.f32.gmra.mxu3 %v3057_v50  ;;  %4831 = vst [vmem:[#allocation76_spill] sm:$0xff] %v3912_v36 }
 0x15d   : > { %2152 = vmatpush.msra.mxu0 %v1213_v25  ;;  %v826_v25 = vrot.slane %v3434_v51, 1 }
 0x15f   : > { %v3901_v33 = vpop.f32.mrf.mxu2  ;;  %v3903_v23 = vpop.f32.mrf.mxu3 }
 0x160   : > { %4827 = vst [vmem:[#allocation72_spill] sm:$0xff] %v3901_v33  ;;  %v3908_v13 = vpop.f32.mrf.mxu1  ;;  %v3910_v20 = vpop.f32.mrf.mxu0 }
 0x161   : > { %4828 = vst [vmem:[#allocation73_spill] sm:$0xff] %v3903_v23 }
 0x162   : > { %4829 = vst [vmem:[#allocation74_spill] sm:$0xff] %v3908_v13 }
 0x163   : > { %4830 = vst [vmem:[#allocation75_spill] sm:$0xff] %v3910_v20  ;;  %1425 = vmatmul.f32.gmra.mxu1 %v2965_v54  ;;  %1760 = vmatmul.f32.gmra.mxu0 %v2965_v54 }
 0x164   : > { %1539 = vmatmul.f32.gmra.mxu2 %v3912_v36  ;;  %1650 = vmatmul.f32.gmra.mxu3 %v3135_v44  ;;  %v3934_v36 = vmul.f32 %v1009_v38, %v823_v0 }
 0x166   : > { %4835 = vst [vmem:[#allocation80_spill] sm:$0xff] %v3934_v36 }
 0x167   : > { %v3926_v33 = vpop.f32.mrf.mxu2  ;;  %v3928_v20 = vpop.f32.mrf.mxu3 }
 0x168   : > { %4832 = vst [vmem:[#allocation77_spill] sm:$0xff] %v3926_v33  ;;  %v3930_v23 = vpop.f32.mrf.mxu1  ;;  %v3932_v13 = vpop.f32.mrf.mxu0  ;;  %v825_v33 = vsel %vm782_vm1, %v822_v14, %v824_v61  ;;  %v1114_v14 = vld [vmem:[%s4644_s5 + $0x58] sm:$0xff] }
 0x169   : > { %4833 = vst [vmem:[#allocation78_spill] sm:$0xff] %v3930_v23  ;;  %v1212_v23 = vld [vmem:[%s4644_s5 + $0x368] sm:$0xff]  ;;  %1931 = vmatpush.msra.mxu2 %v1114_v14  ;;  %v1024_v14 = vpop.permute.xlu0 %1023 }
 0x16a   : > { %4834 = vst [vmem:[#allocation79_spill] sm:$0xff] %v3932_v13  ;;  %1817 = vmatpush.msra.mxu1 %v1212_v23  ;;  %v3956_v13 = vmul.f32 %v1014_v47, %v825_v33  ;;  %v1162_v23 = vld [vmem:[%s4644_s5 + $0x1d8] sm:$0xff]  ;;  %v1019_v33 = vpop.permute.xlu2 %1018  ;;  %v827_v47 = vsel %vm782_vm1, %v824_v61, %v826_v25 }
 0x16b   : > { %1428 = vmatmul.f32.gmra.mxu1 %v3052_v43  ;;  %1763 = vmatmul.f32.gmra.mxu0 %v3052_v43  ;;  %v1210_v61 = vld [vmem:[%s4644_s5 + $0x358] sm:$0xff] }
 0x16c   : > { %1542 = vmatmul.f32.gmra.mxu2 %v3934_v36  ;;  %1653 = vmatmul.f32.gmra.mxu3 %v3222_v3  ;;  %4840 = vst [vmem:[#allocation85_spill] sm:$0xff] %v3956_v13 }
 0x16d   : > { %2042 = vmatpush.msra.mxu3 %v1162_v23  ;;  %2153 = vmatpush.msra.mxu0 %v1210_v61  ;;  %v1159_v61 = vld [vmem:[%s4644_s5 + $0x1c0] sm:$0xff] }
 0x16f   : > { %v3945_v38 = vpop.f32.mrf.mxu2  ;;  %v3947_v0 = vpop.f32.mrf.mxu3  ;;  %2043 = vmatpush.msra.mxu3 %v1159_v61 }
 0x170   : > { %4836 = vst [vmem:[#allocation81_spill] sm:$0xff] %v3945_v38  ;;  %v3952_v36 = vpop.f32.mrf.mxu1  ;;  %v3954_v3 = vpop.f32.mrf.mxu0 }
 0x171   : > { %4837 = vst [vmem:[#allocation82_spill] sm:$0xff] %v3947_v0  ;;  %v828_v0 = vrot.slane %v2963_v52, 1 }
 0x172   : > { %4838 = vst [vmem:[#allocation83_spill] sm:$0xff] %v3952_v36 }
 0x173   : > { %4839 = vst [vmem:[#allocation84_spill] sm:$0xff] %v3954_v3  ;;  %1431 = vmatmul.f32.gmra.mxu1 %v3119_v12  ;;  %1766 = vmatmul.f32.gmra.mxu0 %v3119_v12  ;;  %v3978_v3 = vmul.f32 %v1019_v33, %v827_v47  ;;  %v829_v23 = vsel %vm782_vm1, %v826_v25, %v828_v0  ;;  %v1111_v25 = vld [vmem:[%s4644_s5 + $0x40] sm:$0xff] }
 0x174   : > { %1545 = vmatmul.f32.gmra.mxu2 %v3956_v13  ;;  %1656 = vmatmul.f32.gmra.mxu3 %v3369_v1 }
 0x175   : > { %4845 = vst [vmem:[#allocation90_spill] sm:$0xff] %v3978_v3  ;;  %1932 = vmatpush.msra.mxu2 %v1111_v25 }
 0x177   : > { %v3970_v38 = vpop.f32.mrf.mxu2  ;;  %v3972_v36 = vpop.f32.mrf.mxu3 }
 0x178   : > { %4841 = vst [vmem:[#allocation86_spill] sm:$0xff] %v3970_v38  ;;  %v3974_v13 = vpop.f32.mrf.mxu1  ;;  %v3976_v1 = vpop.f32.mrf.mxu0  ;;  %v1209_v38 = vld [vmem:[%s4644_s5 + $0x350] sm:$0xff] }
 0x179   : > { %4842 = vst [vmem:[#allocation87_spill] sm:$0xff] %v3972_v36  ;;  %1818 = vmatpush.msra.mxu1 %v1209_v38  ;;  %v830_v38 = vrot.slane %v2981_v2, 1 }
 0x17a   : > { %4843 = vst [vmem:[#allocation88_spill] sm:$0xff] %v3974_v13 }
 0x17b   : > { %4844 = vst [vmem:[#allocation89_spill] sm:$0xff] %v3976_v1  ;;  %1434 = vmatmul.f32.gmra.mxu1 %v3274_v39  ;;  %1769 = vmatmul.f32.gmra.mxu0 %v3274_v39 }
 0x17c   : > { %1548 = vmatmul.f32.gmra.mxu2 %v3978_v3  ;;  %1659 = vmatmul.f32.gmra.mxu3 %v3445_v58  ;;  %v4000_v58 = vmul.f32 %v1024_v14, %v829_v23  ;;  %v1029_v14 = vpop.permute.xlu1 %1028  ;;  %v831_v23 = vsel %vm782_vm1, %v828_v0, %v830_v38  ;;  %v1207_v0 = vld [vmem:[%s4644_s5 + $0x340] sm:$0xff] }
 0x17d   : > { %2154 = vmatpush.msra.mxu0 %v1207_v0 }
 0x17e   : > { %4850 = vst [vmem:[#allocation95_spill] sm:$0xff] %v4000_v58 }
 0x17f   : > { %v3989_v33 = vpop.f32.mrf.mxu2  ;;  %v3991_v47 = vpop.f32.mrf.mxu3 }
 0x180   : > { %4846 = vst [vmem:[#allocation91_spill] sm:$0xff] %v3989_v33  ;;  %v3996_v13 = vpop.f32.mrf.mxu1  ;;  %v3998_v3 = vpop.f32.mrf.mxu0 }
 0x181   : > { %4847 = vst [vmem:[#allocation92_spill] sm:$0xff] %v3991_v47  ;;  %v4019_v47 = vmul.f32 %v1029_v14, %v831_v23 }
 0x182   : > { %4848 = vst [vmem:[#allocation93_spill] sm:$0xff] %v3996_v13 }
 0x183   : > { %4849 = vst [vmem:[#allocation94_spill] sm:$0xff] %v3998_v3  ;;  %1437 = vmatmul.f32.gmra.mxu1 %v3363_v56  ;;  %1772 = vmatmul.f32.gmra.mxu0 %v3363_v56  ;;  %v4852_v56 = vld [vmem:[#allocation7_spill] sm:$0xff] }
 0x184   : > { %1551 = vmatmul.f32.gmra.mxu2 %v4000_v58  ;;  %1662 = vmatmul.f32.gmra.mxu3 %v3508_v24  ;;  %4851 = vst [vmem:[#allocation96_spill] sm:$0xff] %v4019_v47  ;;  %v832_v1 = vrot.slane %v4852_v56, 1 }
 0x187   : > { %v1504_v33 = vpop.f32.mrf.mxu2  ;;  %v4014_v13 = vpop.f32.mrf.mxu3 }
 0x188   : > { %v1393_v58 = vpop.f32.mrf.mxu1  ;;  %v4016_v24 = vpop.f32.mrf.mxu0 }
 0x189   : > { %v1394_v3 = vadd.f32 %v1393_v58, %v3844_v21  ;;  %v1034_v58 = vpop.permute.xlu2 %1033  ;;  %v833_v21 = vsel %vm782_vm1, %v830_v38, %v832_v1  ;;  %v4858_v38 = vld [vmem:[#allocation8_spill] sm:$0xff] }
 0x18b   : > { %v4022_v36 = vadd.f32 %v1504_v33, %v1394_v3  ;;  %1440 = vmatmul.f32.gmra.mxu1 %v3434_v51  ;;  %1775 = vmatmul.f32.gmra.mxu0 %v3434_v51  ;;  %v1206_v3 = vld [vmem:[%s4644_s5 + $0x338] sm:$0xff] }
 0x18c   : > { %1554 = vmatmul.f32.gmra.mxu2 %v4019_v47  ;;  %1665 = vmatmul.f32.gmra.mxu3 %v3558_v40  ;;  %v4856_v47 = vld [vmem:[#allocation9_spill] sm:$0xff] }
 0x18d   : > { %4853 = vst [vmem:[#allocation97_spill] sm:$0xff] %v4022_v36  ;;  %1819 = vmatpush.msra.mxu1 %v1206_v3  ;;  %v4040_v36 = vmul.f32 %v1034_v58, %v833_v21  ;;  %v834_v0 = vrot.slane %v4856_v47, 1  ;;  %v1108_v3 = vld [vmem:[%s4644_s5 + $0x28] sm:$0xff]  ;;  %v1039_v58 = vpop.permute.xlu0 %1038 }
 0x18e   : > { %1933 = vmatpush.msra.mxu2 %v1108_v3  ;;  %v4864_v3 = vld [vmem:[#allocation10_spill] sm:$0xff] }
 0x18f   : > { %v1507_v25 = vpop.f32.mrf.mxu2  ;;  %v4032_v61 = vpop.f32.mrf.mxu3  ;;  %4855 = vst [vmem:[#allocation99_spill] sm:$0xff] %v4040_v36  ;;  %v835_v21 = vsel %vm782_vm1, %v832_v1, %v834_v0  ;;  %v1204_v1 = vld [vmem:[%s4644_s5 + $0x328] sm:$0xff] }
 0x190   : > { %v1396_v33 = vpop.f32.mrf.mxu1  ;;  %v4037_v14 = vpop.f32.mrf.mxu0  ;;  %2155 = vmatpush.msra.mxu0 %v1204_v1 }
 0x191   : > { %4854 = vst [vmem:[#allocation98_spill] sm:$0xff] %v4037_v14  ;;  %v1397_v23 = vadd.f32 %v1396_v33, %v3864_v29  ;;  %v1156_v29 = vld [vmem:[%s4644_s5 + $0x1a8] sm:$0xff] }
 0x192   : > { %2044 = vmatpush.msra.mxu3 %v1156_v29  ;;  %v4865_v29 = vld [vmem:[#allocation11_spill] sm:$0xff] }
 0x193   : > { %v4043_v40 = vadd.f32 %v1507_v25, %v1397_v23  ;;  %1443 = vmatmul.f32.gmra.mxu1 %v2963_v52  ;;  %1778 = vmatmul.f32.gmra.mxu0 %v2963_v52 }
 0x194   : > { %1557 = vmatmul.f32.gmra.mxu2 %v4040_v36  ;;  %1668 = vmatmul.f32.gmra.mxu3 %v4858_v38  ;;  %v4064_v36 = vmul.f32 %v1039_v58, %v835_v21  ;;  %v4871_v38 = vld [vmem:[#allocation14_spill] sm:$0xff] }
 0x195   : > { %4857 = vst [vmem:[#allocation100_spill] sm:$0xff] %v4043_v40  ;;  %v838_v1 = vrot.slane %v4871_v38, 1 }
 0x196   : > { %4863 = vst [vmem:[#allocation105_spill] sm:$0xff] %v4064_v36 }
 0x197   : > { %v4056_v25 = vpop.f32.mrf.mxu2  ;;  %v4058_v33 = vpop.f32.mrf.mxu3 }
 0x198   : > { %4859 = vst [vmem:[#allocation101_spill] sm:$0xff] %v4056_v25  ;;  %v4060_v23 = vpop.f32.mrf.mxu1  ;;  %v4062_v40 = vpop.f32.mrf.mxu0  ;;  %v836_v25 = vrot.slane %v4865_v29, 1 }
 0x199   : > { %4860 = vst [vmem:[#allocation102_spill] sm:$0xff] %v4058_v33 }
 0x19a   : > { %4861 = vst [vmem:[#allocation103_spill] sm:$0xff] %v4060_v23  ;;  %v1044_v23 = vpop.permute.xlu1 %1043 }
 0x19b   : > { %4862 = vst [vmem:[#allocation104_spill] sm:$0xff] %v4062_v40  ;;  %1446 = vmatmul.f32.gmra.mxu1 %v2981_v2  ;;  %1781 = vmatmul.f32.gmra.mxu0 %v2981_v2  ;;  %v837_v40 = vsel %vm782_vm1, %v834_v0, %v836_v25  ;;  %v4872_v0 = vld [vmem:[#allocation12_spill] sm:$0xff] }
 0x19c   : > { %1560 = vmatmul.f32.gmra.mxu2 %v4064_v36  ;;  %1671 = vmatmul.f32.gmra.mxu3 %v4864_v3  ;;  %v1203_v36 = vld [vmem:[%s4644_s5 + $0x320] sm:$0xff]  ;;  %v4086_v2 = vmul.f32 %v1044_v23, %v837_v40  ;;  %v1049_v40 = vpop.permute.xlu2 %1048  ;;  %v839_v23 = vsel %vm782_vm1, %v836_v25, %v838_v1  ;;  %v1201_v25 = vld [vmem:[%s4644_s5 + $0x310] sm:$0xff] }
 0x19d   : > { %1820 = vmatpush.msra.mxu1 %v1203_v36  ;;  %v1153_v36 = vld [vmem:[%s4644_s5 + $0x190] sm:$0xff]  ;;  %2156 = vmatpush.msra.mxu0 %v1201_v25  ;;  %v4886_v25 = vld [vmem:[#allocation23_spill] sm:$0xff] }
 0x19e   : > { %4870 = vst [vmem:[#allocation110_spill] sm:$0xff] %v4086_v2  ;;  %2045 = vmatpush.msra.mxu3 %v1153_v36  ;;  %v1054_v36 = vpop.permute.xlu0 %1053 }
 0x19f   : > { %v4075_v58 = vpop.f32.mrf.mxu2  ;;  %v4077_v21 = vpop.f32.mrf.mxu3 }
 0x1a0   : > { %4866 = vst [vmem:[#allocation106_spill] sm:$0xff] %v4075_v58  ;;  %v4082_v33 = vpop.f32.mrf.mxu1  ;;  %v4084_v3 = vpop.f32.mrf.mxu0  ;;  %v1105_v58 = vld [vmem:[%s4644_s5 + $0x10] sm:$0xff] }
 0x1a1   : > { %4867 = vst [vmem:[#allocation107_spill] sm:$0xff] %v4077_v21  ;;  %1934 = vmatpush.msra.mxu2 %v1105_v58  ;;  %v4108_v21 = vmul.f32 %v1049_v40, %v839_v23  ;;  %v4879_v58 = vld [vmem:[#allocation15_spill] sm:$0xff] }
 0x1a2   : > { %4868 = vst [vmem:[#allocation108_spill] sm:$0xff] %v4082_v33 }
 0x1a3   : > { %4869 = vst [vmem:[#allocation109_spill] sm:$0xff] %v4084_v3  ;;  %1449 = vmatmul.f32.gmra.mxu1 %v4852_v56  ;;  %1784 = vmatmul.f32.gmra.mxu0 %v4852_v56  ;;  %v4878_v56 = vld [vmem:[#allocation17_spill] sm:$0xff] }
 0x1a4   : > { %1563 = vmatmul.f32.gmra.mxu2 %v4086_v2  ;;  %1674 = vmatmul.f32.gmra.mxu3 %v4872_v0  ;;  %4877 = vst [vmem:[#allocation114_spill] sm:$0xff] %v4108_v21  ;;  %v840_v14 = vrot.slane %v4878_v56, 1 }
 0x1a7   : > { %v4100_v33 = vpop.f32.mrf.mxu2  ;;  %v4102_v3 = vpop.f32.mrf.mxu3 }
 0x1a8   : > { %4873 = vst [vmem:[#allocation14_spill] sm:$0xff] %v4100_v33  ;;  %v4104_v2 = vpop.f32.mrf.mxu1  ;;  %v4106_v0 = vpop.f32.mrf.mxu0  ;;  %v841_v33 = vsel %vm782_vm1, %v838_v1, %v840_v14  ;;  %v4885_v1 = vld [vmem:[#allocation20_spill] sm:$0xff] }
 0x1a9   : > { %4874 = vst [vmem:[#allocation111_spill] sm:$0xff] %v4102_v3 }
 0x1aa   : > { %4875 = vst [vmem:[#allocation112_spill] sm:$0xff] %v4104_v2  ;;  %v1200_v2 = vld [vmem:[%s4644_s5 + $0x308] sm:$0xff] }
 0x1ab   : > { %4876 = vst [vmem:[#allocation113_spill] sm:$0xff] %v4106_v0  ;;  %1452 = vmatmul.f32.gmra.mxu1 %v4856_v47  ;;  %1787 = vmatmul.f32.gmra.mxu0 %v4856_v47 }
 0x1ac   : > { %1566 = vmatmul.f32.gmra.mxu2 %v4108_v21  ;;  %1677 = vmatmul.f32.gmra.mxu3 %v4879_v58  ;;  %v4130_v58 = vmul.f32 %v1054_v36, %v841_v33 }
 0x1ad   : > { %1821 = vmatpush.msra.mxu1 %v1200_v2 }
 0x1ae   : > { %4884 = vst [vmem:[#allocation118_spill] sm:$0xff] %v4130_v58 }
 0x1af   : > { %v4119_v40 = vpop.f32.mrf.mxu2  ;;  %v4121_v23 = vpop.f32.mrf.mxu3 }
 0x1b0   : > { %4880 = vst [vmem:[#allocation17_spill] sm:$0xff] %v4119_v40  ;;  %v4126_v0 = vpop.f32.mrf.mxu1  ;;  %v4128_v21 = vpop.f32.mrf.mxu0  ;;  %v842_v40 = vrot.slane %v4886_v25, 1 }
 0x1b1   : > { %4881 = vst [vmem:[#allocation115_spill] sm:$0xff] %v4121_v23  ;;  %v1059_v23 = vpop.permute.xlu1 %1058 }
 0x1b2   : > { %4882 = vst [vmem:[#allocation116_spill] sm:$0xff] %v4126_v0  ;;  %v843_v3 = vsel %vm782_vm1, %v840_v14, %v842_v40  ;;  %v1064_v14 = vpop.permute.xlu2 %1063 }
 0x1b3   : > { %4883 = vst [vmem:[#allocation117_spill] sm:$0xff] %v4128_v21  ;;  %1455 = vmatmul.f32.gmra.mxu1 %v4865_v29  ;;  %1790 = vmatmul.f32.gmra.mxu0 %v4865_v29  ;;  %v4146_v36 = vmul.f32 %v1059_v23, %v843_v3  ;;  %v4892_v21 = vld [vmem:[#allocation25_spill] sm:$0xff] }
 0x1b4   : > { %1569 = vmatmul.f32.gmra.mxu2 %v4130_v58  ;;  %1680 = vmatmul.f32.gmra.mxu3 %v4885_v1  ;;  %v844_v29 = vrot.slane %v4892_v21, 1  ;;  %v4893_v58 = vld [vmem:[#allocation22_spill] sm:$0xff] }
 0x1b5   : > { %4891 = vst [vmem:[#allocation121_spill] sm:$0xff] %v4146_v36 }
 0x1b7   : > { %v4138_v47 = vpop.f32.mrf.mxu2  ;;  %v4140_v0 = vpop.f32.mrf.mxu3 }
 0x1b8   : > { %4887 = vst [vmem:[#allocation20_spill] sm:$0xff] %v4138_v47  ;;  %v4142_v2 = vpop.f32.mrf.mxu1  ;;  %v4144_v33 = vpop.f32.mrf.mxu0  ;;  %v845_v47 = vsel %vm782_vm1, %v842_v40, %v844_v29  ;;  %v878_v40 = vsel %vm782_vm1, %v844_v29, 0.0 }
 0x1b9   : > { %4888 = vst [vmem:[#allocation23_spill] sm:$0xff] %v4140_v0  ;;  %v4162_v23 = vmul.f32 %v1064_v14, %v845_v47  ;;  %v4903_v14 = vld [vmem:[#allocation30_spill] sm:$0xff] }
 0x1ba   : > { %4889 = vst [vmem:[#allocation119_spill] sm:$0xff] %v4142_v2 }
 0x1bb   : > { %4890 = vst [vmem:[#allocation120_spill] sm:$0xff] %v4144_v33  ;;  %1458 = vmatmul.f32.gmra.mxu1 %v4871_v38  ;;  %1793 = vmatmul.f32.gmra.mxu0 %v4871_v38 }
 0x1bc   : > { %1572 = vmatmul.f32.gmra.mxu2 %v4146_v36  ;;  %1683 = vmatmul.f32.gmra.mxu3 %v4893_v58  ;;  %4898 = vst [vmem:[#allocation125_spill] sm:$0xff] %v4162_v23  ;;  %v4899_v36 = vld [vmem:[#allocation26_spill] sm:$0xff]  ;;  %v1069_v58 = vpop.permute.xlu0 %1068 }
 0x1bd   : > { %v4177_v47 = vmul.f32 %v1069_v58, %v878_v40 }
 0x1bf   : > { %v4154_v0 = vpop.f32.mrf.mxu2  ;;  %v4156_v2 = vpop.f32.mrf.mxu3 }
 0x1c0   : > { %4894 = vst [vmem:[#allocation25_spill] sm:$0xff] %v4154_v0  ;;  %v4158_v33 = vpop.f32.mrf.mxu1  ;;  %v4160_v3 = vpop.f32.mrf.mxu0 }
 0x1c1   : > { %4895 = vst [vmem:[#allocation122_spill] sm:$0xff] %v4156_v2 }
 0x1c2   : > { %4896 = vst [vmem:[#allocation123_spill] sm:$0xff] %v4158_v33 }
 0x1c3   : > { %4897 = vst [vmem:[#allocation124_spill] sm:$0xff] %v4160_v3  ;;  %1461 = vmatmul.f32.gmra.mxu1 %v4878_v56  ;;  %1796 = vmatmul.f32.gmra.mxu0 %v4878_v56 }
 0x1c4   : > { %1575 = vmatmul.f32.gmra.mxu2 %v4162_v23  ;;  %1686 = vmatmul.f32.gmra.mxu3 %v4899_v36 }
 0x1c7   : > { %v4169_v0 = vpop.f32.mrf.mxu2  ;;  %v4171_v2 = vpop.f32.mrf.mxu3 }
 0x1c8   : > { %4900 = vst [vmem:[#allocation26_spill] sm:$0xff] %v4169_v0  ;;  %v4173_v33 = vpop.f32.mrf.mxu1  ;;  %v4175_v3 = vpop.f32.mrf.mxu0 }
 0x1c9   : > { %4901 = vst [vmem:[#allocation126_spill] sm:$0xff] %v4171_v2 }
 0x1ca   : > { %4902 = vst [vmem:[#allocation127_spill] sm:$0xff] %v4173_v33 }
 0x1cb   : > { %1464 = vmatmul.f32.gmra.mxu1 %v4886_v25  ;;  %1799 = vmatmul.f32.gmra.mxu0 %v4886_v25 }
 0x1cc   : > { %1577 = vmatmul.f32.gmra.mxu2 %v4177_v47  ;;  %1689 = vmatmul.f32.gmra.mxu3 %v4903_v14 }
 0x1cf   : > { %v4183_v23 = vpop.f32.mrf.mxu2  ;;  %v4185_v29 = vpop.f32.mrf.mxu3 }
 0x1d0   : > { %4904 = vst [vmem:[#allocation30_spill] sm:$0xff] %v4183_v23  ;;  %v4187_v0 = vpop.f32.mrf.mxu1  ;;  %v4189_v2 = vpop.f32.mrf.mxu0 }
 0x1d1   : > { %4905 = vst [vmem:[#allocation128_spill] sm:$0xff] %v4187_v0 }
 0x1d3   : > { %1466 = vmatmul.f32.gmra.mxu1 %v4892_v21  ;;  %1802 = vmatmul.f32.gmra.mxu0 %v4892_v21 }
 0x1d4   : > { %1935 = vmatmul.f32.vlgmr.msra.gmra.mxu2 %v2986_v7  ;;  %2046 = vmatmul.f32.vlgmr.msra.gmra.mxu3 %v2915_v27 }
 0x1d7   : > { %v4195_v58 = vpop.f32.mrf.mxu2  ;;  %v4197_v40 = vpop.f32.mrf.mxu3 }
 0x1d8   : > { %4906 = vst [vmem:[#allocation129_spill] sm:$0xff] %v4195_v58  ;;  %v4199_v33 = vpop.f32.mrf.mxu1  ;;  %v4201_v23 = vpop.f32.mrf.mxu0 }
 0x1db   : > { %1822 = vmatmul.f32.vlgmr.msra.gmra.mxu1 %v3584_v11  ;;  %2157 = vmatmul.f32.vlgmr.msra.gmra.mxu0 %v3584_v11 }
 0x1dc   : > { %1937 = vmatmul.f32.gmra.mxu2 %v3133_v42  ;;  %2048 = vmatmul.f32.gmra.mxu3 %v3031_v31 }
 0x1df   : > { %v4207_v0 = vpop.f32.mrf.mxu2  ;;  %v4209_v7 = vpop.f32.mrf.mxu3 }
 0x1e0   : > { %4907 = vst [vmem:[#allocation130_spill] sm:$0xff] %v4207_v0  ;;  %v4211_v27 = vpop.f32.mrf.mxu1  ;;  %v4213_v58 = vpop.f32.mrf.mxu0 }
 0x1e3   : > { %1825 = vmatmul.f32.gmra.mxu1 %v3598_v63  ;;  %2159 = vmatmul.f32.gmra.mxu0 %v3598_v63 }
 0x1e4   : > { %1939 = vmatmul.f32.gmra.mxu2 %v3216_v57  ;;  %2050 = vmatmul.f32.gmra.mxu3 %v3127_v35 }
 0x1e7   : > { %v4219_v11 = vpop.f32.mrf.mxu2  ;;  %v4221_v42 = vpop.f32.mrf.mxu3 }
 0x1e8   : > { %4908 = vst [vmem:[#allocation131_spill] sm:$0xff] %v4219_v11  ;;  %v4223_v31 = vpop.f32.mrf.mxu1  ;;  %v4225_v0 = vpop.f32.mrf.mxu0 }
 0x1eb   : > { %1828 = vmatmul.f32.gmra.mxu1 %v3612_v4  ;;  %2161 = vmatmul.f32.gmra.mxu0 %v3612_v4 }
 0x1ec   : > { %1942 = vmatmul.f32.gmra.mxu2 %v3291_v17  ;;  %2053 = vmatmul.f32.gmra.mxu3 %v3169_v16 }
 0x1ef   : > { %v4231_v63 = vpop.f32.mrf.mxu2  ;;  %v4233_v57 = vpop.f32.mrf.mxu3 }
 0x1f0   : > { %4909 = vst [vmem:[#allocation132_spill] sm:$0xff] %v4231_v63  ;;  %v4235_v35 = vpop.f32.mrf.mxu1  ;;  %v4237_v11 = vpop.f32.mrf.mxu0 }
 0x1f3   : > { %1831 = vmatmul.f32.gmra.mxu1 %v3626_v37  ;;  %2164 = vmatmul.f32.gmra.mxu0 %v3626_v37 }
 0x1f4   : > { %1945 = vmatmul.f32.gmra.mxu2 %v3443_v15  ;;  %2056 = vmatmul.f32.gmra.mxu3 %v3348_v46 }
 0x1f7   : > { %v4243_v4 = vpop.f32.mrf.mxu2  ;;  %v4245_v17 = vpop.f32.mrf.mxu3 }
 0x1f8   : > { %4910 = vst [vmem:[#allocation133_spill] sm:$0xff] %v4243_v4  ;;  %v4247_v16 = vpop.f32.mrf.mxu1  ;;  %v4249_v63 = vpop.f32.mrf.mxu0 }
 0x1f9   : > { %4911 = vst [vmem:[#allocation134_spill] sm:$0xff] %v4247_v16  ;;  %v4918_v16 = vld [vmem:[#allocation32_spill] sm:$0xff] }
 0x1fb   : > { %1834 = vmatmul.f32.gmra.mxu1 %v3640_v10  ;;  %2167 = vmatmul.f32.gmra.mxu0 %v3640_v10 }
 0x1fc   : > { %1948 = vmatmul.f32.gmra.mxu2 %v3503_v60  ;;  %2059 = vmatmul.f32.gmra.mxu3 %v3439_v55 }
 0x1ff   : > { %v4255_v37 = vpop.f32.mrf.mxu2  ;;  %v4257_v15 = vpop.f32.mrf.mxu3 }
 0x200   : > { %4912 = vst [vmem:[#allocation135_spill] sm:$0xff] %v4255_v37  ;;  %v4259_v46 = vpop.f32.mrf.mxu1  ;;  %v4261_v4 = vpop.f32.mrf.mxu0 }
 0x201   : > { %4913 = vst [vmem:[#allocation136_spill] sm:$0xff] %v4259_v46  ;;  %v4919_v46 = vld [vmem:[#allocation31_spill] sm:$0xff] }
 0x202   : > { %4914 = vst [vmem:[#allocation137_spill] sm:$0xff] %v4261_v4  ;;  %v4920_v4 = vld [vmem:[#allocation2_spill] sm:$0xff] }
 0x203   : > { %1837 = vmatmul.f32.gmra.mxu1 %v3654_v5  ;;  %2170 = vmatmul.f32.gmra.mxu0 %v3654_v5 }
 0x204   : > { %1951 = vmatmul.f32.gmra.mxu2 %v3532_v49  ;;  %2062 = vmatmul.f32.gmra.mxu3 %v3475_v41 }
 0x207   : > { %v4267_v10 = vpop.f32.mrf.mxu2  ;;  %v4269_v60 = vpop.f32.mrf.mxu3 }
 0x208   : > { %4915 = vst [vmem:[#allocation138_spill] sm:$0xff] %v4267_v10  ;;  %v4271_v55 = vpop.f32.mrf.mxu1  ;;  %v4273_v37 = vpop.f32.mrf.mxu0 }
 0x209   : > { %4916 = vst [vmem:[#allocation139_spill] sm:$0xff] %v4269_v60  ;;  %v4923_v60 = vld [vmem:[#allocation33_spill] sm:$0xff] }
 0x20a   : > { %4917 = vst [vmem:[#allocation140_spill] sm:$0xff] %v4271_v55  ;;  %v4924_v55 = vld [vmem:[#allocation3_spill] sm:$0xff] }
 0x20b   : > { %1840 = vmatmul.f32.gmra.mxu1 %v4918_v16  ;;  %2173 = vmatmul.f32.gmra.mxu0 %v4918_v16 }
 0x20c   : > { %1954 = vmatmul.f32.gmra.mxu2 %v4919_v46  ;;  %2065 = vmatmul.f32.gmra.mxu3 %v4920_v4 }
 0x20f   : > { %v4279_v5 = vpop.f32.mrf.mxu2  ;;  %v4281_v49 = vpop.f32.mrf.mxu3 }
 0x210   : > { %4921 = vst [vmem:[#allocation32_spill] sm:$0xff] %v4279_v5  ;;  %v4283_v41 = vpop.f32.mrf.mxu1  ;;  %v4285_v10 = vpop.f32.mrf.mxu0 }
 0x211   : > { %4922 = vst [vmem:[#allocation31_spill] sm:$0xff] %v4281_v49  ;;  %v4927_v49 = vld [vmem:[#allocation37_spill] sm:$0xff] }
 0x213   : > { %1843 = vmatmul.f32.gmra.mxu1 %v4923_v60  ;;  %2176 = vmatmul.f32.gmra.mxu0 %v4923_v60 }
 0x214   : > { %1957 = vmatmul.f32.gmra.mxu2 %v4924_v55  ;;  %2068 = vmatmul.f32.gmra.mxu3 %v2861_v62 }
 0x217   : > { %v4291_v16 = vpop.f32.mrf.mxu2  ;;  %v4293_v46 = vpop.f32.mrf.mxu3 }
 0x218   : > { %4925 = vst [vmem:[#allocation2_spill] sm:$0xff] %v4291_v16  ;;  %v4295_v4 = vpop.f32.mrf.mxu1  ;;  %v4297_v5 = vpop.f32.mrf.mxu0 }
 0x219   : > { %4926 = vst [vmem:[#allocation33_spill] sm:$0xff] %v4295_v4  ;;  %v4931_v4 = vld [vmem:[#allocation16_spill] sm:$0xff] }
 0x21b   : > { %1846 = vmatmul.f32.gmra.mxu1 %v4927_v49  ;;  %2179 = vmatmul.f32.gmra.mxu0 %v4927_v49 }
 0x21c   : > { %1960 = vmatmul.f32.gmra.mxu2 %v3214_v8  ;;  %2071 = vmatmul.f32.gmra.mxu3 %v3103_v22 }
 0x21f   : > { %v4303_v60 = vpop.f32.mrf.mxu2  ;;  %v4305_v55 = vpop.f32.mrf.mxu3 }
 0x220   : > { %4928 = vst [vmem:[#allocation3_spill] sm:$0xff] %v4303_v60  ;;  %v4307_v62 = vpop.f32.mrf.mxu1  ;;  %v4309_v16 = vpop.f32.mrf.mxu0 }
 0x221   : > { %4929 = vst [vmem:[#allocation37_spill] sm:$0xff] %v4305_v55  ;;  %v4934_v55 = vld [vmem:[#allocation45_spill] sm:$0xff] }
 0x222   : > { %4930 = vst [vmem:[#allocation141_spill] sm:$0xff] %v4307_v62  ;;  %v4989_v62 = vld [vmem:[#allocation90_spill] sm:$0xff] }
 0x223   : > { %1849 = vmatmul.f32.gmra.mxu1 %v3724_v28  ;;  %2182 = vmatmul.f32.gmra.mxu0 %v3724_v28 }
 0x224   : > { %1963 = vmatmul.f32.gmra.mxu2 %v4931_v4  ;;  %2074 = vmatmul.f32.gmra.mxu3 %v3209_v19 }
 0x227   : > { %v4315_v49 = vpop.f32.mrf.mxu2  ;;  %v4317_v8 = vpop.f32.mrf.mxu3 }
 0x228   : > { %4932 = vst [vmem:[#allocation16_spill] sm:$0xff] %v4315_v49  ;;  %v4319_v22 = vpop.f32.mrf.mxu1  ;;  %v4321_v60 = vpop.f32.mrf.mxu0 }
 0x229   : > { %4933 = vst [vmem:[#allocation142_spill] sm:$0xff] %v4319_v22 }
 0x22b   : > { %1852 = vmatmul.f32.gmra.mxu1 %v4934_v55  ;;  %2185 = vmatmul.f32.gmra.mxu0 %v4934_v55 }
 0x22c   : > { %1966 = vmatmul.f32.gmra.mxu2 %v3367_v34  ;;  %2077 = vmatmul.f32.gmra.mxu3 %v3257_v30 }
 0x22f   : > { %v4327_v28 = vpop.f32.mrf.mxu2  ;;  %v4329_v4 = vpop.f32.mrf.mxu3 }
 0x230   : > { %4935 = vst [vmem:[#allocation45_spill] sm:$0xff] %v4327_v28  ;;  %v4331_v19 = vpop.f32.mrf.mxu1  ;;  %v4333_v49 = vpop.f32.mrf.mxu0 }
 0x231   : > { %4936 = vst [vmem:[#allocation143_spill] sm:$0xff] %v4329_v4 }
 0x232   : > { %4937 = vst [vmem:[#allocation144_spill] sm:$0xff] %v4331_v19  ;;  %v4943_v19 = vld [vmem:[#allocation27_spill] sm:$0xff] }
 0x233   : > { %4938 = vst [vmem:[#allocation145_spill] sm:$0xff] %v4333_v49  ;;  %1855 = vmatmul.f32.gmra.mxu1 %v3762_v59  ;;  %2188 = vmatmul.f32.gmra.mxu0 %v3762_v59 }
 0x234   : > { %1969 = vmatmul.f32.gmra.mxu2 %v3501_v9  ;;  %2080 = vmatmul.f32.gmra.mxu3 %v3420_v18 }
 0x237   : > { %v4339_v55 = vpop.f32.mrf.mxu2  ;;  %v4341_v34 = vpop.f32.mrf.mxu3 }
 0x238   : > { %4939 = vst [vmem:[#allocation146_spill] sm:$0xff] %v4339_v55  ;;  %v4343_v30 = vpop.f32.mrf.mxu1  ;;  %v4345_v28 = vpop.f32.mrf.mxu0 }
 0x239   : > { %4940 = vst [vmem:[#allocation147_spill] sm:$0xff] %v4341_v34  ;;  %v4948_v34 = vld [vmem:[#allocation56_spill] sm:$0xff] }
 0x23a   : > { %4941 = vst [vmem:[#allocation148_spill] sm:$0xff] %v4343_v30  ;;  %v4949_v30 = vld [vmem:[#allocation28_spill] sm:$0xff] }
 0x23b   : > { %4942 = vst [vmem:[#allocation149_spill] sm:$0xff] %v4345_v28  ;;  %1858 = vmatmul.f32.gmra.mxu1 %v3784_v48  ;;  %2191 = vmatmul.f32.gmra.mxu0 %v3784_v48 }
 0x23c   : > { %1972 = vmatmul.f32.gmra.mxu2 %v4943_v19  ;;  %2083 = vmatmul.f32.gmra.mxu3 %v3498_v45 }
 0x23f   : > { %v4351_v59 = vpop.f32.mrf.mxu2  ;;  %v4353_v9 = vpop.f32.mrf.mxu3 }
 0x240   : > { %4944 = vst [vmem:[#allocation27_spill] sm:$0xff] %v4351_v59  ;;  %v4355_v18 = vpop.f32.mrf.mxu1  ;;  %v4357_v55 = vpop.f32.mrf.mxu0  ;;  %v4952_v59 = vld [vmem:[#allocation61_spill] sm:$0xff] }
 0x241   : > { %4945 = vst [vmem:[#allocation150_spill] sm:$0xff] %v4353_v9 }
 0x242   : > { %4946 = vst [vmem:[#allocation151_spill] sm:$0xff] %v4355_v18  ;;  %v4953_v18 = vld [vmem:[#allocation4_spill] sm:$0xff] }
 0x243   : > { %4947 = vst [vmem:[#allocation152_spill] sm:$0xff] %v4357_v55  ;;  %1861 = vmatmul.f32.gmra.mxu1 %v4948_v34  ;;  %2194 = vmatmul.f32.gmra.mxu0 %v4948_v34 }
 0x244   : > { %1975 = vmatmul.f32.gmra.mxu2 %v4949_v30  ;;  %2086 = vmatmul.f32.gmra.mxu3 %v3524_v53  ;;  %v4956_v53 = vld [vmem:[#allocation64_spill] sm:$0xff] }
 0x247   : > { %v1576_v48 = vpop.f32.mrf.mxu2  ;;  %v4363_v19 = vpop.f32.mrf.mxu3 }
 0x248   : > { %4950 = vst [vmem:[#allocation56_spill] sm:$0xff] %v4363_v19  ;;  %v1465_v45 = vpop.f32.mrf.mxu1  ;;  %v4365_v28 = vpop.f32.mrf.mxu0  ;;  %v4957_v48 = vld [vmem:[#allocation6_spill] sm:$0xff]  ;;  %v4958_v19 = vld [vmem:[#allocation67_spill] sm:$0xff] }
 0x249   : > { %4951 = vst [vmem:[#allocation28_spill] sm:$0xff] %v4365_v28 }
 0x24b   : > { %1864 = vmatmul.f32.gmra.mxu1 %v4952_v59  ;;  %2197 = vmatmul.f32.gmra.mxu0 %v4952_v59 }
 0x24c   : > { %1978 = vmatmul.f32.gmra.mxu2 %v3580_v32  ;;  %2089 = vmatmul.f32.gmra.mxu3 %v4953_v18 }
 0x24f   : > { %v1578_v55 = vpop.f32.mrf.mxu2  ;;  %v4371_v34 = vpop.f32.mrf.mxu3 }
 0x250   : > { %4954 = vst [vmem:[#allocation61_spill] sm:$0xff] %v4371_v34  ;;  %v1467_v30 = vpop.f32.mrf.mxu1  ;;  %v4373_v9 = vpop.f32.mrf.mxu0 }
 0x251   : > { %4955 = vst [vmem:[#allocation4_spill] sm:$0xff] %v4373_v9 }
 0x253   : > { %1867 = vmatmul.f32.gmra.mxu1 %v4956_v53  ;;  %2200 = vmatmul.f32.gmra.mxu0 %v4956_v53 }
 0x254   : > { %1981 = vmatmul.f32.gmra.mxu2 %v4957_v48  ;;  %2092 = vmatmul.f32.gmra.mxu3 %v2913_v26  ;;  %v4959_v26 = vld [vmem:[#allocation36_spill] sm:$0xff]  ;;  %v4960_v48 = vld [vmem:[#allocation70_spill] sm:$0xff] }
 0x257   : > { %v1936_v45 = vpop.f32.mrf.mxu2  ;;  %v2047_v59 = vpop.f32.mrf.mxu3 }
 0x258   : > { %v1823_v28 = vpop.f32.mrf.mxu1  ;;  %v2158_v32 = vpop.f32.mrf.mxu0 }
 0x259   : > { %v4962_v32 = vld [vmem:[#allocation69_spill] sm:$0xff] }
 0x25b   : > { %1870 = vmatmul.f32.gmra.mxu1 %v4958_v19  ;;  %2203 = vmatmul.f32.gmra.mxu0 %v4958_v19  ;;  %v1376_v19 = vadd.f32 %v4960_v48, %v4959_v26  ;;  %v4966_v48 = vld [vmem:[#allocation13_spill] sm:$0xff] }
 0x25c   : > { %1984 = vmatmul.f32.gmra.mxu2 %v3057_v50  ;;  %2095 = vmatmul.f32.gmra.mxu3 %v2965_v54  ;;  %v4961_v50 = vld [vmem:[#allocation79_spill] sm:$0xff] }
 0x25d   : > { %v1717_v45 = vadd.f32 %v4961_v50, %v3928_v20  ;;  %v4965_v20 = vld [vmem:[#allocation76_spill] sm:$0xff] }
 0x25f   : > { %v1938_v55 = vpop.f32.mrf.mxu2  ;;  %v2049_v18 = vpop.f32.mrf.mxu3 }
 0x260   : > { %v1826_v30 = vpop.f32.mrf.mxu1  ;;  %v2160_v53 = vpop.f32.mrf.mxu0  ;;  %v4963_v55 = vld [vmem:[#allocation71_spill] sm:$0xff] }
 0x261   : > { %v1711_v18 = vadd.f32 %v4963_v55, %v4962_v32 }
 0x263   : > { %1873 = vmatmul.f32.gmra.mxu1 %v3890_v6  ;;  %2206 = vmatmul.f32.gmra.mxu0 %v3890_v6  ;;  %v4964_v6 = vld [vmem:[#allocation68_spill] sm:$0xff] }
 0x264   : > { %1987 = vmatmul.f32.gmra.mxu2 %v3135_v44  ;;  %2098 = vmatmul.f32.gmra.mxu3 %v3052_v43  ;;  %v1487_v22 = vadd.f32 %v4964_v6, %v1376_v19  ;;  %v1824_v44 = vadd.f32 %v1823_v28, %v1711_v18  ;;  %v4968_v28 = vld [vmem:[#allocation74_spill] sm:$0xff] }
 0x267   : > { %v1940_v54 = vpop.f32.mrf.mxu2  ;;  %v2051_v59 = vpop.f32.mrf.mxu3 }
 0x268   : > { %v2052_v53 = vadd.f32 %v2051_v59, %v1940_v54  ;;  %v1829_v9 = vpop.f32.mrf.mxu1  ;;  %v2162_v34 = vpop.f32.mrf.mxu0  ;;  %v4971_v54 = vld [vmem:[#allocation73_spill] sm:$0xff]  ;;  %v4972_v59 = vld [vmem:[#allocation75_spill] sm:$0xff] }
 0x269   : > { %v1830_v49 = vadd.f32 %v1829_v9, %v1717_v45  ;;  %v4967_v9 = vld [vmem:[#allocation41_spill] sm:$0xff]  ;;  %v1714_v32 = vadd.f32 %v4972_v59, %v4971_v54  ;;  %v4977_v54 = vld [vmem:[#allocation78_spill] sm:$0xff] }
 0x26a   : > { %v2163_v4 = vadd.f32 %v2162_v34, %v2052_v53  ;;  %v1379_v34 = vadd.f32 %v4968_v28, %v4967_v9  ;;  %v4973_v53 = vld [vmem:[#allocation72_spill] sm:$0xff] }
 0x26b   : > { %v2254_v43 = vadd.f32 %v1830_v49, %v1487_v22  ;;  %1876 = vmatmul.f32.gmra.mxu1 %v4965_v20  ;;  %2209 = vmatmul.f32.gmra.mxu0 %v4965_v20  ;;  %v4969_v49 = vld [vmem:[#allocation82_spill] sm:$0xff]  ;;  %v4970_v22 = vld [vmem:[#allocation84_spill] sm:$0xff] }
 0x26c   : > { %v2284_v26 = vadd.f32 %v2163_v4, %v1824_v44  ;;  %1990 = vmatmul.f32.gmra.mxu2 %v4966_v48  ;;  %2101 = vmatmul.f32.gmra.mxu3 %v3119_v12  ;;  %v1720_v19 = vadd.f32 %v4970_v22, %v4969_v49  ;;  %v1490_v6 = vadd.f32 %v4973_v53, %v1379_v34  ;;  %v4974_v9 = vld [vmem:[#allocation80_spill] sm:$0xff]  ;;  %v4975_v49 = vld [vmem:[#allocation19_spill] sm:$0xff]  ;;  %v4976_v22 = vld [vmem:[#allocation46_spill] sm:$0xff] }
 0x26d   : > { %v1827_v12 = vadd.f32 %v1826_v30, %v1714_v32  ;;  %v4979_v30 = vld [vmem:[#allocation89_spill] sm:$0xff] }
 0x26e   : > { %2316 = vst [vmem:[%s4399_s15] sm:$0xff] %v2284_v26 }
 0x26f   : > { %v1943_v50 = vpop.f32.mrf.mxu2  ;;  %v2054_v45 = vpop.f32.mrf.mxu3 }
 0x270   : > { %v2055_v55 = vadd.f32 %v2054_v45, %v1943_v50  ;;  %v1832_v18 = vpop.f32.mrf.mxu1  ;;  %v2165_v4 = vpop.f32.mrf.mxu0  ;;  %v1382_v50 = vadd.f32 %v4977_v54, %v4976_v22  ;;  %v2385_v45 = vmul.f32 %v2284_v26, %v2284_v26  ;;  %v4981_v22 = vld [vmem:[#allocation85_spill] sm:$0xff]  ;;  %v4983_v54 = vld [vmem:[#allocation18_spill] sm:$0xff] }
 0x271   : > { %v1833_v44 = vadd.f32 %v1832_v18, %v1720_v19  ;;  %v4978_v19 = vld [vmem:[#allocation87_spill] sm:$0xff] }
 0x272   : > { %v2166_v20 = vadd.f32 %v2165_v4, %v2055_v55  ;;  %v1723_v32 = vadd.f32 %v4979_v30, %v4978_v19  ;;  %v4984_v19 = vld [vmem:[#allocation50_spill] sm:$0xff]  ;;  %v4985_v30 = vld [vmem:[#allocation83_spill] sm:$0xff] }
 0x273   : > { %v2255_v48 = vadd.f32 %v1833_v44, %v1490_v6  ;;  %1879 = vmatmul.f32.gmra.mxu1 %v4974_v9  ;;  %2212 = vmatmul.f32.gmra.mxu0 %v4974_v9 }
 0x274   : > { %v2285_v28 = vadd.f32 %v2166_v20, %v1827_v12  ;;  %1993 = vmatmul.f32.gmra.mxu2 %v4975_v49  ;;  %2104 = vmatmul.f32.gmra.mxu3 %v3274_v39  ;;  %v4980_v12 = vld [vmem:[#allocation77_spill] sm:$0xff] }
 0x275   : > { %v1493_v20 = vadd.f32 %v4980_v12, %v1382_v50  ;;  %v4987_v50 = vld [vmem:[#allocation94_spill] sm:$0xff] }
 0x276   : > { %2317 = vst [vmem:[%s4399_s15 + $0x8] sm:$0xff] %v2285_v28  ;;  %v2348_v59 = vadd.f32 %v2285_v28, %v2284_v26  ;;  %v2386_v34 = vmul.f32 %v2285_v28, %v2285_v28  ;;  %v4982_v28 = vld [vmem:[#allocation21_spill] sm:$0xff] }
 0x277   : > { %v1946_v55 = vpop.f32.mrf.mxu2  ;;  %v2057_v18 = vpop.f32.mrf.mxu3 }
 0x278   : > { %v2417_v4 = vadd.f32 %v2386_v34, %v2385_v45  ;;  %v2058_v53 = vadd.f32 %v2057_v18, %v1946_v55  ;;  %v1835_v6 = vpop.f32.mrf.mxu1  ;;  %v2168_v44 = vpop.f32.mrf.mxu0  ;;  %v1385_v45 = vadd.f32 %v4985_v30, %v4984_v19  ;;  %v4986_v18 = vld [vmem:[#allocation92_spill] sm:$0xff]  ;;  %v4991_v19 = vld [vmem:[#allocation53_spill] sm:$0xff] }
 0x279   : > { %v1836_v39 = vadd.f32 %v1835_v6, %v1723_v32  ;;  %v1726_v32 = vadd.f32 %v4987_v50, %v4986_v18  ;;  %v4992_v30 = vld [vmem:[#allocation88_spill] sm:$0xff] }
 0x27a   : > { %v2169_v9 = vadd.f32 %v2168_v44, %v2058_v53 }
 0x27b   : > { %v2256_v49 = vadd.f32 %v1836_v39, %v1493_v20  ;;  %1882 = vmatmul.f32.gmra.mxu1 %v4981_v22  ;;  %2215 = vmatmul.f32.gmra.mxu0 %v4981_v22  ;;  %v4988_v39 = vld [vmem:[#allocation81_spill] sm:$0xff] }
 0x27c   : > { %v2286_v26 = vadd.f32 %v2254_v43, %v2169_v9  ;;  %1996 = vmatmul.f32.gmra.mxu2 %v4982_v28  ;;  %2107 = vmatmul.f32.gmra.mxu3 %v4983_v54  ;;  %v1496_v9 = vadd.f32 %v4988_v39, %v1385_v45  ;;  %v1729_v45 = vadd.f32 %v4016_v24, %v4014_v13  ;;  %v4996_v24 = vld [vmem:[#allocation58_spill] sm:$0xff]  ;;  %v4997_v13 = vld [vmem:[#allocation93_spill] sm:$0xff] }
 0x27e   : > { %2318 = vst [vmem:[%s4399_s15 + $0x10] sm:$0xff] %v2286_v26  ;;  %v2349_v34 = vadd.f32 %v2348_v59, %v2286_v26  ;;  %v2387_v55 = vmul.f32 %v2286_v26, %v2286_v26  ;;  %v4990_v26 = vld [vmem:[#allocation24_spill] sm:$0xff] }
 0x27f   : > { %v1949_v53 = vpop.f32.mrf.mxu2  ;;  %v2060_v6 = vpop.f32.mrf.mxu3 }
 0x280   : > { %v2418_v44 = vadd.f32 %v2417_v4, %v2387_v55  ;;  %v2061_v12 = vadd.f32 %v2060_v6, %v1949_v53  ;;  %v1838_v20 = vpop.f32.mrf.mxu1  ;;  %v2171_v43 = vpop.f32.mrf.mxu0  ;;  %v1388_v4 = vadd.f32 %v4992_v30, %v4991_v19 }
 0x281   : > { %v1839_v22 = vadd.f32 %v1838_v20, %v1726_v32 }
 0x282   : > { %v2172_v28 = vadd.f32 %v2171_v43, %v2061_v12  ;;  %v4993_v12 = vld [vmem:[#allocation86_spill] sm:$0xff] }
 0x283   : > { %v2257_v54 = vadd.f32 %v1839_v22, %v1496_v9  ;;  %1885 = vmatmul.f32.gmra.mxu1 %v4989_v62  ;;  %2218 = vmatmul.f32.gmra.mxu0 %v4989_v62  ;;  %v1499_v20 = vadd.f32 %v4993_v12, %v1388_v4  ;;  %v4994_v9 = vld [vmem:[#allocation95_spill] sm:$0xff]  ;;  %v4995_v22 = vld [vmem:[#allocation29_spill] sm:$0xff]  ;;  %v5000_v12 = vld [vmem:[#allocation96_spill] sm:$0xff] }
 0x284   : > { %v2287_v59 = vadd.f32 %v2255_v48, %v2172_v28  ;;  %1999 = vmatmul.f32.gmra.mxu2 %v4990_v26  ;;  %2110 = vmatmul.f32.gmra.mxu3 %v3434_v51  ;;  %v4998_v26 = vld [vmem:[#allocation98_spill] sm:$0xff] }
 0x285   : > { %v1732_v19 = vadd.f32 %v4998_v26, %v4032_v61  ;;  %v5002_v61 = vld [vmem:[#allocation5_spill] sm:$0xff] }
 0x286   : > { %2319 = vst [vmem:[%s4399_s15 + $0x18] sm:$0xff] %v2287_v59  ;;  %v2350_v55 = vadd.f32 %v2349_v34, %v2287_v59  ;;  %v2388_v18 = vmul.f32 %v2287_v59, %v2287_v59 }
 0x287   : > { %v1952_v50 = vpop.f32.mrf.mxu2  ;;  %v2063_v32 = vpop.f32.mrf.mxu3 }
 0x288   : > { %v2419_v53 = vadd.f32 %v2418_v44, %v2388_v18  ;;  %v2064_v6 = vadd.f32 %v2063_v32, %v1952_v50  ;;  %v1841_v62 = vpop.f32.mrf.mxu1  ;;  %v2174_v48 = vpop.f32.mrf.mxu0  ;;  %v1391_v44 = vadd.f32 %v4997_v13, %v4996_v24  ;;  %v4999_v32 = vld [vmem:[#allocation91_spill] sm:$0xff] }
 0x289   : > { %v1842_v43 = vadd.f32 %v1841_v62, %v1729_v45 }
 0x28a   : > { %v2175_v51 = vadd.f32 %v2174_v48, %v2064_v6  ;;  %v1502_v6 = vadd.f32 %v4999_v32, %v1391_v44 }
 0x28b   : > { %v2258_v39 = vadd.f32 %v1842_v43, %v1499_v20  ;;  %1888 = vmatmul.f32.gmra.mxu1 %v4994_v9  ;;  %2221 = vmatmul.f32.gmra.mxu0 %v4994_v9  ;;  %v5001_v20 = vld [vmem:[#allocation8_spill] sm:$0xff] }
 0x28c   : > { %v2288_v34 = vadd.f32 %v2256_v49, %v2175_v51  ;;  %2002 = vmatmul.f32.gmra.mxu2 %v4995_v22  ;;  %2113 = vmatmul.f32.gmra.mxu3 %v2963_v52  ;;  %v5003_v51 = vld [vmem:[#allocation102_spill] sm:$0xff]  ;;  %v5004_v9 = vld [vmem:[#allocation104_spill] sm:$0xff] }
 0x28e   : > { %2320 = vst [vmem:[%s4399_s15 + $0x20] sm:$0xff] %v2288_v34  ;;  %v2351_v28 = vadd.f32 %v2350_v55, %v2288_v34  ;;  %v2389_v59 = vmul.f32 %v2288_v34, %v2288_v34  ;;  %v1735_v34 = vadd.f32 %v5004_v9, %v5003_v51 }
 0x28f   : > { %v1955_v30 = vpop.f32.mrf.mxu2  ;;  %v2066_v4 = vpop.f32.mrf.mxu3 }
 0x290   : > { %v2420_v18 = vadd.f32 %v2419_v53, %v2389_v59  ;;  %v2067_v45 = vadd.f32 %v2066_v4, %v1955_v30  ;;  %v1844_v50 = vpop.f32.mrf.mxu1  ;;  %v2177_v49 = vpop.f32.mrf.mxu0 }
 0x291   : > { %v1845_v62 = vadd.f32 %v1844_v50, %v1732_v19  ;;  %v5007_v50 = vld [vmem:[#allocation10_spill] sm:$0xff] }
 0x292   : > { %v2178_v52 = vadd.f32 %v2177_v49, %v2067_v45  ;;  %v5006_v45 = vld [vmem:[#allocation99_spill] sm:$0xff] }
 0x293   : > { %v2259_v48 = vadd.f32 %v1845_v62, %v1502_v6  ;;  %1891 = vmatmul.f32.gmra.mxu1 %v5000_v12  ;;  %2224 = vmatmul.f32.gmra.mxu0 %v5000_v12  ;;  %v5008_v49 = vld [vmem:[#allocation7_spill] sm:$0xff]  ;;  %v5010_v62 = vld [vmem:[#allocation109_spill] sm:$0xff] }
 0x294   : > { %v2289_v55 = vadd.f32 %v2257_v54, %v2178_v52  ;;  %2005 = vmatmul.f32.gmra.mxu2 %v5001_v20  ;;  %2116 = vmatmul.f32.gmra.mxu3 %v5002_v61  ;;  %v5005_v54 = vld [vmem:[#allocation97_spill] sm:$0xff] }
 0x296   : > { %2321 = vst [vmem:[%s4399_s15 + $0x28] sm:$0xff] %v2289_v55  ;;  %v2352_v43 = vadd.f32 %v2351_v28, %v2289_v55  ;;  %v2390_v53 = vmul.f32 %v2289_v55, %v2289_v55 }
 0x297   : > { %v1958_v22 = vpop.f32.mrf.mxu2  ;;  %v2069_v24 = vpop.f32.mrf.mxu3 }
 0x298   : > { %v2421_v13 = vadd.f32 %v2420_v18, %v2390_v53  ;;  %v2070_v44 = vadd.f32 %v2069_v24, %v1958_v22  ;;  %v1847_v59 = vpop.f32.mrf.mxu1  ;;  %v2180_v26 = vpop.f32.mrf.mxu0  ;;  %v5009_v18 = vld [vmem:[#allocation107_spill] sm:$0xff]  ;;  %v5012_v24 = vld [vmem:[#allocation105_spill] sm:$0xff] }
 0x299   : > { %v1848_v19 = vadd.f32 %v1847_v59, %v1735_v34  ;;  %v1738_v52 = vadd.f32 %v5010_v62, %v5009_v18  ;;  %v5014_v59 = vld [vmem:[#allocation9_spill] sm:$0xff] }
 0x29a   : > { %v2181_v30 = vadd.f32 %v2180_v26, %v2070_v44  ;;  %v5013_v44 = vld [vmem:[#allocation12_spill] sm:$0xff]  ;;  %v5015_v26 = vld [vmem:[#allocation38_spill] sm:$0xff] }
 0x29b   : > { %v2260_v4 = vadd.f32 %v1848_v19, %v5005_v54  ;;  %1894 = vmatmul.f32.gmra.mxu1 %v5006_v45  ;;  %2227 = vmatmul.f32.gmra.mxu0 %v5006_v45  ;;  %v5016_v19 = vld [vmem:[#allocation103_spill] sm:$0xff] }
 0x29c   : > { %v2290_v28 = vadd.f32 %v2258_v39, %v2181_v30  ;;  %2008 = vmatmul.f32.gmra.mxu2 %v5007_v50  ;;  %2119 = vmatmul.f32.gmra.mxu3 %v5008_v49  ;;  %v5011_v39 = vld [vmem:[#allocation100_spill] sm:$0xff]  ;;  %v1400_v30 = vadd.f32 %v5016_v19, %v5015_v26  ;;  %v5017_v45 = vld [vmem:[#allocation111_spill] sm:$0xff]  ;;  %v5026_v19 = vld [vmem:[#allocation117_spill] sm:$0xff] }
 0x29d   : > { %v5025_v26 = vld [vmem:[#allocation115_spill] sm:$0xff] }
 0x29e   : > { %2322 = vst [vmem:[%s4399_s15 + $0x30] sm:$0xff] %v2290_v28  ;;  %v2353_v32 = vadd.f32 %v2352_v43, %v2290_v28  ;;  %v2391_v6 = vmul.f32 %v2290_v28, %v2290_v28  ;;  %v5018_v28 = vld [vmem:[#allocation113_spill] sm:$0xff] }
 0x29f   : > { %v1961_v12 = vpop.f32.mrf.mxu2  ;;  %v2072_v55 = vpop.f32.mrf.mxu3  ;;  %v1741_v50 = vadd.f32 %v5018_v28, %v5017_v45 }
 0x2a0   : > { %v2422_v20 = vadd.f32 %v2421_v13, %v2391_v6  ;;  %v2073_v61 = vadd.f32 %v2072_v55, %v1961_v12  ;;  %v1850_v53 = vpop.f32.mrf.mxu1  ;;  %v2183_v51 = vpop.f32.mrf.mxu0  ;;  %v5019_v12 = vld [vmem:[#allocation101_spill] sm:$0xff] }
 0x2a1   : > { %v1851_v9 = vadd.f32 %v1850_v53, %v1738_v52  ;;  %v1511_v55 = vadd.f32 %v5019_v12, %v1400_v30  ;;  %v1744_v30 = vadd.f32 %v5026_v19, %v5025_v26 }
 0x2a2   : > { %v2184_v34 = vadd.f32 %v2183_v51, %v2073_v61 }
 0x2a3   : > { %v2261_v22 = vadd.f32 %v1851_v9, %v5011_v39  ;;  %1897 = vmatmul.f32.gmra.mxu1 %v5012_v24  ;;  %2230 = vmatmul.f32.gmra.mxu0 %v5012_v24  ;;  %v5020_v9 = vld [vmem:[#allocation110_spill] sm:$0xff]  ;;  %v5022_v39 = vld [vmem:[#allocation11_spill] sm:$0xff] }
 0x2a4   : > { %v2291_v43 = vadd.f32 %v2259_v48, %v2184_v34  ;;  %2011 = vmatmul.f32.gmra.mxu2 %v5013_v44  ;;  %2122 = vmatmul.f32.gmra.mxu3 %v5014_v59  ;;  %v5021_v34 = vld [vmem:[#allocation15_spill] sm:$0xff]  ;;  %v5023_v24 = vld [vmem:[#allocation42_spill] sm:$0xff] }
 0x2a6   : > { %2323 = vst [vmem:[%s4399_s15 + $0x38] sm:$0xff] %v2291_v43  ;;  %v2354_v13 = vadd.f32 %v2353_v32, %v2291_v43  ;;  %v2392_v54 = vmul.f32 %v2291_v43, %v2291_v43  ;;  %v5024_v43 = vld [vmem:[#allocation108_spill] sm:$0xff] }
 0x2a7   : > { %v1964_v49 = vpop.f32.mrf.mxu2  ;;  %v2075_v6 = vpop.f32.mrf.mxu3 }
 0x2a8   : > { %v2423_v18 = vadd.f32 %v2422_v20, %v2392_v54  ;;  %v2076_v62 = vadd.f32 %v2075_v6, %v1964_v49  ;;  %v1853_v52 = vpop.f32.mrf.mxu1  ;;  %v2186_v48 = vpop.f32.mrf.mxu0  ;;  %v1403_v20 = vadd.f32 %v5024_v43, %v5023_v24  ;;  %v5027_v6 = vld [vmem:[#allocation106_spill] sm:$0xff] }
 0x2a9   : > { %v1854_v61 = vadd.f32 %v1853_v52, %v1741_v50 }
 0x2aa   : > { %v2187_v53 = vadd.f32 %v2186_v48, %v2076_v62  ;;  %v1514_v62 = vadd.f32 %v5027_v6, %v1403_v20  ;;  %v5037_v6 = vld [vmem:[#allocation116_spill] sm:$0xff] }
 0x2ab   : > { %v2262_v51 = vadd.f32 %v1854_v61, %v1511_v55  ;;  %1900 = vmatmul.f32.gmra.mxu1 %v5020_v9  ;;  %2233 = vmatmul.f32.gmra.mxu0 %v5020_v9  ;;  %v5028_v55 = vld [vmem:[#allocation114_spill] sm:$0xff]  ;;  %v5029_v61 = vld [vmem:[#allocation47_spill] sm:$0xff] }
 0x2ac   : > { %v2292_v32 = vadd.f32 %v2260_v4, %v2187_v53  ;;  %2014 = vmatmul.f32.gmra.mxu2 %v5021_v34  ;;  %2125 = vmatmul.f32.gmra.mxu3 %v5022_v39  ;;  %v5030_v53 = vld [vmem:[#allocation112_spill] sm:$0xff]  ;;  %v5031_v34 = vld [vmem:[#allocation23_spill] sm:$0xff] }
 0x2ad   : > { %v5032_v39 = vld [vmem:[#allocation120_spill] sm:$0xff] }
 0x2ae   : > { %2324 = vst [vmem:[%s4399_s15 + $0x40] sm:$0xff] %v2292_v32  ;;  %v2355_v44 = vadd.f32 %v2354_v13, %v2292_v32  ;;  %v2393_v59 = vmul.f32 %v2292_v32, %v2292_v32  ;;  %v1747_v24 = vadd.f32 %v5032_v39, %v5031_v34  ;;  %v5040_v39 = vld [vmem:[#allocation17_spill] sm:$0xff] }
 0x2af   : > { %v1967_v54 = vpop.f32.mrf.mxu2  ;;  %v2078_v45 = vpop.f32.mrf.mxu3 }
 0x2b0   : > { %v2424_v28 = vadd.f32 %v2423_v18, %v2393_v59  ;;  %v2079_v50 = vadd.f32 %v2078_v45, %v1967_v54  ;;  %v1856_v49 = vpop.f32.mrf.mxu1  ;;  %v2189_v4 = vpop.f32.mrf.mxu0  ;;  %v1406_v18 = vadd.f32 %v5030_v53, %v5029_v61 }
 0x2b1   : > { %v1857_v52 = vadd.f32 %v1856_v49, %v1744_v30  ;;  %v5033_v30 = vld [vmem:[#allocation14_spill] sm:$0xff] }
 0x2b2   : > { %v2190_v48 = vadd.f32 %v2189_v4, %v2079_v50  ;;  %v5034_v50 = vld [vmem:[#allocation118_spill] sm:$0xff]  ;;  %v5036_v4 = vld [vmem:[#allocation51_spill] sm:$0xff] }
 0x2b3   : > { %v2263_v12 = vadd.f32 %v1857_v52, %v1514_v62  ;;  %1903 = vmatmul.f32.gmra.mxu1 %v5028_v55  ;;  %2236 = vmatmul.f32.gmra.mxu0 %v5028_v55  ;;  %v5035_v49 = vld [vmem:[#allocation22_spill] sm:$0xff]  ;;  %v5039_v55 = vld [vmem:[#allocation124_spill] sm:$0xff] }
 0x2b4   : > { %v2293_v13 = vadd.f32 %v2261_v22, %v2190_v48  ;;  %2017 = vmatmul.f32.gmra.mxu2 %v4885_v1  ;;  %2128 = vmatmul.f32.gmra.mxu3 %v4871_v38  ;;  %v1517_v1 = vadd.f32 %v5033_v30, %v1406_v18  ;;  %v5038_v48 = vld [vmem:[#allocation122_spill] sm:$0xff] }
 0x2b6   : > { %2325 = vst [vmem:[%s4399_s15 + $0x48] sm:$0xff] %v2293_v13  ;;  %v2356_v9 = vadd.f32 %v2355_v44, %v2293_v13  ;;  %v2394_v32 = vmul.f32 %v2293_v13, %v2293_v13  ;;  %v1750_v13 = vadd.f32 %v5039_v55, %v5038_v48  ;;  %v5046_v55 = vld [vmem:[#allocation125_spill] sm:$0xff] }
 0x2b7   : > { %v1970_v43 = vpop.f32.mrf.mxu2  ;;  %v2081_v20 = vpop.f32.mrf.mxu3 }
 0x2b8   : > { %v2425_v59 = vadd.f32 %v2424_v28, %v2394_v32  ;;  %v2082_v26 = vadd.f32 %v2081_v20, %v1970_v43  ;;  %v1859_v19 = vpop.f32.mrf.mxu1  ;;  %v2192_v22 = vpop.f32.mrf.mxu0  ;;  %v1409_v28 = vadd.f32 %v5037_v6, %v5036_v4 }
 0x2b9   : > { %v1860_v54 = vadd.f32 %v1859_v19, %v1747_v24  ;;  %v5042_v19 = vld [vmem:[#allocation55_spill] sm:$0xff] }
 0x2ba   : > { %v2193_v38 = vadd.f32 %v2192_v22, %v2082_v26  ;;  %v1520_v24 = vadd.f32 %v5040_v39, %v1409_v28  ;;  %v5041_v26 = vld [vmem:[#allocation121_spill] sm:$0xff]  ;;  %v5043_v22 = vld [vmem:[#allocation119_spill] sm:$0xff]  ;;  %v5045_v28 = vld [vmem:[#allocation20_spill] sm:$0xff] }
 0x2bb   : > { %v2264_v45 = vadd.f32 %v1860_v54, %v1517_v1  ;;  %1906 = vmatmul.f32.gmra.mxu1 %v5034_v50  ;;  %2239 = vmatmul.f32.gmra.mxu0 %v5034_v50  ;;  %v5044_v54 = vld [vmem:[#allocation126_spill] sm:$0xff] }
 0x2bc   : > { %v2294_v44 = vadd.f32 %v2262_v51, %v2193_v38  ;;  %2020 = vmatmul.f32.gmra.mxu2 %v5035_v49  ;;  %2131 = vmatmul.f32.gmra.mxu3 %v4878_v56  ;;  %v1753_v38 = vadd.f32 %v4175_v3, %v5044_v54  ;;  %v5047_v3 = vld [vmem:[#allocation60_spill] sm:$0xff] }
 0x2be   : > { %2326 = vst [vmem:[%s4399_s15 + $0x50] sm:$0xff] %v2294_v44  ;;  %v2357_v62 = vadd.f32 %v2356_v9, %v2294_v44  ;;  %v2395_v52 = vmul.f32 %v2294_v44, %v2294_v44 }
 0x2bf   : > { %v1973_v61 = vpop.f32.mrf.mxu2  ;;  %v2084_v53 = vpop.f32.mrf.mxu3 }
 0x2c0   : > { %v2426_v18 = vadd.f32 %v2425_v59, %v2395_v52  ;;  %v2085_v32 = vadd.f32 %v2084_v53, %v1973_v61  ;;  %v1862_v34 = vpop.f32.mrf.mxu1  ;;  %v2195_v51 = vpop.f32.mrf.mxu0  ;;  %v1412_v59 = vadd.f32 %v5043_v22, %v5042_v19  ;;  %v5050_v22 = vld [vmem:[#allocation63_spill] sm:$0xff] }
 0x2c1   : > { %v1863_v43 = vadd.f32 %v1862_v34, %v1750_v13  ;;  %v5048_v13 = vld [vmem:[#allocation123_spill] sm:$0xff] }
 0x2c2   : > { %v2196_v56 = vadd.f32 %v2195_v51, %v2085_v32  ;;  %v1415_v61 = vadd.f32 %v5048_v13, %v5047_v3  ;;  %v1756_v32 = vadd.f32 %v4189_v2, %v4185_v29 }
 0x2c3   : > { %v2265_v20 = vadd.f32 %v1863_v43, %v1520_v24  ;;  %1909 = vmatmul.f32.gmra.mxu1 %v5041_v26  ;;  %2242 = vmatmul.f32.gmra.mxu0 %v5041_v26 }
 0x2c4   : > { %v2295_v9 = vadd.f32 %v2263_v12, %v2196_v56  ;;  %2023 = vmatmul.f32.gmra.mxu2 %v4899_v36  ;;  %2134 = vmatmul.f32.gmra.mxu3 %v4886_v25  ;;  %v1523_v36 = vadd.f32 %v5045_v28, %v1412_v59  ;;  %v5049_v56 = vld [vmem:[#allocation25_spill] sm:$0xff]  ;;  %v5051_v59 = vld [vmem:[#allocation127_spill] sm:$0xff] }
 0x2c6   : > { %2327 = vst [vmem:[%s4399_s15 + $0x58] sm:$0xff] %v2295_v9  ;;  %v2358_v30 = vadd.f32 %v2357_v62, %v2295_v9  ;;  %v2396_v1 = vmul.f32 %v2295_v9, %v2295_v9 }
 0x2c7   : > { %v1976_v50 = vpop.f32.mrf.mxu2  ;;  %v2087_v44 = vpop.f32.mrf.mxu3 }
 0x2c8   : > { %v2427_v49 = vadd.f32 %v2426_v18, %v2396_v1  ;;  %v2088_v4 = vadd.f32 %v2087_v44, %v1976_v50  ;;  %v1865_v6 = vpop.f32.mrf.mxu1  ;;  %v2198_v12 = vpop.f32.mrf.mxu0  ;;  %v1759_v1 = vadd.f32 %v4201_v23, %v4197_v40  ;;  %v1762_v23 = vadd.f32 %v4213_v58, %v4209_v7 }
 0x2c9   : > { %v1866_v52 = vadd.f32 %v1865_v6, %v1753_v38  ;;  %v5052_v6 = vld [vmem:[#allocation26_spill] sm:$0xff]  ;;  %v1765_v58 = vadd.f32 %v4225_v0, %v4221_v42  ;;  %v1768_v0 = vadd.f32 %v4237_v11, %v4233_v57  ;;  %v1771_v11 = vadd.f32 %v4249_v63, %v4245_v17  ;;  %v5063_v63 = vld [vmem:[#allocation137_spill] sm:$0xff] }
 0x2ca   : > { %v2199_v25 = vadd.f32 %v2198_v12, %v2088_v4  ;;  %v1774_v17 = vadd.f32 %v5063_v63, %v4257_v15  ;;  %v5067_v15 = vld [vmem:[#allocation139_spill] sm:$0xff] }
 0x2cb   : > { %v2266_v48 = vadd.f32 %v1866_v52, %v1523_v36  ;;  %1912 = vmatmul.f32.gmra.mxu1 %v5046_v55  ;;  %2245 = vmatmul.f32.gmra.mxu0 %v5046_v55  ;;  %v5053_v52 = vld [vmem:[#allocation66_spill] sm:$0xff] }
 0x2cc   : > { %v2296_v62 = vadd.f32 %v2264_v45, %v2199_v25  ;;  %2026 = vmatmul.f32.gmra.mxu2 %v4903_v14  ;;  %2137 = vmatmul.f32.gmra.mxu3 %v4892_v21  ;;  %v1526_v14 = vadd.f32 %v5049_v56, %v1415_v61  ;;  %v5054_v25 = vld [vmem:[#allocation128_spill] sm:$0xff] }
 0x2cd   : > { %v1421_v55 = vadd.f32 %v5054_v25, %v5053_v52 }
 0x2ce   : > { %2328 = vst [vmem:[%s4399_s15 + $0x60] sm:$0xff] %v2296_v62  ;;  %v2359_v53 = vadd.f32 %v2358_v30, %v2296_v62  ;;  %v2397_v18 = vmul.f32 %v2296_v62, %v2296_v62  ;;  %v1418_v30 = vadd.f32 %v5051_v59, %v5050_v22 }
 0x2cf   : > { %v1979_v34 = vpop.f32.mrf.mxu2  ;;  %v2090_v51 = vpop.f32.mrf.mxu3 }
 0x2d0   : > { %v2428_v39 = vadd.f32 %v2427_v49, %v2397_v18  ;;  %v2091_v24 = vadd.f32 %v2090_v51, %v1979_v34  ;;  %v1868_v43 = vpop.f32.mrf.mxu1  ;;  %v2201_v45 = vpop.f32.mrf.mxu0  ;;  %v1529_v12 = vadd.f32 %v5052_v6, %v1418_v30  ;;  %v5055_v34 = vld [vmem:[#allocation30_spill] sm:$0xff] }
 0x2d1   : > { %v1869_v26 = vadd.f32 %v1868_v43, %v1756_v32  ;;  %v1532_v51 = vadd.f32 %v5055_v34, %v1421_v55  ;;  %v5061_v34 = vld [vmem:[#allocation131_spill] sm:$0xff] }
 0x2d2   : > { %v2202_v21 = vadd.f32 %v2201_v45, %v2091_v24  ;;  %v5056_v45 = vld [vmem:[#allocation34_spill] sm:$0xff] }
 0x2d3   : > { %v2267_v9 = vadd.f32 %v1869_v26, %v1526_v14  ;;  %1915 = vmatmul.f32.gmra.mxu1 %v4177_v47  ;;  %2248 = vmatmul.f32.gmra.mxu0 %v4177_v47  ;;  %v1424_v56 = vadd.f32 %v4199_v33, %v5056_v45  ;;  %v5058_v33 = vld [vmem:[#allocation39_spill] sm:$0xff] }
 0x2d4   : > { %v2297_v19 = vadd.f32 %v2265_v20, %v2202_v21 }
 0x2d6   : > { %2329 = vst [vmem:[%s4399_s15 + $0x68] sm:$0xff] %v2297_v19  ;;  %v2360_v2 = vadd.f32 %v2359_v53, %v2297_v19  ;;  %v2398_v29 = vmul.f32 %v2297_v19, %v2297_v19 }
 0x2d7   : > { %v1982_v54 = vpop.f32.mrf.mxu2  ;;  %v2093_v38 = vpop.f32.mrf.mxu3 }
 0x2d8   : > { %v2429_v50 = vadd.f32 %v2428_v39, %v2398_v29  ;;  %v2094_v44 = vadd.f32 %v2093_v38, %v1982_v54  ;;  %v1871_v49 = vpop.f32.mrf.mxu1  ;;  %v2204_v4 = vpop.f32.mrf.mxu0 }
 0x2d9   : > { %v1872_v47 = vadd.f32 %v1871_v49, %v1759_v1 }
 0x2da   : > { %v2205_v20 = vadd.f32 %v2204_v4, %v2094_v44 }
 0x2db   : > { %v2268_v28 = vadd.f32 %v1872_v47, %v1529_v12 }
 0x2dc   : > { %v2298_v36 = vadd.f32 %v2266_v48, %v2205_v20 }
 0x2de   : > { %2330 = vst [vmem:[%s4399_s15 + $0x70] sm:$0xff] %v2298_v36  ;;  %v2361_v62 = vadd.f32 %v2360_v2, %v2298_v36  ;;  %v2399_v3 = vmul.f32 %v2298_v36, %v2298_v36  ;;  %v5057_v2 = vld [vmem:[#allocation129_spill] sm:$0xff]  ;;  %v5059_v36 = vld [vmem:[#allocation130_spill] sm:$0xff] }
 0x2df   : > { %v1985_v40 = vpop.f32.mrf.mxu2  ;;  %v2096_v13 = vpop.f32.mrf.mxu3  ;;  %v1535_v29 = vadd.f32 %v5057_v2, %v1424_v56 }
 0x2e0   : > { %v2430_v61 = vadd.f32 %v2429_v50, %v2399_v3  ;;  %v2097_v53 = vadd.f32 %v2096_v13, %v1985_v40  ;;  %v1874_v18 = vpop.f32.mrf.mxu1  ;;  %v2207_v32 = vpop.f32.mrf.mxu0  ;;  %v1427_v50 = vadd.f32 %v4211_v27, %v5058_v33  ;;  %v5060_v27 = vld [vmem:[#allocation43_spill] sm:$0xff] }
 0x2e1   : > { %v1875_v39 = vadd.f32 %v1874_v18, %v1762_v23  ;;  %v1430_v3 = vadd.f32 %v4223_v31, %v5060_v27  ;;  %v5062_v31 = vld [vmem:[#allocation48_spill] sm:$0xff] }
 0x2e2   : > { %v2208_v48 = vadd.f32 %v2207_v32, %v2097_v53  ;;  %v1538_v52 = vadd.f32 %v5059_v36, %v1427_v50  ;;  %v1433_v45 = vadd.f32 %v4235_v35, %v5062_v31  ;;  %v5065_v35 = vld [vmem:[#allocation52_spill] sm:$0xff] }
 0x2e3   : > { %v2269_v24 = vadd.f32 %v1875_v39, %v1532_v51  ;;  %v1541_v51 = vadd.f32 %v5061_v34, %v1430_v3  ;;  %v5074_v31 = vld [vmem:[#allocation140_spill] sm:$0xff] }
 0x2e4   : > { %v2299_v43 = vadd.f32 %v2267_v9, %v2208_v48 }
 0x2e6   : > { %2331 = vst [vmem:[%s4399_s15 + $0x78] sm:$0xff] %v2299_v43  ;;  %v2362_v14 = vadd.f32 %v2361_v62, %v2299_v43  ;;  %v2400_v26 = vmul.f32 %v2299_v43, %v2299_v43 }
 0x2e7   : > { %v1988_v7 = vpop.f32.mrf.mxu2  ;;  %v2099_v21 = vpop.f32.mrf.mxu3 }
 0x2e8   : > { %v2431_v19 = vadd.f32 %v2430_v61, %v2400_v26  ;;  %v2100_v22 = vadd.f32 %v2099_v21, %v1988_v7  ;;  %v1877_v59 = vpop.f32.mrf.mxu1  ;;  %v2210_v30 = vpop.f32.mrf.mxu0 }
 0x2e9   : > { %v1878_v1 = vadd.f32 %v1877_v59, %v1765_v58  ;;  %v5064_v59 = vld [vmem:[#allocation132_spill] sm:$0xff] }
 0x2ea   : > { %v2211_v9 = vadd.f32 %v2210_v30, %v2100_v22  ;;  %v1544_v30 = vadd.f32 %v5064_v59, %v1433_v45 }
 0x2eb   : > { %v2270_v54 = vadd.f32 %v1878_v1, %v1535_v29 }
 0x2ec   : > { %v2300_v38 = vadd.f32 %v2268_v28, %v2211_v9 }
 0x2ee   : > { %2332 = vst [vmem:[%s4399_s15 + $0x80] sm:$0xff] %v2300_v38  ;;  %v2363_v44 = vadd.f32 %v2362_v14, %v2300_v38  ;;  %v2401_v49 = vmul.f32 %v2300_v38, %v2300_v38 }
 0x2ef   : > { %v1991_v42 = vpop.f32.mrf.mxu2  ;;  %v2102_v4 = vpop.f32.mrf.mxu3 }
 0x2f0   : > { %v2432_v6 = vadd.f32 %v2431_v19, %v2401_v49  ;;  %v2103_v12 = vadd.f32 %v2102_v4, %v1991_v42  ;;  %v1880_v47 = vpop.f32.mrf.mxu1  ;;  %v2213_v20 = vpop.f32.mrf.mxu0 }
 0x2f1   : > { %v1881_v25 = vadd.f32 %v1880_v47, %v1768_v0  ;;  %v5068_v47 = vld [vmem:[#allocation133_spill] sm:$0xff] }
 0x2f2   : > { %v2214_v28 = vadd.f32 %v2213_v20, %v2103_v12 }
 0x2f3   : > { %v2271_v55 = vadd.f32 %v1881_v25, %v1538_v52 }
 0x2f4   : > { %v2301_v62 = vadd.f32 %v2269_v24, %v2214_v28 }
 0x2f6   : > { %2333 = vst [vmem:[%s4399_s15 + $0x88] sm:$0xff] %v2301_v62  ;;  %v2364_v23 = vadd.f32 %v2363_v44, %v2301_v62  ;;  %v2402_v40 = vmul.f32 %v2301_v62, %v2301_v62  ;;  %v1777_v44 = vadd.f32 %v4273_v37, %v5067_v15  ;;  %v5070_v62 = vld [vmem:[#allocation136_spill] sm:$0xff]  ;;  %v5071_v37 = vld [vmem:[#allocation31_spill] sm:$0xff] }
 0x2f7   : > { %v1994_v57 = vpop.f32.mrf.mxu2  ;;  %v2105_v13 = vpop.f32.mrf.mxu3 }
 0x2f8   : > { %v2433_v61 = vadd.f32 %v2432_v6, %v2402_v40  ;;  %v2106_v53 = vadd.f32 %v2105_v13, %v1994_v57  ;;  %v1883_v18 = vpop.f32.mrf.mxu1  ;;  %v2216_v32 = vpop.f32.mrf.mxu0  ;;  %v1780_v40 = vadd.f32 %v4285_v10, %v5071_v37  ;;  %v1783_v10 = vadd.f32 %v4297_v5, %v4293_v46  ;;  %v5077_v5 = vld [vmem:[#allocation37_spill] sm:$0xff]  ;;  %v5081_v37 = vld [vmem:[#allocation2_spill] sm:$0xff] }
 0x2f9   : > { %v1884_v39 = vadd.f32 %v1883_v18, %v1771_v11  ;;  %v1786_v46 = vadd.f32 %v4309_v16, %v5077_v5  ;;  %v1789_v16 = vadd.f32 %v4321_v60, %v4317_v8  ;;  %v5084_v60 = vld [vmem:[#allocation143_spill] sm:$0xff]  ;;  %v5085_v8 = vld [vmem:[#allocation145_spill] sm:$0xff] }
 0x2fa   : > { %v2217_v48 = vadd.f32 %v2216_v32, %v2106_v53  ;;  %v5072_v32 = vld [vmem:[#allocation135_spill] sm:$0xff] }
 0x2fb   : > { %v2272_v24 = vadd.f32 %v1884_v39, %v1541_v51 }
 0x2fc   : > { %v2302_v43 = vadd.f32 %v2270_v54, %v2217_v48  ;;  %v5066_v54 = vld [vmem:[#allocation134_spill] sm:$0xff] }
 0x2fd   : > { %v1436_v38 = vadd.f32 %v5066_v54, %v5065_v35 }
 0x2fe   : > { %2334 = vst [vmem:[%s4399_s15 + $0x90] sm:$0xff] %v2302_v43  ;;  %v2365_v56 = vadd.f32 %v2364_v23, %v2302_v43  ;;  %v2403_v14 = vmul.f32 %v2302_v43, %v2302_v43  ;;  %v5073_v43 = vld [vmem:[#allocation62_spill] sm:$0xff] }
 0x2ff   : > { %v1997_v26 = vpop.f32.mrf.mxu2  ;;  %v2108_v58 = vpop.f32.mrf.mxu3  ;;  %v1547_v20 = vadd.f32 %v5068_v47, %v1436_v38  ;;  %v1442_v45 = vadd.f32 %v5074_v31, %v5073_v43 }
 0x300   : > { %v2434_v7 = vadd.f32 %v2433_v61, %v2403_v14  ;;  %v2109_v21 = vadd.f32 %v2108_v58, %v1997_v26  ;;  %v1886_v19 = vpop.f32.mrf.mxu1  ;;  %v2219_v22 = vpop.f32.mrf.mxu0 }
 0x301   : > { %v1887_v2 = vadd.f32 %v1886_v19, %v1774_v17  ;;  %v5075_v19 = vld [vmem:[#allocation138_spill] sm:$0xff] }
 0x302   : > { %v2220_v29 = vadd.f32 %v2219_v22, %v2109_v21  ;;  %v1553_v22 = vadd.f32 %v5075_v19, %v1442_v45 }
 0x303   : > { %v2273_v1 = vadd.f32 %v1887_v2, %v1544_v30 }
 0x304   : > { %v2303_v9 = vadd.f32 %v2271_v55, %v2220_v29  ;;  %v5069_v55 = vld [vmem:[#allocation57_spill] sm:$0xff] }
 0x305   : > { %v1439_v27 = vadd.f32 %v5070_v62, %v5069_v55 }
 0x306   : > { %2335 = vst [vmem:[%s4399_s15 + $0x98] sm:$0xff] %v2303_v9  ;;  %v2366_v33 = vadd.f32 %v2365_v56, %v2303_v9  ;;  %v2404_v50 = vmul.f32 %v2303_v9, %v2303_v9 }
 0x307   : > { %v2000_v49 = vpop.f32.mrf.mxu2  ;;  %v2111_v0 = vpop.f32.mrf.mxu3  ;;  %v1550_v34 = vadd.f32 %v5072_v32, %v1439_v27 }
 0x308   : > { %v2435_v42 = vadd.f32 %v2434_v7, %v2404_v50  ;;  %v2112_v4 = vadd.f32 %v2111_v0, %v2000_v49  ;;  %v1889_v6 = vpop.f32.mrf.mxu1  ;;  %v2222_v12 = vpop.f32.mrf.mxu0  ;;  %v5078_v0 = vld [vmem:[#allocation32_spill] sm:$0xff] }
 0x309   : > { %v1890_v36 = vadd.f32 %v1889_v6, %v1777_v44 }
 0x30a   : > { %v2223_v52 = vadd.f32 %v2222_v12, %v2112_v4 }
 0x30b   : > { %v2274_v25 = vadd.f32 %v1890_v36, %v1547_v20  ;;  %v5080_v20 = vld [vmem:[#allocation33_spill] sm:$0xff] }
 0x30c   : > { %v2304_v28 = vadd.f32 %v2272_v24, %v2223_v52 }
 0x30e   : > { %2336 = vst [vmem:[%s4399_s15 + $0xa0] sm:$0xff] %v2304_v28  ;;  %v2367_v3 = vadd.f32 %v2366_v33, %v2304_v28  ;;  %v2405_v23 = vmul.f32 %v2304_v28, %v2304_v28 }
 0x30f   : > { %v2003_v11 = vpop.f32.mrf.mxu2  ;;  %v2114_v57 = vpop.f32.mrf.mxu3 }
 0x310   : > { %v2436_v13 = vadd.f32 %v2435_v42, %v2405_v23  ;;  %v2115_v61 = vadd.f32 %v2114_v57, %v2003_v11  ;;  %v1892_v53 = vpop.f32.mrf.mxu1  ;;  %v2225_v18 = vpop.f32.mrf.mxu0 }
 0x311   : > { %v1893_v51 = vadd.f32 %v1892_v53, %v1780_v40  ;;  %v5082_v53 = vld [vmem:[#allocation40_spill] sm:$0xff] }
 0x312   : > { %v2226_v39 = vadd.f32 %v2225_v18, %v2115_v61  ;;  %v5083_v18 = vld [vmem:[#allocation141_spill] sm:$0xff] }
 0x313   : > { %v2275_v48 = vadd.f32 %v1893_v51, %v1550_v34  ;;  %v1451_v32 = vadd.f32 %v5083_v18, %v5082_v53  ;;  %v5099_v18 = vld [vmem:[#allocation56_spill] sm:$0xff] }
 0x314   : > { %v2305_v24 = vadd.f32 %v2273_v1, %v2226_v39  ;;  %v5076_v1 = vld [vmem:[#allocation65_spill] sm:$0xff]  ;;  %v1792_v39 = vadd.f32 %v5085_v8, %v5084_v60 }
 0x315   : > { %v1445_v9 = vadd.f32 %v4283_v41, %v5076_v1  ;;  %v5079_v41 = vld [vmem:[#allocation35_spill] sm:$0xff] }
 0x316   : > { %2337 = vst [vmem:[%s4399_s15 + $0xa8] sm:$0xff] %v2305_v24  ;;  %v2368_v56 = vadd.f32 %v2367_v3, %v2305_v24  ;;  %v2406_v14 = vmul.f32 %v2305_v24, %v2305_v24  ;;  %v1448_v36 = vadd.f32 %v5080_v20, %v5079_v41  ;;  %v5095_v41 = vld [vmem:[#allocation152_spill] sm:$0xff] }
 0x317   : > { %v2006_v63 = vpop.f32.mrf.mxu2  ;;  %v2117_v17 = vpop.f32.mrf.mxu3  ;;  %v1556_v42 = vadd.f32 %v5078_v0, %v1445_v9  ;;  %v5092_v0 = vld [vmem:[#allocation49_spill] sm:$0xff] }
 0x318   : > { %v2437_v26 = vadd.f32 %v2436_v13, %v2406_v14  ;;  %v2118_v58 = vadd.f32 %v2117_v17, %v2006_v63  ;;  %v1895_v7 = vpop.f32.mrf.mxu1  ;;  %v2228_v21 = vpop.f32.mrf.mxu0  ;;  %v1559_v40 = vadd.f32 %v5081_v37, %v1448_v36  ;;  %v5086_v14 = vld [vmem:[#allocation3_spill] sm:$0xff] }
 0x319   : > { %v1896_v59 = vadd.f32 %v1895_v7, %v1783_v10  ;;  %v1562_v10 = vadd.f32 %v5086_v14, %v1451_v32  ;;  %v5087_v7 = vld [vmem:[#allocation44_spill] sm:$0xff] }
 0x31a   : > { %v2229_v30 = vadd.f32 %v2228_v21, %v2118_v58  ;;  %v5088_v21 = vld [vmem:[#allocation142_spill] sm:$0xff]  ;;  %v5100_v32 = vld [vmem:[#allocation28_spill] sm:$0xff] }
 0x31b   : > { %v2276_v2 = vadd.f32 %v1896_v59, %v1553_v22  ;;  %v1454_v19 = vadd.f32 %v5088_v21, %v5087_v7  ;;  %v5104_v21 = vld [vmem:[#allocation61_spill] sm:$0xff] }
 0x31c   : > { %v2306_v29 = vadd.f32 %v2274_v25, %v2229_v30  ;;  %v5089_v30 = vld [vmem:[#allocation147_spill] sm:$0xff] }
 0x31e   : > { %2338 = vst [vmem:[%s4399_s15 + $0xb0] sm:$0xff] %v2306_v29  ;;  %v2369_v35 = vadd.f32 %v2368_v56, %v2306_v29  ;;  %v2407_v54 = vmul.f32 %v2306_v29, %v2306_v29 }
 0x31f   : > { %v2009_v38 = vpop.f32.mrf.mxu2  ;;  %v2120_v33 = vpop.f32.mrf.mxu3 }
 0x320   : > { %v2438_v50 = vadd.f32 %v2437_v26, %v2407_v54  ;;  %v2121_v15 = vadd.f32 %v2120_v33, %v2009_v38  ;;  %v1898_v44 = vpop.f32.mrf.mxu1  ;;  %v2231_v49 = vpop.f32.mrf.mxu0  ;;  %v5091_v38 = vld [vmem:[#allocation16_spill] sm:$0xff] }
 0x321   : > { %v1899_v4 = vadd.f32 %v1898_v44, %v1786_v46  ;;  %v1565_v33 = vadd.f32 %v5091_v38, %v1454_v19  ;;  %v5105_v19 = vld [vmem:[#allocation4_spill] sm:$0xff] }
 0x322   : > { %v2232_v6 = vadd.f32 %v2231_v49, %v2121_v15 }
 0x323   : > { %v2277_v12 = vadd.f32 %v1899_v4, %v1556_v42  ;;  %v5093_v42 = vld [vmem:[#allocation144_spill] sm:$0xff] }
 0x324   : > { %v2307_v47 = vadd.f32 %v2275_v48, %v2232_v6  ;;  %v1457_v4 = vadd.f32 %v5093_v42, %v5092_v0 }
 0x326   : > { %2339 = vst [vmem:[%s4399_s15 + $0xb8] sm:$0xff] %v2307_v47  ;;  %v2370_v52 = vadd.f32 %v2369_v35, %v2307_v47  ;;  %v2408_v25 = vmul.f32 %v2307_v47, %v2307_v47  ;;  %v5094_v47 = vld [vmem:[#allocation150_spill] sm:$0xff] }
 0x327   : > { %v2012_v28 = vpop.f32.mrf.mxu2  ;;  %v2123_v55 = vpop.f32.mrf.mxu3  ;;  %v1798_v20 = vadd.f32 %v5095_v41, %v5094_v47 }
 0x328   : > { %v2439_v62 = vadd.f32 %v2438_v50, %v2408_v25  ;;  %v2124_v27 = vadd.f32 %v2123_v55, %v2012_v28  ;;  %v1901_v3 = vpop.f32.mrf.mxu1  ;;  %v2234_v23 = vpop.f32.mrf.mxu0 }
 0x329   : > { %v1902_v11 = vadd.f32 %v1901_v3, %v1789_v16 }
 0x32a   : > { %v2235_v57 = vadd.f32 %v2234_v23, %v2124_v27 }
 0x32b   : > { %v2278_v13 = vadd.f32 %v1902_v11, %v1559_v40  ;;  %v5097_v11 = vld [vmem:[#allocation54_spill] sm:$0xff] }
 0x32c   : > { %v2308_v61 = vadd.f32 %v2276_v2, %v2235_v57  ;;  %v5090_v2 = vld [vmem:[#allocation149_spill] sm:$0xff]  ;;  %v5098_v57 = vld [vmem:[#allocation148_spill] sm:$0xff] }
 0x32d   : > { %v1795_v29 = vadd.f32 %v5090_v2, %v5089_v30 }
 0x32e   : > { %2340 = vst [vmem:[%s4399_s15 + $0xc0] sm:$0xff] %v2308_v61  ;;  %v2371_v34 = vadd.f32 %v2370_v52, %v2308_v61  ;;  %v2409_v51 = vmul.f32 %v2308_v61, %v2308_v61 }
 0x32f   : > { %v2015_v48 = vpop.f32.mrf.mxu2  ;;  %v2126_v24 = vpop.f32.mrf.mxu3 }
 0x330   : > { %v2440_v43 = vadd.f32 %v2439_v62, %v2409_v51  ;;  %v2127_v31 = vadd.f32 %v2126_v24, %v2015_v48  ;;  %v1904_v45 = vpop.f32.mrf.mxu1  ;;  %v2237_v56 = vpop.f32.mrf.mxu0  ;;  %v5096_v62 = vld [vmem:[#allocation45_spill] sm:$0xff] }
 0x331   : > { %v1905_v63 = vadd.f32 %v1904_v45, %v1792_v39  ;;  %v1568_v27 = vadd.f32 %v5096_v62, %v1457_v4 }
 0x332   : > { %v2238_v17 = vadd.f32 %v2237_v56, %v2127_v31 }
 0x333   : > { %v2279_v26 = vadd.f32 %v1905_v63, %v1562_v10  ;;  %v5102_v63 = vld [vmem:[#allocation59_spill] sm:$0xff] }
 0x334   : > { %v2309_v58 = vadd.f32 %v2277_v12, %v2238_v17  ;;  %v5103_v17 = vld [vmem:[#allocation151_spill] sm:$0xff] }
 0x336   : > { %2341 = vst [vmem:[%s4399_s15 + $0xc8] sm:$0xff] %v2309_v58  ;;  %v2372_v22 = vadd.f32 %v2371_v34, %v2309_v58  ;;  %v2410_v59 = vmul.f32 %v2309_v58, %v2309_v58  ;;  %v1801_v34 = vadd.f32 %v5100_v32, %v5099_v18 }
 0x337   : > { %v2018_v1 = vpop.f32.mrf.mxu2  ;;  %v2129_v9 = vpop.f32.mrf.mxu3 }
 0x338   : > { %v2441_v35 = vadd.f32 %v2440_v43, %v2410_v59  ;;  %v2130_v54 = vadd.f32 %v2129_v9, %v2018_v1  ;;  %v1907_v5 = vpop.f32.mrf.mxu1  ;;  %v2240_v46 = vpop.f32.mrf.mxu0  ;;  %v5101_v43 = vld [vmem:[#allocation146_spill] sm:$0xff] }
 0x339   : > { %v1908_v50 = vadd.f32 %v1907_v5, %v1795_v29 }
 0x33a   : > { %v2241_v15 = vadd.f32 %v2240_v46, %v2130_v54 }
 0x33b   : > { %v2280_v44 = vadd.f32 %v1908_v50, %v1565_v33 }
 0x33c   : > { %v2310_v49 = vadd.f32 %v2278_v13, %v2241_v15  ;;  %v1460_v13 = vadd.f32 %v5098_v57, %v5097_v11 }
 0x33e   : > { %2342 = vst [vmem:[%s4399_s15 + $0xd0] sm:$0xff] %v2310_v49  ;;  %v2373_v6 = vadd.f32 %v2372_v22, %v2310_v49  ;;  %v2411_v12 = vmul.f32 %v2310_v49, %v2310_v49  ;;  %v1571_v31 = vadd.f32 %v5101_v43, %v1460_v13  ;;  %v1804_v22 = vadd.f32 %v5105_v19, %v5104_v21 }
 0x33f   : > { %v2021_v36 = vpop.f32.mrf.mxu2  ;;  %v2132_v52 = vpop.f32.mrf.mxu3 }
 0x340   : > { %v2442_v25 = vadd.f32 %v2441_v35, %v2411_v12  ;;  %v2133_v16 = vadd.f32 %v2132_v52, %v2021_v36  ;;  %v1910_v28 = vpop.f32.mrf.mxu1  ;;  %v2243_v55 = vpop.f32.mrf.mxu0  ;;  %v5106_v35 = vld [vmem:[#allocation27_spill] sm:$0xff] }
 0x341   : > { %v1911_v3 = vadd.f32 %v1910_v28, %v1798_v20 }
 0x342   : > { %v2244_v23 = vadd.f32 %v2243_v55, %v2133_v16 }
 0x343   : > { %v2281_v37 = vadd.f32 %v1911_v3, %v1568_v27 }
 0x344   : > { %v2311_v40 = vadd.f32 %v2279_v26, %v2244_v23  ;;  %v1463_v26 = vadd.f32 %v5103_v17, %v5102_v63 }
 0x346   : > { %2343 = vst [vmem:[%s4399_s15 + $0xd8] sm:$0xff] %v2311_v40  ;;  %v2374_v61 = vadd.f32 %v2373_v6, %v2311_v40  ;;  %v2412_v53 = vmul.f32 %v2311_v40, %v2311_v40  ;;  %v1574_v54 = vadd.f32 %v5106_v35, %v1463_v26 }
 0x347   : > { %v2024_v51 = vpop.f32.mrf.mxu2  ;;  %v2135_v60 = vpop.f32.mrf.mxu3 }
 0x348   : > { %v2443_v8 = vadd.f32 %v2442_v25, %v2412_v53  ;;  %v2136_v39 = vadd.f32 %v2135_v60, %v2024_v51  ;;  %v1913_v48 = vpop.f32.mrf.mxu1  ;;  %v2246_v24 = vpop.f32.mrf.mxu0 }
 0x349   : > { %v1914_v45 = vadd.f32 %v1913_v48, %v1801_v34 }
 0x34a   : > { %v2247_v56 = vadd.f32 %v2246_v24, %v2136_v39 }
 0x34b   : > { %v2282_v14 = vadd.f32 %v1914_v45, %v1571_v31 }
 0x34c   : > { %v2312_v10 = vadd.f32 %v2280_v44, %v2247_v56 }
 0x34d   : > { %2346 = vst [vmem:[%s4399_s15 + $0xf0] sm:$0xff] %v2282_v14  ;;  %v2415_v44 = vmul.f32 %v2282_v14, %v2282_v14 }
 0x34e   : > { %2344 = vst [vmem:[%s4399_s15 + $0xe0] sm:$0xff] %v2312_v10  ;;  %v2375_v58 = vadd.f32 %v2374_v61, %v2312_v10  ;;  %v2413_v7 = vmul.f32 %v2312_v10, %v2312_v10 }
 0x34f   : > { %v2027_v59 = vpop.f32.mrf.mxu2  ;;  %v2138_v30 = vpop.f32.mrf.mxu3 }
 0x350   : > { %v2444_v2 = vadd.f32 %v2443_v8, %v2413_v7  ;;  %v2139_v29 = vadd.f32 %v2138_v30, %v2027_v59  ;;  %v1916_v1 = vpop.f32.mrf.mxu1  ;;  %v2249_v9 = vpop.f32.mrf.mxu0 }
 0x351   : > { %v1917_v5 = vadd.f32 %v1916_v1, %v1804_v22 }
 0x352   : > { %v2250_v46 = vadd.f32 %v2249_v9, %v2139_v29 }
 0x353   : > { %v2283_v38 = vadd.f32 %v1917_v5, %v1574_v54 }
 0x354   : > { %v2313_v33 = vadd.f32 %v2281_v37, %v2250_v46 }
 0x355   : > { %2347 = vst [vmem:[%s4399_s15 + $0xf8] sm:$0xff] %v2283_v38  ;;  %v2416_v42 = vmul.f32 %v2283_v38, %v2283_v38 }
 0x356   : > { %2345 = vst [vmem:[%s4399_s15 + $0xe8] sm:$0xff] %v2313_v33  ;;  %v2376_v50 = vadd.f32 %v2375_v58, %v2313_v33  ;;  %v2414_v15 = vmul.f32 %v2313_v33, %v2313_v33 }
 0x358   : > { %v2377_v49 = vadd.f32 %v2376_v50, %v2282_v14  ;;  %v2445_v0 = vadd.f32 %v2444_v2, %v2414_v15 }
 0x35a   : > { %v2378_v4 = vadd.f32 %v2377_v49, %v2283_v38  ;;  %v2446_v6 = vadd.f32 %v2445_v0, %v2415_v44 }
 0x35c   : > { %v2379_v12 = vrot.slane %v2378_v4, 4  ;;  %v2447_v47 = vadd.f32 %v2446_v6, %v2416_v42 }
 0x35e   : > { %v2380_v41 = vadd.f32 %v2379_v12, %v2378_v4  ;;  %v2448_v20 = vrot.slane %v2447_v47, 4 }
 0x360   : > { %v2381_v36 = vrot.slane %v2380_v41, 2  ;;  %v2449_v52 = vadd.f32 %v2448_v20, %v2447_v47 }
 0x362   : > { %v2382_v25 = vadd.f32 %v2381_v36, %v2380_v41  ;;  %v2450_v16 = vrot.slane %v2449_v52, 2 }
 0x364   : > { %v2383_v28 = vrot.slane %v2382_v25, 1  ;;  %v2451_v55 = vadd.f32 %v2450_v16, %v2449_v52 }
 0x366   : > { %v2452_v62 = vrot.slane %v2451_v55, 1  ;;  %v2384_v27 = vadd.f32 %v2383_v28, %v2382_v25 }
 0x368   : > { %v2453_v3 = vadd.f32 %v2452_v62, %v2451_v55 }
 0x36a   : > { %v2454_v23 = vsel %vm461_vm0, %v2384_v27, %v2453_v3 }
 0x36b   : > { %2455 = vst [vmem:[%s292_s17] sm:$0x3] %v2454_v23 }
 0x36c PF: > { %s18_s24 = sadd.s32 1, %s2623_s24  }
 0x36d   : > { %p15_p5 = scmp.ge.s32.totalorder %s18_s24, 4  }
 0x36f   :  { %17 = sbr.rel (!%p15_p5) target bundleno = 1 (0x1), region = 86 }

</bundles_post_ra>
